<compile_context>
chip_gen: v7x
topology: tpu7x:2x2x1
jax: 0.10.0
libtpu: 0.0.40
codegen_flags: <defaults>
</compile_context>

<pallas_src>
import jax
import jax.numpy as jnp
from jax.experimental import pallas as pl
from jax.experimental.pallas import tpu as pltpu


# --------------------------------------------------------------------------
# Fused Pallas kernel: the entire decoder in one pallas_call.
# --------------------------------------------------------------------------

def _mel_decoder_kernel(x_ref, w1_ref, b1_ref, wr1_ref, wr2_ref,
                        wd1_ref, bd1_ref, g1_ref, bt1_ref,
                        w2b_ref, b2b_ref, g2_ref, bt2_ref,
                        w2_ref, b2_ref,
                        o_ref,
                        padx_ref, padh_ref, padq_ref):
    # x:   (B, L, Cin)                     channels-last input
    # w1:  (3, Cin, H)   b1: (1, H)        conv_1 taps
    # wr1: (nl, 3, H, R) wr2: (nl, R, H)   residual block weights (bias-free)
    # wd1: (4, H, H)     bd1: (1, H)       ConvTranspose1d(k=4, s=2, p=1)
    # g1/bt1: (1, H)                       BatchNorm1d(H) affine
    # w2b: (3, H, Hh)    b2b: (1, Hh)      ConvTranspose1d(k=3,s=1,p=1) as conv taps
    # g2/bt2: (1, Hh)                      BatchNorm1d(Hh) affine
    # w2:  (3, Hh, 1)    b2: (1, 1)        final ConvTranspose1d(k=3,s=1,p=1)
    # o:   (B, L, 2)                       even/odd output phases
    B, L, _ = x_ref.shape
    n_layers = wr1_ref.shape[0]
    f32 = jnp.float32

    # Zero the padding scratch buffers once; rows 0 and L+1 stay zero for the
    # whole kernel (in-VMEM zero padding for every k=3 / k=4 conv).
    padx_ref[...] = jnp.zeros_like(padx_ref)
    padh_ref[...] = jnp.zeros_like(padh_ref)
    padq_ref[...] = jnp.zeros_like(padq_ref)

    def neighbors(v, buf):
        # (v_prev, v_next) with zero boundaries:
        #   v_prev[l] = v[l-1]  (0 at l=0),   v_next[l] = v[l+1]  (0 at l=L-1)
        buf[1:L + 1, :] = v
        vp = buf[...]                       # (L+2, C), halo rows are zero
        return vp[0:L, :], vp[2:L + 2, :]

    def mm(a, b):
        return jnp.dot(a, b, preferred_element_type=f32)

    # ---- conv_1 + residual stack + final tanh + conv_trans_1 (even/odd) ----
    b1 = b1_ref[...]
    bd1 = bd1_ref[...]
    evs, ods = [], []
    for b in range(B):
        x = x_ref[b].astype(f32)                          # (L, Cin)
        xm, xp = neighbors(x, padx_ref)
        h = mm(xm, w1_ref[0]) + mm(x, w1_ref[1]) + mm(xp, w1_ref[2]) + b1

        for i in range(n_layers):
            t = jnp.tanh(h)
            tm, tp = neighbors(t, padh_ref)
            r = jnp.tanh(mm(tm, wr1_ref[i, 0]) + mm(t, wr1_ref[i, 1])
                         + mm(tp, wr1_ref[i, 2]))
            h = h + mm(r, wr2_ref[i])

        h = jnp.tanh(h)                                   # ResidualStack tanh
        hm, hp = neighbors(h, padh_ref)
        # ConvTranspose1d(k=4, s=2, p=1) in output-phase form:
        #   out[2m]   = x[m] @ W1 + x[m-1] @ W3 + b
        #   out[2m+1] = x[m] @ W2 + x[m+1] @ W0 + b
        ev = mm(h, wd1_ref[1]) + mm(hm, wd1_ref[3]) + bd1
        od = mm(h, wd1_ref[2]) + mm(hp, wd1_ref[0]) + bd1
        evs.append(ev)
        ods.append(od)

    # ---- norm1_dec: training-mode batch stats over (B, 2L) + tanh ----
    cnt = float(B * 2 * L)
    mean1 = sum(jnp.sum(v, axis=0, keepdims=True) for v in evs + ods) / cnt
    var1 = sum(jnp.sum((v - mean1) ** 2, axis=0, keepdims=True)
               for v in evs + ods) / cnt
    a1 = g1_ref[...] * jax.lax.rsqrt(var1 + 1e-5)
    c1 = bt1_ref[...] - mean1 * a1

    # ---- conv_trans_2_bis (k=3, s=1, p=1) on the interleaved sequence,
    #      kept in phase form:  z[2m] = ze[m], z[2m+1] = zo[m]
    #   out_even[m] = zo[m-1]@V0 + ze[m]@V1 + zo[m]@V2 + b
    #   out_odd[m]  = ze[m]@V0   + zo[m]@V1 + ze[m+1]@V2 + b
    b2b = b2b_ref[...]
    evs2, ods2 = [], []
    for b in range(B):
        ze = jnp.tanh(evs[b] * a1 + c1)
        zo = jnp.tanh(ods[b] * a1 + c1)
        zom, _ = neighbors(zo, padh_ref)                  # zo[m-1]
        _, zep = neighbors(ze, padh_ref)                  # ze[m+1]
        e2 = mm(zom, w2b_ref[0]) + mm(ze, w2b_ref[1]) + mm(zo, w2b_ref[2]) + b2b
        o2 = mm(ze, w2b_ref[0]) + mm(zo, w2b_ref[1]) + mm(zep, w2b_ref[2]) + b2b
        evs2.append(e2)
        ods2.append(o2)

    # ---- norm2_dec + tanh ----
    mean2 = sum(jnp.sum(v, axis=0, keepdims=True) for v in evs2 + ods2) / cnt
    var2 = sum(jnp.sum((v - mean2) ** 2, axis=0, keepdims=True)
               for v in evs2 + ods2) / cnt
    a2 = g2_ref[...] * jax.lax.rsqrt(var2 + 1e-5)
    c2 = bt2_ref[...] - mean2 * a2

    # ---- conv_trans_2 (k=3, s=1, p=1, Cout=1), still in phase form ----
    b2 = b2_ref[...]
    for b in range(B):
        ye = jnp.tanh(evs2[b] * a2 + c2)
        yo = jnp.tanh(ods2[b] * a2 + c2)
        yom, _ = neighbors(yo, padq_ref)
        _, yep = neighbors(ye, padq_ref)
        fe = mm(yom, w2_ref[0]) + mm(ye, w2_ref[1]) + mm(yo, w2_ref[2]) + b2
        fo = mm(ye, w2_ref[0]) + mm(yo, w2_ref[1]) + mm(yep, w2_ref[2]) + b2
        o_ref[b, :, 0:1] = fe.astype(o_ref.dtype)
        o_ref[b, :, 1:2] = fo.astype(o_ref.dtype)


# --------------------------------------------------------------------------
# Wrapper: one pallas_call for the whole forward pass.
# --------------------------------------------------------------------------

def mel_decoder_forward(inputs_ncl, pk):
    """inputs_ncl: (B, Cin, L) as in PyTorch; returns (B, 1, 2L)."""
    x = jnp.transpose(inputs_ncl, (0, 2, 1)).astype(jnp.float32)   # (B, L, Cin)
    B, L, Cin = x.shape
    H = pk["w1"].shape[2]
    Hh = pk["w2b"].shape[2]

    args = (x, pk["w1"], pk["b1"], pk["wr1"], pk["wr2"], pk["wd1"], pk["bd1"],
            pk["g1"], pk["bt1"], pk["w2b"], pk["b2b"], pk["g2"], pk["bt2"],
            pk["w2"], pk["b2"])

    def full_spec(shape):
        nd = len(shape)
        return pl.BlockSpec(shape, lambda *_: (0,) * nd)

    out = pl.pallas_call(
        _mel_decoder_kernel,
        out_shape=jax.ShapeDtypeStruct((B, L, 2), jnp.float32),
        grid_spec=pltpu.PrefetchScalarGridSpec(
            num_scalar_prefetch=0,
            grid=(1,),
            in_specs=[full_spec(a.shape) for a in args],
            out_specs=full_spec((B, L, 2)),
            scratch_shapes=[
                pltpu.VMEM((L + 2, Cin), jnp.float32),   # padded x
                pltpu.VMEM((L + 2, H), jnp.float32),     # padded H-wide acts
                pltpu.VMEM((L + 2, Hh), jnp.float32),    # padded H/2-wide acts
            ],
        ),
        compiler_params=pltpu.CompilerParams(
            dimension_semantics=("arbitrary",)),
    )(*args)

    # (B, L, 2) even/odd phases -> interleaved (B, 1, 2L); pure reshape.
    return out.reshape(B, 1, 2 * L)


# --------------------------------------------------------------------------
# Parameters (deterministic synthetic init; PyTorch weight layouts) and the
# one-time pre-pack into kernel-friendly layouts (done OUTSIDE the jit).
# --------------------------------------------------------------------------

def init_params(key, cin, H, n_layers, R):
    ks = jax.random.split(key, 8 + 2 * n_layers)

    def nrm(k, shape, s=0.1):
        return s * jax.random.normal(k, shape, jnp.float32)

    p = {}
    p["conv1_w"] = nrm(ks[0], (H, cin, 3))          # Conv1d: (out, in, k)
    p["conv1_b"] = nrm(ks[1], (H,), 0.05)
    p["res"] = []
    for i in range(n_layers):
        w1 = nrm(ks[2 + 2 * i], (R, H, 3))          # Conv1d k=3, no bias
        w2 = nrm(ks[3 + 2 * i], (H, R, 1))          # Conv1d k=1, no bias
        p["res"].append((w1, w2))
    base = 2 + 2 * n_layers
    p["dc1_w"] = nrm(ks[base + 0], (H, H, 4))       # ConvTranspose1d: (in, out, k)
    p["dc1_b"] = nrm(ks[base + 1], (H,), 0.05)
    p["dc2b_w"] = nrm(ks[base + 2], (H, H // 2, 3))
    p["dc2b_b"] = nrm(ks[base + 3], (H // 2,), 0.05)
    p["dc2_w"] = nrm(ks[base + 4], (H // 2, 1, 3))
    p["dc2_b"] = nrm(ks[base + 5], (1,), 0.05)
    p["bn1_g"] = jnp.ones((H,), jnp.float32)        # BatchNorm1d defaults
    p["bn1_b"] = jnp.zeros((H,), jnp.float32)
    p["bn2_g"] = jnp.ones((H // 2,), jnp.float32)
    p["bn2_b"] = jnp.zeros((H // 2,), jnp.float32)
    return p


def pack_params(p):
    """One-time weight re-layout into the shapes the fused kernel consumes."""
    wr1 = jnp.stack([jnp.transpose(w1, (2, 1, 0)) for (w1, _) in p["res"]])
    wr2 = jnp.stack([jnp.transpose(w2[:, :, 0], (1, 0)) for (_, w2) in p["res"]])
    return dict(
        w1=jnp.transpose(p["conv1_w"], (2, 1, 0)),                  # (3, Cin, H)
        b1=p["conv1_b"].reshape(1, -1),
        wr1=wr1,                                                    # (nl, 3, H, R)
        wr2=wr2,                                                    # (nl, R, H)
        wd1=jnp.transpose(p["dc1_w"], (2, 0, 1)),                   # (4, H, H)
        bd1=p["dc1_b"].reshape(1, -1),
        g1=p["bn1_g"].reshape(1, -1),
        bt1=p["bn1_b"].reshape(1, -1),
        # ConvTranspose1d(k=3,s=1,p=1) == conv with flipped taps:
        w2b=jnp.transpose(p["dc2b_w"][:, :, ::-1], (2, 0, 1)),      # (3, H, H/2)
        b2b=p["dc2b_b"].reshape(1, -1),
        g2=p["bn2_g"].reshape(1, -1),
        bt2=p["bn2_b"].reshape(1, -1),
        w2=jnp.transpose(p["dc2_w"][:, :, ::-1], (2, 0, 1)),        # (3, H/2, 1)
        b2=p["dc2_b"].reshape(1, 1),
    )


# --------------------------------------------------------------------------
# Plain-JAX reference (independent formulation) for validation
# --------------------------------------------------------------------------

def _ref_conv1d(x, w, b):            # x (B,L,Cin), w (Cout,Cin,3), b (Cout,) or None
    B, L, _ = x.shape
    xp = jnp.pad(x, ((0, 0), (1, 1), (0, 0)))
    out = sum(jnp.einsum("blc,dc->bld", xp[:, k:k + L, :], w[:, :, k])
              for k in range(3))
    return out if b is None else out + b


def _ref_convT(x, w, b, stride, k):  # x (B,L,Cin), w (Cin,Cout,k), padding=1
    B, L, _ = x.shape
    cout = w.shape[1]
    full = (L - 1) * stride + k
    y = jnp.zeros((B, full, cout), jnp.float32)
    for kk in range(k):
        y = y.at[:, kk:kk + (L - 1) * stride + 1:stride, :].add(
            jnp.einsum("blc,cd->bld", x, w[:, :, kk]))
    return y[:, 1:full - 1, :] + b


def _ref_bn_tanh(x, g, bt):
    mean = jnp.mean(x, axis=(0, 1), keepdims=True)
    var = jnp.mean((x - mean) ** 2, axis=(0, 1), keepdims=True)
    return jnp.tanh(g * (x - mean) * jax.lax.rsqrt(var + 1e-5) + bt)


def ref_forward(inputs_ncl, p):
    x = jnp.transpose(inputs_ncl, (0, 2, 1)).astype(jnp.float32)
    x = _ref_conv1d(x, p["conv1_w"], p["conv1_b"])
    for (w1, w2) in p["res"]:
        h = jnp.tanh(_ref_conv1d(jnp.tanh(x), w1, None))
        x = x + jnp.einsum("blr,hr->blh", h, w2[:, :, 0])
    x = jnp.tanh(x)
    x = _ref_convT(x, p["dc1_w"], p["dc1_b"], stride=2, k=4)
    x = _ref_bn_tanh(x, p["bn1_g"], p["bn1_b"])
    x = _ref_convT(x, p["dc2b_w"], p["dc2b_b"], stride=1, k=3)
    x = _ref_bn_tanh(x, p["bn2_g"], p["bn2_b"])
    x = _ref_convT(x, p["dc2_w"], p["dc2_b"], stride=1, k=3)
    return jnp.transpose(x, (0, 2, 1))


# --------------------------------------------------------------------------

if __name__ == "__main__":
    B, CIN, L = 2, 8, 16
    H, N_RES, R = 32, 2, 16

    key = jax.random.PRNGKey(0)
    k_in, k_par = jax.random.split(key)
    inputs = jax.random.normal(k_in, (B, CIN, L), jnp.float32)   # PyTorch NCL
    params = init_params(k_par, CIN, H, N_RES, R)

    # One-time weight pre-pack (outside the jitted forward).
    packed = pack_params(params)

    out = jax.jit(mel_decoder_forward)(inputs, packed)
    out = jax.block_until_ready(out)

    assert out.shape == (B, 1, 2 * L), out.shape
    assert bool(jnp.all(jnp.isfinite(out)))

    ref = jax.block_until_ready(ref_forward(inputs, params))
    assert jnp.allclose(out, ref, atol=2e-3, rtol=1e-2), (
        float(jnp.max(jnp.abs(out - ref))))

    print("KERNEL_OK")
</pallas_src>

<mosaic_0001>
module attributes {stable_mosaic.version = 11 : i64} {
  func.func @_mel_decoder_kernel(%arg0: i32, %arg1: memref<2x16x8xf32, #tpu.memory_space<vmem>>, %arg2: memref<3x8x32xf32, #tpu.memory_space<vmem>>, %arg3: memref<1x32xf32, #tpu.memory_space<vmem>>, %arg4: memref<2x3x32x16xf32, #tpu.memory_space<vmem>>, %arg5: memref<2x16x32xf32, #tpu.memory_space<vmem>>, %arg6: memref<4x32x32xf32, #tpu.memory_space<vmem>>, %arg7: memref<1x32xf32, #tpu.memory_space<vmem>>, %arg8: memref<1x32xf32, #tpu.memory_space<vmem>>, %arg9: memref<1x32xf32, #tpu.memory_space<vmem>>, %arg10: memref<3x32x16xf32, #tpu.memory_space<vmem>>, %arg11: memref<1x16xf32, #tpu.memory_space<vmem>>, %arg12: memref<1x16xf32, #tpu.memory_space<vmem>>, %arg13: memref<1x16xf32, #tpu.memory_space<vmem>>, %arg14: memref<3x16x1xf32, #tpu.memory_space<vmem>>, %arg15: memref<1x1xf32, #tpu.memory_space<vmem>>, %arg16: memref<2x16x2xf32, #tpu.memory_space<vmem>>, %arg17: memref<18x8xf32, #tpu.memory_space<vmem>>, %arg18: memref<18x32xf32, #tpu.memory_space<vmem>>, %arg19: memref<18x16xf32, #tpu.memory_space<vmem>>) attributes {dimension_semantics = [#tpu.dimension_semantics<arbitrary>], iteration_bounds = array<i64: 1>, scalar_prefetch = 0 : i64, scratch_operands = 3 : i64, tpu.core_type = #tpu.core_type<tc>, window_params = [{pipeline_mode = #tpu.pipeline_mode<synchronous>, transform_indices = @transform_0, window_bounds = array<i64: 2, 16, 8>}, {pipeline_mode = #tpu.pipeline_mode<synchronous>, transform_indices = @transform_1, window_bounds = array<i64: 3, 8, 32>}, {pipeline_mode = #tpu.pipeline_mode<synchronous>, transform_indices = @transform_2, window_bounds = array<i64: 1, 32>}, {pipeline_mode = #tpu.pipeline_mode<synchronous>, transform_indices = @transform_3, window_bounds = array<i64: 2, 3, 32, 16>}, {pipeline_mode = #tpu.pipeline_mode<synchronous>, transform_indices = @transform_4, window_bounds = array<i64: 2, 16, 32>}, {pipeline_mode = #tpu.pipeline_mode<synchronous>, transform_indices = @transform_5, window_bounds = array<i64: 4, 32, 32>}, {pipeline_mode = #tpu.pipeline_mode<synchronous>, transform_indices = @transform_6, window_bounds = array<i64: 1, 32>}, {pipeline_mode = #tpu.pipeline_mode<synchronous>, transform_indices = @transform_7, window_bounds = array<i64: 1, 32>}, {pipeline_mode = #tpu.pipeline_mode<synchronous>, transform_indices = @transform_8, window_bounds = array<i64: 1, 32>}, {pipeline_mode = #tpu.pipeline_mode<synchronous>, transform_indices = @transform_9, window_bounds = array<i64: 3, 32, 16>}, {pipeline_mode = #tpu.pipeline_mode<synchronous>, transform_indices = @transform_10, window_bounds = array<i64: 1, 16>}, {pipeline_mode = #tpu.pipeline_mode<synchronous>, transform_indices = @transform_11, window_bounds = array<i64: 1, 16>}, {pipeline_mode = #tpu.pipeline_mode<synchronous>, transform_indices = @transform_12, window_bounds = array<i64: 1, 16>}, {pipeline_mode = #tpu.pipeline_mode<synchronous>, transform_indices = @transform_13, window_bounds = array<i64: 3, 16, 1>}, {pipeline_mode = #tpu.pipeline_mode<synchronous>, transform_indices = @transform_14, window_bounds = array<i64: 1, 1>}, {pipeline_mode = #tpu.pipeline_mode<synchronous>, transform_indices = @transform_15, window_bounds = array<i64: 2, 16, 2>}]} {
    %cst = arith.constant 0.000000e+00 : f32
    %0 = vector.broadcast %cst : f32 to vector<18x8xf32>
    %c0 = arith.constant 0 : index
    %c0_0 = arith.constant 0 : index
    %1 = vector.load %arg17[%c0, %c0_0] : memref<18x8xf32, #tpu.memory_space<vmem>>, vector<18x8xf32>
    tpu.vector_store %arg17[%c0, %c0_0], %0 {strides = array<i32>} : memref<18x8xf32, #tpu.memory_space<vmem>>, vector<18x8xf32>,
    %cst_1 = arith.constant 0.000000e+00 : f32
    %2 = vector.broadcast %cst_1 : f32 to vector<18x32xf32>
    %c0_2 = arith.constant 0 : index
    %c0_3 = arith.constant 0 : index
    %3 = vector.load %arg18[%c0_2, %c0_3] : memref<18x32xf32, #tpu.memory_space<vmem>>, vector<18x32xf32>
    tpu.vector_store %arg18[%c0_2, %c0_3], %2 {strides = array<i32>} : memref<18x32xf32, #tpu.memory_space<vmem>>, vector<18x32xf32>,
    %cst_4 = arith.constant 0.000000e+00 : f32
    %4 = vector.broadcast %cst_4 : f32 to vector<18x16xf32>
    %c0_5 = arith.constant 0 : index
    %c0_6 = arith.constant 0 : index
    %5 = vector.load %arg19[%c0_5, %c0_6] : memref<18x16xf32, #tpu.memory_space<vmem>>, vector<18x16xf32>
    tpu.vector_store %arg19[%c0_5, %c0_6], %4 {strides = array<i32>} : memref<18x16xf32, #tpu.memory_space<vmem>>, vector<18x16xf32>,
    %c0_7 = arith.constant 0 : index
    %c0_8 = arith.constant 0 : index
    %6 = vector.load %arg3[%c0_7, %c0_8] : memref<1x32xf32, #tpu.memory_space<vmem>>, vector<1x32xf32>
    %c0_9 = arith.constant 0 : index
    %c0_10 = arith.constant 0 : index
    %7 = vector.load %arg7[%c0_9, %c0_10] : memref<1x32xf32, #tpu.memory_space<vmem>>, vector<1x32xf32>
    %c0_11 = arith.constant 0 : index
    %c0_12 = arith.constant 0 : index
    %c0_13 = arith.constant 0 : index
    %8 = vector.load %arg1[%c0_11, %c0_12, %c0_13] : memref<2x16x8xf32, #tpu.memory_space<vmem>>, vector<1x16x8xf32>
    %9 = vector.shape_cast %8 : vector<1x16x8xf32> to vector<16x8xf32>
    %c1 = arith.constant 1 : index
    %c0_14 = arith.constant 0 : index
    %10 = vector.load %arg17[%c1, %c0_14] : memref<18x8xf32, #tpu.memory_space<vmem>>, vector<16x8xf32>
    tpu.vector_store %arg17[%c1, %c0_14], %9 {strides = array<i32>} : memref<18x8xf32, #tpu.memory_space<vmem>>, vector<16x8xf32>,
    %c0_15 = arith.constant 0 : index
    %c0_16 = arith.constant 0 : index
    %11 = vector.load %arg17[%c0_15, %c0_16] : memref<18x8xf32, #tpu.memory_space<vmem>>, vector<18x8xf32>
    %12 = vector.extract_strided_slice %11 {offsets = [0, 0], sizes = [16, 8], strides = [1, 1]} : vector<18x8xf32> to vector<16x8xf32>
    %13 = vector.extract_strided_slice %11 {offsets = [2, 0], sizes = [16, 8], strides = [1, 1]} : vector<18x8xf32> to vector<16x8xf32>
    %c0_17 = arith.constant 0 : index
    %c0_18 = arith.constant 0 : index
    %c0_19 = arith.constant 0 : index
    %14 = vector.load %arg2[%c0_17, %c0_18, %c0_19] : memref<3x8x32xf32, #tpu.memory_space<vmem>>, vector<1x8x32xf32>
    %15 = vector.shape_cast %14 : vector<1x8x32xf32> to vector<8x32xf32>
    %cst_20 = arith.constant dense<0.000000e+00> : vector<16x32xf32>
    %16 = tpu.matmul %12, %15, %cst_20 {dimension_numbers = #tpu.dot_dimension_numbers<[1], [0], [0], [1], [0, 0, 1, 1], [], []>} : vector<16x8xf32>, vector<8x32xf32>, vector<16x32xf32> -> vector<16x32xf32>
    %c1_21 = arith.constant 1 : index
    %c0_22 = arith.constant 0 : index
    %c0_23 = arith.constant 0 : index
    %17 = vector.load %arg2[%c1_21, %c0_22, %c0_23] : memref<3x8x32xf32, #tpu.memory_space<vmem>>, vector<1x8x32xf32>
    %18 = vector.shape_cast %17 : vector<1x8x32xf32> to vector<8x32xf32>
    %cst_24 = arith.constant dense<0.000000e+00> : vector<16x32xf32>
    %19 = tpu.matmul %9, %18, %cst_24 {dimension_numbers = #tpu.dot_dimension_numbers<[1], [0], [0], [1], [0, 0, 1, 1], [], []>} : vector<16x8xf32>, vector<8x32xf32>, vector<16x32xf32> -> vector<16x32xf32>
    %20 = arith.addf %16, %19 : vector<16x32xf32>
    %c2 = arith.constant 2 : index
    %c0_25 = arith.constant 0 : index
    %c0_26 = arith.constant 0 : index
    %21 = vector.load %arg2[%c2, %c0_25, %c0_26] : memref<3x8x32xf32, #tpu.memory_space<vmem>>, vector<1x8x32xf32>
    %22 = vector.shape_cast %21 : vector<1x8x32xf32> to vector<8x32xf32>
    %cst_27 = arith.constant dense<0.000000e+00> : vector<16x32xf32>
    %23 = tpu.matmul %13, %22, %cst_27 {dimension_numbers = #tpu.dot_dimension_numbers<[1], [0], [0], [1], [0, 0, 1, 1], [], []>} : vector<16x8xf32>, vector<8x32xf32>, vector<16x32xf32> -> vector<16x32xf32>
    %24 = arith.addf %20, %23 : vector<16x32xf32>
    %25 = vector.broadcast %6 : vector<1x32xf32> to vector<16x32xf32>
    %26 = arith.addf %24, %25 : vector<16x32xf32>
    %27 = math.tanh %26 : vector<16x32xf32>
    %c1_28 = arith.constant 1 : index
    %c0_29 = arith.constant 0 : index
    %28 = vector.load %arg18[%c1_28, %c0_29] : memref<18x32xf32, #tpu.memory_space<vmem>>, vector<16x32xf32>
    tpu.vector_store %arg18[%c1_28, %c0_29], %27 {strides = array<i32>} : memref<18x32xf32, #tpu.memory_space<vmem>>, vector<16x32xf32>,
    %c0_30 = arith.constant 0 : index
    %c0_31 = arith.constant 0 : index
    %29 = vector.load %arg18[%c0_30, %c0_31] : memref<18x32xf32, #tpu.memory_space<vmem>>, vector<18x32xf32>
    %30 = vector.extract_strided_slice %29 {offsets = [0, 0], sizes = [16, 32], strides = [1, 1]} : vector<18x32xf32> to vector<16x32xf32>
    %31 = vector.extract_strided_slice %29 {offsets = [2, 0], sizes = [16, 32], strides = [1, 1]} : vector<18x32xf32> to vector<16x32xf32>
    %c0_32 = arith.constant 0 : index
    %c0_33 = arith.constant 0 : index
    %c0_34 = arith.constant 0 : index
    %c0_35 = arith.constant 0 : index
    %32 = vector.load %arg4[%c0_32, %c0_33, %c0_34, %c0_35] : memref<2x3x32x16xf32, #tpu.memory_space<vmem>>, vector<1x1x32x16xf32>
    %33 = vector.shape_cast %32 : vector<1x1x32x16xf32> to vector<32x16xf32>
    %cst_36 = arith.constant dense<0.000000e+00> : vector<16x16xf32>
    %34 = tpu.matmul %30, %33, %cst_36 {dimension_numbers = #tpu.dot_dimension_numbers<[1], [0], [0], [1], [0, 0, 1, 1], [], []>} : vector<16x32xf32>, vector<32x16xf32>, vector<16x16xf32> -> vector<16x16xf32>
    %c0_37 = arith.constant 0 : index
    %c1_38 = arith.constant 1 : index
    %c0_39 = arith.constant 0 : index
    %c0_40 = arith.constant 0 : index
    %35 = vector.load %arg4[%c0_37, %c1_38, %c0_39, %c0_40] : memref<2x3x32x16xf32, #tpu.memory_space<vmem>>, vector<1x1x32x16xf32>
    %36 = vector.shape_cast %35 : vector<1x1x32x16xf32> to vector<32x16xf32>
    %cst_41 = arith.constant dense<0.000000e+00> : vector<16x16xf32>
    %37 = tpu.matmul %27, %36, %cst_41 {dimension_numbers = #tpu.dot_dimension_numbers<[1], [0], [0], [1], [0, 0, 1, 1], [], []>} : vector<16x32xf32>, vector<32x16xf32>, vector<16x16xf32> -> vector<16x16xf32>
    %38 = arith.addf %34, %37 : vector<16x16xf32>
    %c0_42 = arith.constant 0 : index
    %c2_43 = arith.constant 2 : index
    %c0_44 = arith.constant 0 : index
    %c0_45 = arith.constant 0 : index
    %39 = vector.load %arg4[%c0_42, %c2_43, %c0_44, %c0_45] : memref<2x3x32x16xf32, #tpu.memory_space<vmem>>, vector<1x1x32x16xf32>
    %40 = vector.shape_cast %39 : vector<1x1x32x16xf32> to vector<32x16xf32>
    %cst_46 = arith.constant dense<0.000000e+00> : vector<16x16xf32>
    %41 = tpu.matmul %31, %40, %cst_46 {dimension_numbers = #tpu.dot_dimension_numbers<[1], [0], [0], [1], [0, 0, 1, 1], [], []>} : vector<16x32xf32>, vector<32x16xf32>, vector<16x16xf32> -> vector<16x16xf32>
    %42 = arith.addf %38, %41 : vector<16x16xf32>
    %43 = math.tanh %42 : vector<16x16xf32>
    %c0_47 = arith.constant 0 : index
    %c0_48 = arith.constant 0 : index
    %c0_49 = arith.constant 0 : index
    %44 = vector.load %arg5[%c0_47, %c0_48, %c0_49] : memref<2x16x32xf32, #tpu.memory_space<vmem>>, vector<1x16x32xf32>
    %45 = vector.shape_cast %44 : vector<1x16x32xf32> to vector<16x32xf32>
    %cst_50 = arith.constant dense<0.000000e+00> : vector<16x32xf32>
    %46 = tpu.matmul %43, %45, %cst_50 {dimension_numbers = #tpu.dot_dimension_numbers<[1], [0], [0], [1], [0, 0, 1, 1], [], []>} : vector<16x16xf32>, vector<16x32xf32>, vector<16x32xf32> -> vector<16x32xf32>
    %47 = arith.addf %26, %46 : vector<16x32xf32>
    %48 = math.tanh %47 : vector<16x32xf32>
    %c1_51 = arith.constant 1 : index
    %c0_52 = arith.constant 0 : index
    %49 = vector.load %arg18[%c1_51, %c0_52] : memref<18x32xf32, #tpu.memory_space<vmem>>, vector<16x32xf32>
    tpu.vector_store %arg18[%c1_51, %c0_52], %48 {strides = array<i32>} : memref<18x32xf32, #tpu.memory_space<vmem>>, vector<16x32xf32>,
    %c0_53 = arith.constant 0 : index
    %c0_54 = arith.constant 0 : index
    %50 = vector.load %arg18[%c0_53, %c0_54] : memref<18x32xf32, #tpu.memory_space<vmem>>, vector<18x32xf32>
    %51 = vector.extract_strided_slice %50 {offsets = [0, 0], sizes = [16, 32], strides = [1, 1]} : vector<18x32xf32> to vector<16x32xf32>
    %52 = vector.extract_strided_slice %50 {offsets = [2, 0], sizes = [16, 32], strides = [1, 1]} : vector<18x32xf32> to vector<16x32xf32>
    %c1_55 = arith.constant 1 : index
    %c0_56 = arith.constant 0 : index
    %c0_57 = arith.constant 0 : index
    %c0_58 = arith.constant 0 : index
    %53 = vector.load %arg4[%c1_55, %c0_56, %c0_57, %c0_58] : memref<2x3x32x16xf32, #tpu.memory_space<vmem>>, vector<1x1x32x16xf32>
    %54 = vector.shape_cast %53 : vector<1x1x32x16xf32> to vector<32x16xf32>
    %cst_59 = arith.constant dense<0.000000e+00> : vector<16x16xf32>
    %55 = tpu.matmul %51, %54, %cst_59 {dimension_numbers = #tpu.dot_dimension_numbers<[1], [0], [0], [1], [0, 0, 1, 1], [], []>} : vector<16x32xf32>, vector<32x16xf32>, vector<16x16xf32> -> vector<16x16xf32>
    %c1_60 = arith.constant 1 : index
    %c1_61 = arith.constant 1 : index
    %c0_62 = arith.constant 0 : index
    %c0_63 = arith.constant 0 : index
    %56 = vector.load %arg4[%c1_60, %c1_61, %c0_62, %c0_63] : memref<2x3x32x16xf32, #tpu.memory_space<vmem>>, vector<1x1x32x16xf32>
    %57 = vector.shape_cast %56 : vector<1x1x32x16xf32> to vector<32x16xf32>
    %cst_64 = arith.constant dense<0.000000e+00> : vector<16x16xf32>
    %58 = tpu.matmul %48, %57, %cst_64 {dimension_numbers = #tpu.dot_dimension_numbers<[1], [0], [0], [1], [0, 0, 1, 1], [], []>} : vector<16x32xf32>, vector<32x16xf32>, vector<16x16xf32> -> vector<16x16xf32>
    %59 = arith.addf %55, %58 : vector<16x16xf32>
    %c1_65 = arith.constant 1 : index
    %c2_66 = arith.constant 2 : index
    %c0_67 = arith.constant 0 : index
    %c0_68 = arith.constant 0 : index
    %60 = vector.load %arg4[%c1_65, %c2_66, %c0_67, %c0_68] : memref<2x3x32x16xf32, #tpu.memory_space<vmem>>, vector<1x1x32x16xf32>
    %61 = vector.shape_cast %60 : vector<1x1x32x16xf32> to vector<32x16xf32>
    %cst_69 = arith.constant dense<0.000000e+00> : vector<16x16xf32>
    %62 = tpu.matmul %52, %61, %cst_69 {dimension_numbers = #tpu.dot_dimension_numbers<[1], [0], [0], [1], [0, 0, 1, 1], [], []>} : vector<16x32xf32>, vector<32x16xf32>, vector<16x16xf32> -> vector<16x16xf32>
    %63 = arith.addf %59, %62 : vector<16x16xf32>
    %64 = math.tanh %63 : vector<16x16xf32>
    %c1_70 = arith.constant 1 : index
    %c0_71 = arith.constant 0 : index
    %c0_72 = arith.constant 0 : index
    %65 = vector.load %arg5[%c1_70, %c0_71, %c0_72] : memref<2x16x32xf32, #tpu.memory_space<vmem>>, vector<1x16x32xf32>
    %66 = vector.shape_cast %65 : vector<1x16x32xf32> to vector<16x32xf32>
    %cst_73 = arith.constant dense<0.000000e+00> : vector<16x32xf32>
    %67 = tpu.matmul %64, %66, %cst_73 {dimension_numbers = #tpu.dot_dimension_numbers<[1], [0], [0], [1], [0, 0, 1, 1], [], []>} : vector<16x16xf32>, vector<16x32xf32>, vector<16x32xf32> -> vector<16x32xf32>
    %68 = arith.addf %47, %67 : vector<16x32xf32>
    %69 = math.tanh %68 : vector<16x32xf32>
    %c1_74 = arith.constant 1 : index
    %c0_75 = arith.constant 0 : index
    %70 = vector.load %arg18[%c1_74, %c0_75] : memref<18x32xf32, #tpu.memory_space<vmem>>, vector<16x32xf32>
    tpu.vector_store %arg18[%c1_74, %c0_75], %69 {strides = array<i32>} : memref<18x32xf32, #tpu.memory_space<vmem>>, vector<16x32xf32>,
    %c0_76 = arith.constant 0 : index
    %c0_77 = arith.constant 0 : index
    %71 = vector.load %arg18[%c0_76, %c0_77] : memref<18x32xf32, #tpu.memory_space<vmem>>, vector<18x32xf32>
    %72 = vector.extract_strided_slice %71 {offsets = [0, 0], sizes = [16, 32], strides = [1, 1]} : vector<18x32xf32> to vector<16x32xf32>
    %73 = vector.extract_strided_slice %71 {offsets = [2, 0], sizes = [16, 32], strides = [1, 1]} : vector<18x32xf32> to vector<16x32xf32>
    %c1_78 = arith.constant 1 : index
    %c0_79 = arith.constant 0 : index
    %c0_80 = arith.constant 0 : index
    %74 = vector.load %arg6[%c1_78, %c0_79, %c0_80] : memref<4x32x32xf32, #tpu.memory_space<vmem>>, vector<1x32x32xf32>
    %75 = vector.shape_cast %74 : vector<1x32x32xf32> to vector<32x32xf32>
    %cst_81 = arith.constant dense<0.000000e+00> : vector<16x32xf32>
    %76 = tpu.matmul %69, %75, %cst_81 {dimension_numbers = #tpu.dot_dimension_numbers<[1], [0], [0], [1], [0, 0, 1, 1], [], []>} : vector<16x32xf32>, vector<32x32xf32>, vector<16x32xf32> -> vector<16x32xf32>
    %c3 = arith.constant 3 : index
    %c0_82 = arith.constant 0 : index
    %c0_83 = arith.constant 0 : index
    %77 = vector.load %arg6[%c3, %c0_82, %c0_83] : memref<4x32x32xf32, #tpu.memory_space<vmem>>, vector<1x32x32xf32>
    %78 = vector.shape_cast %77 : vector<1x32x32xf32> to vector<32x32xf32>
    %cst_84 = arith.constant dense<0.000000e+00> : vector<16x32xf32>
    %79 = tpu.matmul %72, %78, %cst_84 {dimension_numbers = #tpu.dot_dimension_numbers<[1], [0], [0], [1], [0, 0, 1, 1], [], []>} : vector<16x32xf32>, vector<32x32xf32>, vector<16x32xf32> -> vector<16x32xf32>
    %80 = arith.addf %76, %79 : vector<16x32xf32>
    %81 = vector.broadcast %7 : vector<1x32xf32> to vector<16x32xf32>
    %82 = arith.addf %80, %81 : vector<16x32xf32>
    %c2_85 = arith.constant 2 : index
    %c0_86 = arith.constant 0 : index
    %c0_87 = arith.constant 0 : index
    %83 = vector.load %arg6[%c2_85, %c0_86, %c0_87] : memref<4x32x32xf32, #tpu.memory_space<vmem>>, vector<1x32x32xf32>
    %84 = vector.shape_cast %83 : vector<1x32x32xf32> to vector<32x32xf32>
    %cst_88 = arith.constant dense<0.000000e+00> : vector<16x32xf32>
    %85 = tpu.matmul %69, %84, %cst_88 {dimension_numbers = #tpu.dot_dimension_numbers<[1], [0], [0], [1], [0, 0, 1, 1], [], []>} : vector<16x32xf32>, vector<32x32xf32>, vector<16x32xf32> -> vector<16x32xf32>
    %c0_89 = arith.constant 0 : index
    %c0_90 = arith.constant 0 : index
    %c0_91 = arith.constant 0 : index
    %86 = vector.load %arg6[%c0_89, %c0_90, %c0_91] : memref<4x32x32xf32, #tpu.memory_space<vmem>>, vector<1x32x32xf32>
    %87 = vector.shape_cast %86 : vector<1x32x32xf32> to vector<32x32xf32>
    %cst_92 = arith.constant dense<0.000000e+00> : vector<16x32xf32>
    %88 = tpu.matmul %73, %87, %cst_92 {dimension_numbers = #tpu.dot_dimension_numbers<[1], [0], [0], [1], [0, 0, 1, 1], [], []>} : vector<16x32xf32>, vector<32x32xf32>, vector<16x32xf32> -> vector<16x32xf32>
    %89 = arith.addf %85, %88 : vector<16x32xf32>
    %90 = vector.broadcast %7 : vector<1x32xf32> to vector<16x32xf32>
    %91 = arith.addf %89, %90 : vector<16x32xf32>
    %c1_93 = arith.constant 1 : index
    %c0_94 = arith.constant 0 : index
    %c0_95 = arith.constant 0 : index
    %92 = vector.load %arg1[%c1_93, %c0_94, %c0_95] : memref<2x16x8xf32, #tpu.memory_space<vmem>>, vector<1x16x8xf32>
    %93 = vector.shape_cast %92 : vector<1x16x8xf32> to vector<16x8xf32>
    %c1_96 = arith.constant 1 : index
    %c0_97 = arith.constant 0 : index
    %94 = vector.load %arg17[%c1_96, %c0_97] : memref<18x8xf32, #tpu.memory_space<vmem>>, vector<16x8xf32>
    tpu.vector_store %arg17[%c1_96, %c0_97], %93 {strides = array<i32>} : memref<18x8xf32, #tpu.memory_space<vmem>>, vector<16x8xf32>,
    %c0_98 = arith.constant 0 : index
    %c0_99 = arith.constant 0 : index
    %95 = vector.load %arg17[%c0_98, %c0_99] : memref<18x8xf32, #tpu.memory_space<vmem>>, vector<18x8xf32>
    %96 = vector.extract_strided_slice %95 {offsets = [0, 0], sizes = [16, 8], strides = [1, 1]} : vector<18x8xf32> to vector<16x8xf32>
    %97 = vector.extract_strided_slice %95 {offsets = [2, 0], sizes = [16, 8], strides = [1, 1]} : vector<18x8xf32> to vector<16x8xf32>
    %c0_100 = arith.constant 0 : index
    %c0_101 = arith.constant 0 : index
    %c0_102 = arith.constant 0 : index
    %98 = vector.load %arg2[%c0_100, %c0_101, %c0_102] : memref<3x8x32xf32, #tpu.memory_space<vmem>>, vector<1x8x32xf32>
    %99 = vector.shape_cast %98 : vector<1x8x32xf32> to vector<8x32xf32>
    %cst_103 = arith.constant dense<0.000000e+00> : vector<16x32xf32>
    %100 = tpu.matmul %96, %99, %cst_103 {dimension_numbers = #tpu.dot_dimension_numbers<[1], [0], [0], [1], [0, 0, 1, 1], [], []>} : vector<16x8xf32>, vector<8x32xf32>, vector<16x32xf32> -> vector<16x32xf32>
    %c1_104 = arith.constant 1 : index
    %c0_105 = arith.constant 0 : index
    %c0_106 = arith.constant 0 : index
    %101 = vector.load %arg2[%c1_104, %c0_105, %c0_106] : memref<3x8x32xf32, #tpu.memory_space<vmem>>, vector<1x8x32xf32>
    %102 = vector.shape_cast %101 : vector<1x8x32xf32> to vector<8x32xf32>
    %cst_107 = arith.constant dense<0.000000e+00> : vector<16x32xf32>
    %103 = tpu.matmul %93, %102, %cst_107 {dimension_numbers = #tpu.dot_dimension_numbers<[1], [0], [0], [1], [0, 0, 1, 1], [], []>} : vector<16x8xf32>, vector<8x32xf32>, vector<16x32xf32> -> vector<16x32xf32>
    %104 = arith.addf %100, %103 : vector<16x32xf32>
    %c2_108 = arith.constant 2 : index
    %c0_109 = arith.constant 0 : index
    %c0_110 = arith.constant 0 : index
    %105 = vector.load %arg2[%c2_108, %c0_109, %c0_110] : memref<3x8x32xf32, #tpu.memory_space<vmem>>, vector<1x8x32xf32>
    %106 = vector.shape_cast %105 : vector<1x8x32xf32> to vector<8x32xf32>
    %cst_111 = arith.constant dense<0.000000e+00> : vector<16x32xf32>
    %107 = tpu.matmul %97, %106, %cst_111 {dimension_numbers = #tpu.dot_dimension_numbers<[1], [0], [0], [1], [0, 0, 1, 1], [], []>} : vector<16x8xf32>, vector<8x32xf32>, vector<16x32xf32> -> vector<16x32xf32>
    %108 = arith.addf %104, %107 : vector<16x32xf32>
    %109 = vector.broadcast %6 : vector<1x32xf32> to vector<16x32xf32>
    %110 = arith.addf %108, %109 : vector<16x32xf32>
    %111 = math.tanh %110 : vector<16x32xf32>
    %c1_112 = arith.constant 1 : index
    %c0_113 = arith.constant 0 : index
    %112 = vector.load %arg18[%c1_112, %c0_113] : memref<18x32xf32, #tpu.memory_space<vmem>>, vector<16x32xf32>
    tpu.vector_store %arg18[%c1_112, %c0_113], %111 {strides = array<i32>} : memref<18x32xf32, #tpu.memory_space<vmem>>, vector<16x32xf32>,
    %c0_114 = arith.constant 0 : index
    %c0_115 = arith.constant 0 : index
    %113 = vector.load %arg18[%c0_114, %c0_115] : memref<18x32xf32, #tpu.memory_space<vmem>>, vector<18x32xf32>
    %114 = vector.extract_strided_slice %113 {offsets = [0, 0], sizes = [16, 32], strides = [1, 1]} : vector<18x32xf32> to vector<16x32xf32>
    %115 = vector.extract_strided_slice %113 {offsets = [2, 0], sizes = [16, 32], strides = [1, 1]} : vector<18x32xf32> to vector<16x32xf32>
    %c0_116 = arith.constant 0 : index
    %c0_117 = arith.constant 0 : index
    %c0_118 = arith.constant 0 : index
    %c0_119 = arith.constant 0 : index
    %116 = vector.load %arg4[%c0_116, %c0_117, %c0_118, %c0_119] : memref<2x3x32x16xf32, #tpu.memory_space<vmem>>, vector<1x1x32x16xf32>
    %117 = vector.shape_cast %116 : vector<1x1x32x16xf32> to vector<32x16xf32>
    %cst_120 = arith.constant dense<0.000000e+00> : vector<16x16xf32>
    %118 = tpu.matmul %114, %117, %cst_120 {dimension_numbers = #tpu.dot_dimension_numbers<[1], [0], [0], [1], [0, 0, 1, 1], [], []>} : vector<16x32xf32>, vector<32x16xf32>, vector<16x16xf32> -> vector<16x16xf32>
    %c0_121 = arith.constant 0 : index
    %c1_122 = arith.constant 1 : index
    %c0_123 = arith.constant 0 : index
    %c0_124 = arith.constant 0 : index
    %119 = vector.load %arg4[%c0_121, %c1_122, %c0_123, %c0_124] : memref<2x3x32x16xf32, #tpu.memory_space<vmem>>, vector<1x1x32x16xf32>
    %120 = vector.shape_cast %119 : vector<1x1x32x16xf32> to vector<32x16xf32>
    %cst_125 = arith.constant dense<0.000000e+00> : vector<16x16xf32>
    %121 = tpu.matmul %111, %120, %cst_125 {dimension_numbers = #tpu.dot_dimension_numbers<[1], [0], [0], [1], [0, 0, 1, 1], [], []>} : vector<16x32xf32>, vector<32x16xf32>, vector<16x16xf32> -> vector<16x16xf32>
    %122 = arith.addf %118, %121 : vector<16x16xf32>
    %c0_126 = arith.constant 0 : index
    %c2_127 = arith.constant 2 : index
    %c0_128 = arith.constant 0 : index
    %c0_129 = arith.constant 0 : index
    %123 = vector.load %arg4[%c0_126, %c2_127, %c0_128, %c0_129] : memref<2x3x32x16xf32, #tpu.memory_space<vmem>>, vector<1x1x32x16xf32>
    %124 = vector.shape_cast %123 : vector<1x1x32x16xf32> to vector<32x16xf32>
    %cst_130 = arith.constant dense<0.000000e+00> : vector<16x16xf32>
    %125 = tpu.matmul %115, %124, %cst_130 {dimension_numbers = #tpu.dot_dimension_numbers<[1], [0], [0], [1], [0, 0, 1, 1], [], []>} : vector<16x32xf32>, vector<32x16xf32>, vector<16x16xf32> -> vector<16x16xf32>
    %126 = arith.addf %122, %125 : vector<16x16xf32>
    %127 = math.tanh %126 : vector<16x16xf32>
    %c0_131 = arith.constant 0 : index
    %c0_132 = arith.constant 0 : index
    %c0_133 = arith.constant 0 : index
    %128 = vector.load %arg5[%c0_131, %c0_132, %c0_133] : memref<2x16x32xf32, #tpu.memory_space<vmem>>, vector<1x16x32xf32>
    %129 = vector.shape_cast %128 : vector<1x16x32xf32> to vector<16x32xf32>
    %cst_134 = arith.constant dense<0.000000e+00> : vector<16x32xf32>
    %130 = tpu.matmul %127, %129, %cst_134 {dimension_numbers = #tpu.dot_dimension_numbers<[1], [0], [0], [1], [0, 0, 1, 1], [], []>} : vector<16x16xf32>, vector<16x32xf32>, vector<16x32xf32> -> vector<16x32xf32>
    %131 = arith.addf %110, %130 : vector<16x32xf32>
    %132 = math.tanh %131 : vector<16x32xf32>
    %c1_135 = arith.constant 1 : index
    %c0_136 = arith.constant 0 : index
    %133 = vector.load %arg18[%c1_135, %c0_136] : memref<18x32xf32, #tpu.memory_space<vmem>>, vector<16x32xf32>
    tpu.vector_store %arg18[%c1_135, %c0_136], %132 {strides = array<i32>} : memref<18x32xf32, #tpu.memory_space<vmem>>, vector<16x32xf32>,
    %c0_137 = arith.constant 0 : index
    %c0_138 = arith.constant 0 : index
    %134 = vector.load %arg18[%c0_137, %c0_138] : memref<18x32xf32, #tpu.memory_space<vmem>>, vector<18x32xf32>
    %135 = vector.extract_strided_slice %134 {offsets = [0, 0], sizes = [16, 32], strides = [1, 1]} : vector<18x32xf32> to vector<16x32xf32>
    %136 = vector.extract_strided_slice %134 {offsets = [2, 0], sizes = [16, 32], strides = [1, 1]} : vector<18x32xf32> to vector<16x32xf32>
    %c1_139 = arith.constant 1 : index
    %c0_140 = arith.constant 0 : index
    %c0_141 = arith.constant 0 : index
    %c0_142 = arith.constant 0 : index
    %137 = vector.load %arg4[%c1_139, %c0_140, %c0_141, %c0_142] : memref<2x3x32x16xf32, #tpu.memory_space<vmem>>, vector<1x1x32x16xf32>
    %138 = vector.shape_cast %137 : vector<1x1x32x16xf32> to vector<32x16xf32>
    %cst_143 = arith.constant dense<0.000000e+00> : vector<16x16xf32>
    %139 = tpu.matmul %135, %138, %cst_143 {dimension_numbers = #tpu.dot_dimension_numbers<[1], [0], [0], [1], [0, 0, 1, 1], [], []>} : vector<16x32xf32>, vector<32x16xf32>, vector<16x16xf32> -> vector<16x16xf32>
    %c1_144 = arith.constant 1 : index
    %c1_145 = arith.constant 1 : index
    %c0_146 = arith.constant 0 : index
    %c0_147 = arith.constant 0 : index
    %140 = vector.load %arg4[%c1_144, %c1_145, %c0_146, %c0_147] : memref<2x3x32x16xf32, #tpu.memory_space<vmem>>, vector<1x1x32x16xf32>
    %141 = vector.shape_cast %140 : vector<1x1x32x16xf32> to vector<32x16xf32>
    %cst_148 = arith.constant dense<0.000000e+00> : vector<16x16xf32>
    %142 = tpu.matmul %132, %141, %cst_148 {dimension_numbers = #tpu.dot_dimension_numbers<[1], [0], [0], [1], [0, 0, 1, 1], [], []>} : vector<16x32xf32>, vector<32x16xf32>, vector<16x16xf32> -> vector<16x16xf32>
    %143 = arith.addf %139, %142 : vector<16x16xf32>
    %c1_149 = arith.constant 1 : index
    %c2_150 = arith.constant 2 : index
    %c0_151 = arith.constant 0 : index
    %c0_152 = arith.constant 0 : index
    %144 = vector.load %arg4[%c1_149, %c2_150, %c0_151, %c0_152] : memref<2x3x32x16xf32, #tpu.memory_space<vmem>>, vector<1x1x32x16xf32>
    %145 = vector.shape_cast %144 : vector<1x1x32x16xf32> to vector<32x16xf32>
    %cst_153 = arith.constant dense<0.000000e+00> : vector<16x16xf32>
    %146 = tpu.matmul %136, %145, %cst_153 {dimension_numbers = #tpu.dot_dimension_numbers<[1], [0], [0], [1], [0, 0, 1, 1], [], []>} : vector<16x32xf32>, vector<32x16xf32>, vector<16x16xf32> -> vector<16x16xf32>
    %147 = arith.addf %143, %146 : vector<16x16xf32>
    %148 = math.tanh %147 : vector<16x16xf32>
    %c1_154 = arith.constant 1 : index
    %c0_155 = arith.constant 0 : index
    %c0_156 = arith.constant 0 : index
    %149 = vector.load %arg5[%c1_154, %c0_155, %c0_156] : memref<2x16x32xf32, #tpu.memory_space<vmem>>, vector<1x16x32xf32>
    %150 = vector.shape_cast %149 : vector<1x16x32xf32> to vector<16x32xf32>
    %cst_157 = arith.constant dense<0.000000e+00> : vector<16x32xf32>
    %151 = tpu.matmul %148, %150, %cst_157 {dimension_numbers = #tpu.dot_dimension_numbers<[1], [0], [0], [1], [0, 0, 1, 1], [], []>} : vector<16x16xf32>, vector<16x32xf32>, vector<16x32xf32> -> vector<16x32xf32>
    %152 = arith.addf %131, %151 : vector<16x32xf32>
    %153 = math.tanh %152 : vector<16x32xf32>
    %c1_158 = arith.constant 1 : index
    %c0_159 = arith.constant 0 : index
    %154 = vector.load %arg18[%c1_158, %c0_159] : memref<18x32xf32, #tpu.memory_space<vmem>>, vector<16x32xf32>
    tpu.vector_store %arg18[%c1_158, %c0_159], %153 {strides = array<i32>} : memref<18x32xf32, #tpu.memory_space<vmem>>, vector<16x32xf32>,
    %c0_160 = arith.constant 0 : index
    %c0_161 = arith.constant 0 : index
    %155 = vector.load %arg18[%c0_160, %c0_161] : memref<18x32xf32, #tpu.memory_space<vmem>>, vector<18x32xf32>
    %156 = vector.extract_strided_slice %155 {offsets = [0, 0], sizes = [16, 32], strides = [1, 1]} : vector<18x32xf32> to vector<16x32xf32>
    %157 = vector.extract_strided_slice %155 {offsets = [2, 0], sizes = [16, 32], strides = [1, 1]} : vector<18x32xf32> to vector<16x32xf32>
    %c1_162 = arith.constant 1 : index
    %c0_163 = arith.constant 0 : index
    %c0_164 = arith.constant 0 : index
    %158 = vector.load %arg6[%c1_162, %c0_163, %c0_164] : memref<4x32x32xf32, #tpu.memory_space<vmem>>, vector<1x32x32xf32>
    %159 = vector.shape_cast %158 : vector<1x32x32xf32> to vector<32x32xf32>
    %cst_165 = arith.constant dense<0.000000e+00> : vector<16x32xf32>
    %160 = tpu.matmul %153, %159, %cst_165 {dimension_numbers = #tpu.dot_dimension_numbers<[1], [0], [0], [1], [0, 0, 1, 1], [], []>} : vector<16x32xf32>, vector<32x32xf32>, vector<16x32xf32> -> vector<16x32xf32>
    %c3_166 = arith.constant 3 : index
    %c0_167 = arith.constant 0 : index
    %c0_168 = arith.constant 0 : index
    %161 = vector.load %arg6[%c3_166, %c0_167, %c0_168] : memref<4x32x32xf32, #tpu.memory_space<vmem>>, vector<1x32x32xf32>
    %162 = vector.shape_cast %161 : vector<1x32x32xf32> to vector<32x32xf32>
    %cst_169 = arith.constant dense<0.000000e+00> : vector<16x32xf32>
    %163 = tpu.matmul %156, %162, %cst_169 {dimension_numbers = #tpu.dot_dimension_numbers<[1], [0], [0], [1], [0, 0, 1, 1], [], []>} : vector<16x32xf32>, vector<32x32xf32>, vector<16x32xf32> -> vector<16x32xf32>
    %164 = arith.addf %160, %163 : vector<16x32xf32>
    %165 = vector.broadcast %7 : vector<1x32xf32> to vector<16x32xf32>
    %166 = arith.addf %164, %165 : vector<16x32xf32>
    %c2_170 = arith.constant 2 : index
    %c0_171 = arith.constant 0 : index
    %c0_172 = arith.constant 0 : index
    %167 = vector.load %arg6[%c2_170, %c0_171, %c0_172] : memref<4x32x32xf32, #tpu.memory_space<vmem>>, vector<1x32x32xf32>
    %168 = vector.shape_cast %167 : vector<1x32x32xf32> to vector<32x32xf32>
    %cst_173 = arith.constant dense<0.000000e+00> : vector<16x32xf32>
    %169 = tpu.matmul %153, %168, %cst_173 {dimension_numbers = #tpu.dot_dimension_numbers<[1], [0], [0], [1], [0, 0, 1, 1], [], []>} : vector<16x32xf32>, vector<32x32xf32>, vector<16x32xf32> -> vector<16x32xf32>
    %c0_174 = arith.constant 0 : index
    %c0_175 = arith.constant 0 : index
    %c0_176 = arith.constant 0 : index
    %170 = vector.load %arg6[%c0_174, %c0_175, %c0_176] : memref<4x32x32xf32, #tpu.memory_space<vmem>>, vector<1x32x32xf32>
    %171 = vector.shape_cast %170 : vector<1x32x32xf32> to vector<32x32xf32>
    %cst_177 = arith.constant dense<0.000000e+00> : vector<16x32xf32>
    %172 = tpu.matmul %157, %171, %cst_177 {dimension_numbers = #tpu.dot_dimension_numbers<[1], [0], [0], [1], [0, 0, 1, 1], [], []>} : vector<16x32xf32>, vector<32x32xf32>, vector<16x32xf32> -> vector<16x32xf32>
    %173 = arith.addf %169, %172 : vector<16x32xf32>
    %174 = vector.broadcast %7 : vector<1x32xf32> to vector<16x32xf32>
    %175 = arith.addf %173, %174 : vector<16x32xf32>
    %cst_178 = arith.constant dense<0.000000e+00> : vector<32xf32>
    %176 = vector.multi_reduction <add>, %82, %cst_178 [0] : vector<16x32xf32> to vector<32xf32>
    %177 = vector.shape_cast %176 : vector<32xf32> to vector<1x32xf32>
    %cst_179 = arith.constant 0.000000e+00 : f32
    %178 = vector.broadcast %cst_179 : f32 to vector<1x32xf32>
    %179 = arith.addf %178, %177 : vector<1x32xf32>
    %cst_180 = arith.constant dense<0.000000e+00> : vector<32xf32>
    %180 = vector.multi_reduction <add>, %166, %cst_180 [0] : vector<16x32xf32> to vector<32xf32>
    %181 = vector.shape_cast %180 : vector<32xf32> to vector<1x32xf32>
    %182 = arith.addf %179, %181 : vector<1x32xf32>
    %cst_181 = arith.constant dense<0.000000e+00> : vector<32xf32>
    %183 = vector.multi_reduction <add>, %91, %cst_181 [0] : vector<16x32xf32> to vector<32xf32>
    %184 = vector.shape_cast %183 : vector<32xf32> to vector<1x32xf32>
    %185 = arith.addf %182, %184 : vector<1x32xf32>
    %cst_182 = arith.constant dense<0.000000e+00> : vector<32xf32>
    %186 = vector.multi_reduction <add>, %175, %cst_182 [0] : vector<16x32xf32> to vector<32xf32>
    %187 = vector.shape_cast %186 : vector<32xf32> to vector<1x32xf32>
    %188 = arith.addf %185, %187 : vector<1x32xf32>
    %cst_183 = arith.constant 6.400000e+01 : f32
    %189 = vector.broadcast %cst_183 : f32 to vector<1x32xf32>
    %190 = arith.divf %188, %189 : vector<1x32xf32>
    %191 = vector.broadcast %190 : vector<1x32xf32> to vector<16x32xf32>
    %192 = arith.subf %82, %191 : vector<16x32xf32>
    %193 = arith.mulf %192, %192 : vector<16x32xf32>
    %cst_184 = arith.constant dense<0.000000e+00> : vector<32xf32>
    %194 = vector.multi_reduction <add>, %193, %cst_184 [0] : vector<16x32xf32> to vector<32xf32>
    %195 = vector.shape_cast %194 : vector<32xf32> to vector<1x32xf32>
    %cst_185 = arith.constant 0.000000e+00 : f32
    %196 = vector.broadcast %cst_185 : f32 to vector<1x32xf32>
    %197 = arith.addf %196, %195 : vector<1x32xf32>
    %198 = vector.broadcast %190 : vector<1x32xf32> to vector<16x32xf32>
    %199 = arith.subf %166, %198 : vector<16x32xf32>
    %200 = arith.mulf %199, %199 : vector<16x32xf32>
    %cst_186 = arith.constant dense<0.000000e+00> : vector<32xf32>
    %201 = vector.multi_reduction <add>, %200, %cst_186 [0] : vector<16x32xf32> to vector<32xf32>
    %202 = vector.shape_cast %201 : vector<32xf32> to vector<1x32xf32>
    %203 = arith.addf %197, %202 : vector<1x32xf32>
    %204 = vector.broadcast %190 : vector<1x32xf32> to vector<16x32xf32>
    %205 = arith.subf %91, %204 : vector<16x32xf32>
    %206 = arith.mulf %205, %205 : vector<16x32xf32>
    %cst_187 = arith.constant dense<0.000000e+00> : vector<32xf32>
    %207 = vector.multi_reduction <add>, %206, %cst_187 [0] : vector<16x32xf32> to vector<32xf32>
    %208 = vector.shape_cast %207 : vector<32xf32> to vector<1x32xf32>
    %209 = arith.addf %203, %208 : vector<1x32xf32>
    %210 = vector.broadcast %190 : vector<1x32xf32> to vector<16x32xf32>
    %211 = arith.subf %175, %210 : vector<16x32xf32>
    %212 = arith.mulf %211, %211 : vector<16x32xf32>
    %cst_188 = arith.constant dense<0.000000e+00> : vector<32xf32>
    %213 = vector.multi_reduction <add>, %212, %cst_188 [0] : vector<16x32xf32> to vector<32xf32>
    %214 = vector.shape_cast %213 : vector<32xf32> to vector<1x32xf32>
    %215 = arith.addf %209, %214 : vector<1x32xf32>
    %cst_189 = arith.constant 6.400000e+01 : f32
    %216 = vector.broadcast %cst_189 : f32 to vector<1x32xf32>
    %217 = arith.divf %215, %216 : vector<1x32xf32>
    %c0_190 = arith.constant 0 : index
    %c0_191 = arith.constant 0 : index
    %218 = vector.load %arg8[%c0_190, %c0_191] : memref<1x32xf32, #tpu.memory_space<vmem>>, vector<1x32xf32>
    %cst_192 = arith.constant 9.99999974E-6 : f32
    %219 = vector.broadcast %cst_192 : f32 to vector<1x32xf32>
    %220 = arith.addf %217, %219 : vector<1x32xf32>
    %221 = math.rsqrt %220 : vector<1x32xf32>
    %222 = arith.mulf %218, %221 : vector<1x32xf32>
    %c0_193 = arith.constant 0 : index
    %c0_194 = arith.constant 0 : index
    %223 = vector.load %arg9[%c0_193, %c0_194] : memref<1x32xf32, #tpu.memory_space<vmem>>, vector<1x32xf32>
    %224 = arith.mulf %190, %222 : vector<1x32xf32>
    %225 = arith.subf %223, %224 : vector<1x32xf32>
    %c0_195 = arith.constant 0 : index
    %c0_196 = arith.constant 0 : index
    %226 = vector.load %arg11[%c0_195, %c0_196] : memref<1x16xf32, #tpu.memory_space<vmem>>, vector<1x16xf32>
    %227 = vector.broadcast %222 : vector<1x32xf32> to vector<16x32xf32>
    %228 = arith.mulf %82, %227 : vector<16x32xf32>
    %229 = vector.broadcast %225 : vector<1x32xf32> to vector<16x32xf32>
    %230 = arith.addf %228, %229 : vector<16x32xf32>
    %231 = math.tanh %230 : vector<16x32xf32>
    %232 = vector.broadcast %222 : vector<1x32xf32> to vector<16x32xf32>
    %233 = arith.mulf %91, %232 : vector<16x32xf32>
    %234 = vector.broadcast %225 : vector<1x32xf32> to vector<16x32xf32>
    %235 = arith.addf %233, %234 : vector<16x32xf32>
    %236 = math.tanh %235 : vector<16x32xf32>
    %c1_197 = arith.constant 1 : index
    %c0_198 = arith.constant 0 : index
    %237 = vector.load %arg18[%c1_197, %c0_198] : memref<18x32xf32, #tpu.memory_space<vmem>>, vector<16x32xf32>
    tpu.vector_store %arg18[%c1_197, %c0_198], %236 {strides = array<i32>} : memref<18x32xf32, #tpu.memory_space<vmem>>, vector<16x32xf32>,
    %c0_199 = arith.constant 0 : index
    %c0_200 = arith.constant 0 : index
    %238 = vector.load %arg18[%c0_199, %c0_200] : memref<18x32xf32, #tpu.memory_space<vmem>>, vector<18x32xf32>
    %239 = vector.extract_strided_slice %238 {offsets = [0, 0], sizes = [16, 32], strides = [1, 1]} : vector<18x32xf32> to vector<16x32xf32>
    %c1_201 = arith.constant 1 : index
    %c0_202 = arith.constant 0 : index
    %240 = vector.load %arg18[%c1_201, %c0_202] : memref<18x32xf32, #tpu.memory_space<vmem>>, vector<16x32xf32>
    tpu.vector_store %arg18[%c1_201, %c0_202], %231 {strides = array<i32>} : memref<18x32xf32, #tpu.memory_space<vmem>>, vector<16x32xf32>,
    %c0_203 = arith.constant 0 : index
    %c0_204 = arith.constant 0 : index
    %241 = vector.load %arg18[%c0_203, %c0_204] : memref<18x32xf32, #tpu.memory_space<vmem>>, vector<18x32xf32>
    %242 = vector.extract_strided_slice %241 {offsets = [2, 0], sizes = [16, 32], strides = [1, 1]} : vector<18x32xf32> to vector<16x32xf32>
    %c0_205 = arith.constant 0 : index
    %c0_206 = arith.constant 0 : index
    %c0_207 = arith.constant 0 : index
    %243 = vector.load %arg10[%c0_205, %c0_206, %c0_207] : memref<3x32x16xf32, #tpu.memory_space<vmem>>, vector<1x32x16xf32>
    %244 = vector.shape_cast %243 : vector<1x32x16xf32> to vector<32x16xf32>
    %cst_208 = arith.constant dense<0.000000e+00> : vector<16x16xf32>
    %245 = tpu.matmul %239, %244, %cst_208 {dimension_numbers = #tpu.dot_dimension_numbers<[1], [0], [0], [1], [0, 0, 1, 1], [], []>} : vector<16x32xf32>, vector<32x16xf32>, vector<16x16xf32> -> vector<16x16xf32>
    %c1_209 = arith.constant 1 : index
    %c0_210 = arith.constant 0 : index
    %c0_211 = arith.constant 0 : index
    %246 = vector.load %arg10[%c1_209, %c0_210, %c0_211] : memref<3x32x16xf32, #tpu.memory_space<vmem>>, vector<1x32x16xf32>
    %247 = vector.shape_cast %246 : vector<1x32x16xf32> to vector<32x16xf32>
    %cst_212 = arith.constant dense<0.000000e+00> : vector<16x16xf32>
    %248 = tpu.matmul %231, %247, %cst_212 {dimension_numbers = #tpu.dot_dimension_numbers<[1], [0], [0], [1], [0, 0, 1, 1], [], []>} : vector<16x32xf32>, vector<32x16xf32>, vector<16x16xf32> -> vector<16x16xf32>
    %249 = arith.addf %245, %248 : vector<16x16xf32>
    %c2_213 = arith.constant 2 : index
    %c0_214 = arith.constant 0 : index
    %c0_215 = arith.constant 0 : index
    %250 = vector.load %arg10[%c2_213, %c0_214, %c0_215] : memref<3x32x16xf32, #tpu.memory_space<vmem>>, vector<1x32x16xf32>
    %251 = vector.shape_cast %250 : vector<1x32x16xf32> to vector<32x16xf32>
    %cst_216 = arith.constant dense<0.000000e+00> : vector<16x16xf32>
    %252 = tpu.matmul %236, %251, %cst_216 {dimension_numbers = #tpu.dot_dimension_numbers<[1], [0], [0], [1], [0, 0, 1, 1], [], []>} : vector<16x32xf32>, vector<32x16xf32>, vector<16x16xf32> -> vector<16x16xf32>
    %253 = arith.addf %249, %252 : vector<16x16xf32>
    %254 = vector.broadcast %226 : vector<1x16xf32> to vector<16x16xf32>
    %255 = arith.addf %253, %254 : vector<16x16xf32>
    %c0_217 = arith.constant 0 : index
    %c0_218 = arith.constant 0 : index
    %c0_219 = arith.constant 0 : index
    %256 = vector.load %arg10[%c0_217, %c0_218, %c0_219] : memref<3x32x16xf32, #tpu.memory_space<vmem>>, vector<1x32x16xf32>
    %257 = vector.shape_cast %256 : vector<1x32x16xf32> to vector<32x16xf32>
    %cst_220 = arith.constant dense<0.000000e+00> : vector<16x16xf32>
    %258 = tpu.matmul %231, %257, %cst_220 {dimension_numbers = #tpu.dot_dimension_numbers<[1], [0], [0], [1], [0, 0, 1, 1], [], []>} : vector<16x32xf32>, vector<32x16xf32>, vector<16x16xf32> -> vector<16x16xf32>
    %c1_221 = arith.constant 1 : index
    %c0_222 = arith.constant 0 : index
    %c0_223 = arith.constant 0 : index
    %259 = vector.load %arg10[%c1_221, %c0_222, %c0_223] : memref<3x32x16xf32, #tpu.memory_space<vmem>>, vector<1x32x16xf32>
    %260 = vector.shape_cast %259 : vector<1x32x16xf32> to vector<32x16xf32>
    %cst_224 = arith.constant dense<0.000000e+00> : vector<16x16xf32>
    %261 = tpu.matmul %236, %260, %cst_224 {dimension_numbers = #tpu.dot_dimension_numbers<[1], [0], [0], [1], [0, 0, 1, 1], [], []>} : vector<16x32xf32>, vector<32x16xf32>, vector<16x16xf32> -> vector<16x16xf32>
    %262 = arith.addf %258, %261 : vector<16x16xf32>
    %c2_225 = arith.constant 2 : index
    %c0_226 = arith.constant 0 : index
    %c0_227 = arith.constant 0 : index
    %263 = vector.load %arg10[%c2_225, %c0_226, %c0_227] : memref<3x32x16xf32, #tpu.memory_space<vmem>>, vector<1x32x16xf32>
    %264 = vector.shape_cast %263 : vector<1x32x16xf32> to vector<32x16xf32>
    %cst_228 = arith.constant dense<0.000000e+00> : vector<16x16xf32>
    %265 = tpu.matmul %242, %264, %cst_228 {dimension_numbers = #tpu.dot_dimension_numbers<[1], [0], [0], [1], [0, 0, 1, 1], [], []>} : vector<16x32xf32>, vector<32x16xf32>, vector<16x16xf32> -> vector<16x16xf32>
    %266 = arith.addf %262, %265 : vector<16x16xf32>
    %267 = vector.broadcast %226 : vector<1x16xf32> to vector<16x16xf32>
    %268 = arith.addf %266, %267 : vector<16x16xf32>
    %269 = vector.broadcast %222 : vector<1x32xf32> to vector<16x32xf32>
    %270 = arith.mulf %166, %269 : vector<16x32xf32>
    %271 = vector.broadcast %225 : vector<1x32xf32> to vector<16x32xf32>
    %272 = arith.addf %270, %271 : vector<16x32xf32>
    %273 = math.tanh %272 : vector<16x32xf32>
    %274 = vector.broadcast %222 : vector<1x32xf32> to vector<16x32xf32>
    %275 = arith.mulf %175, %274 : vector<16x32xf32>
    %276 = vector.broadcast %225 : vector<1x32xf32> to vector<16x32xf32>
    %277 = arith.addf %275, %276 : vector<16x32xf32>
    %278 = math.tanh %277 : vector<16x32xf32>
    %c1_229 = arith.constant 1 : index
    %c0_230 = arith.constant 0 : index
    %279 = vector.load %arg18[%c1_229, %c0_230] : memref<18x32xf32, #tpu.memory_space<vmem>>, vector<16x32xf32>
    tpu.vector_store %arg18[%c1_229, %c0_230], %278 {strides = array<i32>} : memref<18x32xf32, #tpu.memory_space<vmem>>, vector<16x32xf32>,
    %c0_231 = arith.constant 0 : index
    %c0_232 = arith.constant 0 : index
    %280 = vector.load %arg18[%c0_231, %c0_232] : memref<18x32xf32, #tpu.memory_space<vmem>>, vector<18x32xf32>
    %281 = vector.extract_strided_slice %280 {offsets = [0, 0], sizes = [16, 32], strides = [1, 1]} : vector<18x32xf32> to vector<16x32xf32>
    %c1_233 = arith.constant 1 : index
    %c0_234 = arith.constant 0 : index
    %282 = vector.load %arg18[%c1_233, %c0_234] : memref<18x32xf32, #tpu.memory_space<vmem>>, vector<16x32xf32>
    tpu.vector_store %arg18[%c1_233, %c0_234], %273 {strides = array<i32>} : memref<18x32xf32, #tpu.memory_space<vmem>>, vector<16x32xf32>,
    %c0_235 = arith.constant 0 : index
    %c0_236 = arith.constant 0 : index
    %283 = vector.load %arg18[%c0_235, %c0_236] : memref<18x32xf32, #tpu.memory_space<vmem>>, vector<18x32xf32>
    %284 = vector.extract_strided_slice %283 {offsets = [2, 0], sizes = [16, 32], strides = [1, 1]} : vector<18x32xf32> to vector<16x32xf32>
    %c0_237 = arith.constant 0 : index
    %c0_238 = arith.constant 0 : index
    %c0_239 = arith.constant 0 : index
    %285 = vector.load %arg10[%c0_237, %c0_238, %c0_239] : memref<3x32x16xf32, #tpu.memory_space<vmem>>, vector<1x32x16xf32>
    %286 = vector.shape_cast %285 : vector<1x32x16xf32> to vector<32x16xf32>
    %cst_240 = arith.constant dense<0.000000e+00> : vector<16x16xf32>
    %287 = tpu.matmul %281, %286, %cst_240 {dimension_numbers = #tpu.dot_dimension_numbers<[1], [0], [0], [1], [0, 0, 1, 1], [], []>} : vector<16x32xf32>, vector<32x16xf32>, vector<16x16xf32> -> vector<16x16xf32>
    %c1_241 = arith.constant 1 : index
    %c0_242 = arith.constant 0 : index
    %c0_243 = arith.constant 0 : index
    %288 = vector.load %arg10[%c1_241, %c0_242, %c0_243] : memref<3x32x16xf32, #tpu.memory_space<vmem>>, vector<1x32x16xf32>
    %289 = vector.shape_cast %288 : vector<1x32x16xf32> to vector<32x16xf32>
    %cst_244 = arith.constant dense<0.000000e+00> : vector<16x16xf32>
    %290 = tpu.matmul %273, %289, %cst_244 {dimension_numbers = #tpu.dot_dimension_numbers<[1], [0], [0], [1], [0, 0, 1, 1], [], []>} : vector<16x32xf32>, vector<32x16xf32>, vector<16x16xf32> -> vector<16x16xf32>
    %291 = arith.addf %287, %290 : vector<16x16xf32>
    %c2_245 = arith.constant 2 : index
    %c0_246 = arith.constant 0 : index
    %c0_247 = arith.constant 0 : index
    %292 = vector.load %arg10[%c2_245, %c0_246, %c0_247] : memref<3x32x16xf32, #tpu.memory_space<vmem>>, vector<1x32x16xf32>
    %293 = vector.shape_cast %292 : vector<1x32x16xf32> to vector<32x16xf32>
    %cst_248 = arith.constant dense<0.000000e+00> : vector<16x16xf32>
    %294 = tpu.matmul %278, %293, %cst_248 {dimension_numbers = #tpu.dot_dimension_numbers<[1], [0], [0], [1], [0, 0, 1, 1], [], []>} : vector<16x32xf32>, vector<32x16xf32>, vector<16x16xf32> -> vector<16x16xf32>
    %295 = arith.addf %291, %294 : vector<16x16xf32>
    %296 = vector.broadcast %226 : vector<1x16xf32> to vector<16x16xf32>
    %297 = arith.addf %295, %296 : vector<16x16xf32>
    %c0_249 = arith.constant 0 : index
    %c0_250 = arith.constant 0 : index
    %c0_251 = arith.constant 0 : index
    %298 = vector.load %arg10[%c0_249, %c0_250, %c0_251] : memref<3x32x16xf32, #tpu.memory_space<vmem>>, vector<1x32x16xf32>
    %299 = vector.shape_cast %298 : vector<1x32x16xf32> to vector<32x16xf32>
    %cst_252 = arith.constant dense<0.000000e+00> : vector<16x16xf32>
    %300 = tpu.matmul %273, %299, %cst_252 {dimension_numbers = #tpu.dot_dimension_numbers<[1], [0], [0], [1], [0, 0, 1, 1], [], []>} : vector<16x32xf32>, vector<32x16xf32>, vector<16x16xf32> -> vector<16x16xf32>
    %c1_253 = arith.constant 1 : index
    %c0_254 = arith.constant 0 : index
    %c0_255 = arith.constant 0 : index
    %301 = vector.load %arg10[%c1_253, %c0_254, %c0_255] : memref<3x32x16xf32, #tpu.memory_space<vmem>>, vector<1x32x16xf32>
    %302 = vector.shape_cast %301 : vector<1x32x16xf32> to vector<32x16xf32>
    %cst_256 = arith.constant dense<0.000000e+00> : vector<16x16xf32>
    %303 = tpu.matmul %278, %302, %cst_256 {dimension_numbers = #tpu.dot_dimension_numbers<[1], [0], [0], [1], [0, 0, 1, 1], [], []>} : vector<16x32xf32>, vector<32x16xf32>, vector<16x16xf32> -> vector<16x16xf32>
    %304 = arith.addf %300, %303 : vector<16x16xf32>
    %c2_257 = arith.constant 2 : index
    %c0_258 = arith.constant 0 : index
    %c0_259 = arith.constant 0 : index
    %305 = vector.load %arg10[%c2_257, %c0_258, %c0_259] : memref<3x32x16xf32, #tpu.memory_space<vmem>>, vector<1x32x16xf32>
    %306 = vector.shape_cast %305 : vector<1x32x16xf32> to vector<32x16xf32>
    %cst_260 = arith.constant dense<0.000000e+00> : vector<16x16xf32>
    %307 = tpu.matmul %284, %306, %cst_260 {dimension_numbers = #tpu.dot_dimension_numbers<[1], [0], [0], [1], [0, 0, 1, 1], [], []>} : vector<16x32xf32>, vector<32x16xf32>, vector<16x16xf32> -> vector<16x16xf32>
    %308 = arith.addf %304, %307 : vector<16x16xf32>
    %309 = vector.broadcast %226 : vector<1x16xf32> to vector<16x16xf32>
    %310 = arith.addf %308, %309 : vector<16x16xf32>
    %cst_261 = arith.constant dense<0.000000e+00> : vector<16xf32>
    %311 = vector.multi_reduction <add>, %255, %cst_261 [0] : vector<16x16xf32> to vector<16xf32>
    %312 = vector.shape_cast %311 : vector<16xf32> to vector<1x16xf32>
    %cst_262 = arith.constant 0.000000e+00 : f32
    %313 = vector.broadcast %cst_262 : f32 to vector<1x16xf32>
    %314 = arith.addf %313, %312 : vector<1x16xf32>
    %cst_263 = arith.constant dense<0.000000e+00> : vector<16xf32>
    %315 = vector.multi_reduction <add>, %297, %cst_263 [0] : vector<16x16xf32> to vector<16xf32>
    %316 = vector.shape_cast %315 : vector<16xf32> to vector<1x16xf32>
    %317 = arith.addf %314, %316 : vector<1x16xf32>
    %cst_264 = arith.constant dense<0.000000e+00> : vector<16xf32>
    %318 = vector.multi_reduction <add>, %268, %cst_264 [0] : vector<16x16xf32> to vector<16xf32>
    %319 = vector.shape_cast %318 : vector<16xf32> to vector<1x16xf32>
    %320 = arith.addf %317, %319 : vector<1x16xf32>
    %cst_265 = arith.constant dense<0.000000e+00> : vector<16xf32>
    %321 = vector.multi_reduction <add>, %310, %cst_265 [0] : vector<16x16xf32> to vector<16xf32>
    %322 = vector.shape_cast %321 : vector<16xf32> to vector<1x16xf32>
    %323 = arith.addf %320, %322 : vector<1x16xf32>
    %cst_266 = arith.constant 6.400000e+01 : f32
    %324 = vector.broadcast %cst_266 : f32 to vector<1x16xf32>
    %325 = arith.divf %323, %324 : vector<1x16xf32>
    %326 = vector.broadcast %325 : vector<1x16xf32> to vector<16x16xf32>
    %327 = arith.subf %255, %326 : vector<16x16xf32>
    %328 = arith.mulf %327, %327 : vector<16x16xf32>
    %cst_267 = arith.constant dense<0.000000e+00> : vector<16xf32>
    %329 = vector.multi_reduction <add>, %328, %cst_267 [0] : vector<16x16xf32> to vector<16xf32>
    %330 = vector.shape_cast %329 : vector<16xf32> to vector<1x16xf32>
    %cst_268 = arith.constant 0.000000e+00 : f32
    %331 = vector.broadcast %cst_268 : f32 to vector<1x16xf32>
    %332 = arith.addf %331, %330 : vector<1x16xf32>
    %333 = vector.broadcast %325 : vector<1x16xf32> to vector<16x16xf32>
    %334 = arith.subf %297, %333 : vector<16x16xf32>
    %335 = arith.mulf %334, %334 : vector<16x16xf32>
    %cst_269 = arith.constant dense<0.000000e+00> : vector<16xf32>
    %336 = vector.multi_reduction <add>, %335, %cst_269 [0] : vector<16x16xf32> to vector<16xf32>
    %337 = vector.shape_cast %336 : vector<16xf32> to vector<1x16xf32>
    %338 = arith.addf %332, %337 : vector<1x16xf32>
    %339 = vector.broadcast %325 : vector<1x16xf32> to vector<16x16xf32>
    %340 = arith.subf %268, %339 : vector<16x16xf32>
    %341 = arith.mulf %340, %340 : vector<16x16xf32>
    %cst_270 = arith.constant dense<0.000000e+00> : vector<16xf32>
    %342 = vector.multi_reduction <add>, %341, %cst_270 [0] : vector<16x16xf32> to vector<16xf32>
    %343 = vector.shape_cast %342 : vector<16xf32> to vector<1x16xf32>
    %344 = arith.addf %338, %343 : vector<1x16xf32>
    %345 = vector.broadcast %325 : vector<1x16xf32> to vector<16x16xf32>
    %346 = arith.subf %310, %345 : vector<16x16xf32>
    %347 = arith.mulf %346, %346 : vector<16x16xf32>
    %cst_271 = arith.constant dense<0.000000e+00> : vector<16xf32>
    %348 = vector.multi_reduction <add>, %347, %cst_271 [0] : vector<16x16xf32> to vector<16xf32>
    %349 = vector.shape_cast %348 : vector<16xf32> to vector<1x16xf32>
    %350 = arith.addf %344, %349 : vector<1x16xf32>
    %cst_272 = arith.constant 6.400000e+01 : f32
    %351 = vector.broadcast %cst_272 : f32 to vector<1x16xf32>
    %352 = arith.divf %350, %351 : vector<1x16xf32>
    %c0_273 = arith.constant 0 : index
    %c0_274 = arith.constant 0 : index
    %353 = vector.load %arg12[%c0_273, %c0_274] : memref<1x16xf32, #tpu.memory_space<vmem>>, vector<1x16xf32>
    %cst_275 = arith.constant 9.99999974E-6 : f32
    %354 = vector.broadcast %cst_275 : f32 to vector<1x16xf32>
    %355 = arith.addf %352, %354 : vector<1x16xf32>
    %356 = math.rsqrt %355 : vector<1x16xf32>
    %357 = arith.mulf %353, %356 : vector<1x16xf32>
    %c0_276 = arith.constant 0 : index
    %c0_277 = arith.constant 0 : index
    %358 = vector.load %arg13[%c0_276, %c0_277] : memref<1x16xf32, #tpu.memory_space<vmem>>, vector<1x16xf32>
    %359 = arith.mulf %325, %357 : vector<1x16xf32>
    %360 = arith.subf %358, %359 : vector<1x16xf32>
    %c0_278 = arith.constant 0 : index
    %c0_279 = arith.constant 0 : index
    %361 = vector.load %arg15[%c0_278, %c0_279] : memref<1x1xf32, #tpu.memory_space<vmem>>, vector<1x1xf32>
    %362 = vector.broadcast %357 : vector<1x16xf32> to vector<16x16xf32>
    %363 = arith.mulf %255, %362 : vector<16x16xf32>
    %364 = vector.broadcast %360 : vector<1x16xf32> to vector<16x16xf32>
    %365 = arith.addf %363, %364 : vector<16x16xf32>
    %366 = math.tanh %365 : vector<16x16xf32>
    %367 = vector.broadcast %357 : vector<1x16xf32> to vector<16x16xf32>
    %368 = arith.mulf %268, %367 : vector<16x16xf32>
    %369 = vector.broadcast %360 : vector<1x16xf32> to vector<16x16xf32>
    %370 = arith.addf %368, %369 : vector<16x16xf32>
    %371 = math.tanh %370 : vector<16x16xf32>
    %c1_280 = arith.constant 1 : index
    %c0_281 = arith.constant 0 : index
    %372 = vector.load %arg19[%c1_280, %c0_281] : memref<18x16xf32, #tpu.memory_space<vmem>>, vector<16x16xf32>
    tpu.vector_store %arg19[%c1_280, %c0_281], %371 {strides = array<i32>} : memref<18x16xf32, #tpu.memory_space<vmem>>, vector<16x16xf32>,
    %c0_282 = arith.constant 0 : index
    %c0_283 = arith.constant 0 : index
    %373 = vector.load %arg19[%c0_282, %c0_283] : memref<18x16xf32, #tpu.memory_space<vmem>>, vector<18x16xf32>
    %374 = vector.extract_strided_slice %373 {offsets = [0, 0], sizes = [16, 16], strides = [1, 1]} : vector<18x16xf32> to vector<16x16xf32>
    %c1_284 = arith.constant 1 : index
    %c0_285 = arith.constant 0 : index
    %375 = vector.load %arg19[%c1_284, %c0_285] : memref<18x16xf32, #tpu.memory_space<vmem>>, vector<16x16xf32>
    tpu.vector_store %arg19[%c1_284, %c0_285], %366 {strides = array<i32>} : memref<18x16xf32, #tpu.memory_space<vmem>>, vector<16x16xf32>,
    %c0_286 = arith.constant 0 : index
    %c0_287 = arith.constant 0 : index
    %376 = vector.load %arg19[%c0_286, %c0_287] : memref<18x16xf32, #tpu.memory_space<vmem>>, vector<18x16xf32>
    %377 = vector.extract_strided_slice %376 {offsets = [2, 0], sizes = [16, 16], strides = [1, 1]} : vector<18x16xf32> to vector<16x16xf32>
    %c0_288 = arith.constant 0 : index
    %c0_289 = arith.constant 0 : index
    %c0_290 = arith.constant 0 : index
    %378 = vector.load %arg14[%c0_288, %c0_289, %c0_290] : memref<3x16x1xf32, #tpu.memory_space<vmem>>, vector<1x16x1xf32>
    %379 = vector.shape_cast %378 : vector<1x16x1xf32> to vector<16x1xf32>
    %cst_291 = arith.constant dense<0.000000e+00> : vector<16x1xf32>
    %380 = tpu.matmul %374, %379, %cst_291 {dimension_numbers = #tpu.dot_dimension_numbers<[1], [0], [0], [1], [0, 0, 1, 1], [], []>} : vector<16x16xf32>, vector<16x1xf32>, vector<16x1xf32> -> vector<16x1xf32>
    %c1_292 = arith.constant 1 : index
    %c0_293 = arith.constant 0 : index
    %c0_294 = arith.constant 0 : index
    %381 = vector.load %arg14[%c1_292, %c0_293, %c0_294] : memref<3x16x1xf32, #tpu.memory_space<vmem>>, vector<1x16x1xf32>
    %382 = vector.shape_cast %381 : vector<1x16x1xf32> to vector<16x1xf32>
    %cst_295 = arith.constant dense<0.000000e+00> : vector<16x1xf32>
    %383 = tpu.matmul %366, %382, %cst_295 {dimension_numbers = #tpu.dot_dimension_numbers<[1], [0], [0], [1], [0, 0, 1, 1], [], []>} : vector<16x16xf32>, vector<16x1xf32>, vector<16x1xf32> -> vector<16x1xf32>
    %384 = arith.addf %380, %383 : vector<16x1xf32>
    %c2_296 = arith.constant 2 : index
    %c0_297 = arith.constant 0 : index
    %c0_298 = arith.constant 0 : index
    %385 = vector.load %arg14[%c2_296, %c0_297, %c0_298] : memref<3x16x1xf32, #tpu.memory_space<vmem>>, vector<1x16x1xf32>
    %386 = vector.shape_cast %385 : vector<1x16x1xf32> to vector<16x1xf32>
    %cst_299 = arith.constant dense<0.000000e+00> : vector<16x1xf32>
    %387 = tpu.matmul %371, %386, %cst_299 {dimension_numbers = #tpu.dot_dimension_numbers<[1], [0], [0], [1], [0, 0, 1, 1], [], []>} : vector<16x16xf32>, vector<16x1xf32>, vector<16x1xf32> -> vector<16x1xf32>
    %388 = arith.addf %384, %387 : vector<16x1xf32>
    %389 = vector.broadcast %361 : vector<1x1xf32> to vector<16x1xf32>
    %390 = arith.addf %388, %389 : vector<16x1xf32>
    %c0_300 = arith.constant 0 : index
    %c0_301 = arith.constant 0 : index
    %c0_302 = arith.constant 0 : index
    %391 = vector.load %arg14[%c0_300, %c0_301, %c0_302] : memref<3x16x1xf32, #tpu.memory_space<vmem>>, vector<1x16x1xf32>
    %392 = vector.shape_cast %391 : vector<1x16x1xf32> to vector<16x1xf32>
    %cst_303 = arith.constant dense<0.000000e+00> : vector<16x1xf32>
    %393 = tpu.matmul %366, %392, %cst_303 {dimension_numbers = #tpu.dot_dimension_numbers<[1], [0], [0], [1], [0, 0, 1, 1], [], []>} : vector<16x16xf32>, vector<16x1xf32>, vector<16x1xf32> -> vector<16x1xf32>
    %c1_304 = arith.constant 1 : index
    %c0_305 = arith.constant 0 : index
    %c0_306 = arith.constant 0 : index
    %394 = vector.load %arg14[%c1_304, %c0_305, %c0_306] : memref<3x16x1xf32, #tpu.memory_space<vmem>>, vector<1x16x1xf32>
    %395 = vector.shape_cast %394 : vector<1x16x1xf32> to vector<16x1xf32>
    %cst_307 = arith.constant dense<0.000000e+00> : vector<16x1xf32>
    %396 = tpu.matmul %371, %395, %cst_307 {dimension_numbers = #tpu.dot_dimension_numbers<[1], [0], [0], [1], [0, 0, 1, 1], [], []>} : vector<16x16xf32>, vector<16x1xf32>, vector<16x1xf32> -> vector<16x1xf32>
    %397 = arith.addf %393, %396 : vector<16x1xf32>
    %c2_308 = arith.constant 2 : index
    %c0_309 = arith.constant 0 : index
    %c0_310 = arith.constant 0 : index
    %398 = vector.load %arg14[%c2_308, %c0_309, %c0_310] : memref<3x16x1xf32, #tpu.memory_space<vmem>>, vector<1x16x1xf32>
    %399 = vector.shape_cast %398 : vector<1x16x1xf32> to vector<16x1xf32>
    %cst_311 = arith.constant dense<0.000000e+00> : vector<16x1xf32>
    %400 = tpu.matmul %377, %399, %cst_311 {dimension_numbers = #tpu.dot_dimension_numbers<[1], [0], [0], [1], [0, 0, 1, 1], [], []>} : vector<16x16xf32>, vector<16x1xf32>, vector<16x1xf32> -> vector<16x1xf32>
    %401 = arith.addf %397, %400 : vector<16x1xf32>
    %402 = vector.broadcast %361 : vector<1x1xf32> to vector<16x1xf32>
    %403 = arith.addf %401, %402 : vector<16x1xf32>
    %c0_312 = arith.constant 0 : index
    %c0_313 = arith.constant 0 : index
    %c0_314 = arith.constant 0 : index
    %404 = vector.load %arg16[%c0_312, %c0_313, %c0_314] : memref<2x16x2xf32, #tpu.memory_space<vmem>>, vector<1x16x1xf32>
    %405 = vector.shape_cast %404 : vector<1x16x1xf32> to vector<16x1xf32>
    %406 = vector.shape_cast %390 : vector<16x1xf32> to vector<1x16x1xf32>
    tpu.vector_store %arg16[%c0_312, %c0_313, %c0_314], %406 {strides = array<i32>} : memref<2x16x2xf32, #tpu.memory_space<vmem>>, vector<1x16x1xf32>,
    %c0_315 = arith.constant 0 : index
    %c0_316 = arith.constant 0 : index
    %c1_317 = arith.constant 1 : index
    %407 = vector.load %arg16[%c0_315, %c0_316, %c1_317] : memref<2x16x2xf32, #tpu.memory_space<vmem>>, vector<1x16x1xf32>
    %408 = vector.shape_cast %407 : vector<1x16x1xf32> to vector<16x1xf32>
    %409 = vector.shape_cast %403 : vector<16x1xf32> to vector<1x16x1xf32>
    tpu.vector_store %arg16[%c0_315, %c0_316, %c1_317], %409 {strides = array<i32>} : memref<2x16x2xf32, #tpu.memory_space<vmem>>, vector<1x16x1xf32>,
    %410 = vector.broadcast %357 : vector<1x16xf32> to vector<16x16xf32>
    %411 = arith.mulf %297, %410 : vector<16x16xf32>
    %412 = vector.broadcast %360 : vector<1x16xf32> to vector<16x16xf32>
    %413 = arith.addf %411, %412 : vector<16x16xf32>
    %414 = math.tanh %413 : vector<16x16xf32>
    %415 = vector.broadcast %357 : vector<1x16xf32> to vector<16x16xf32>
    %416 = arith.mulf %310, %415 : vector<16x16xf32>
    %417 = vector.broadcast %360 : vector<1x16xf32> to vector<16x16xf32>
    %418 = arith.addf %416, %417 : vector<16x16xf32>
    %419 = math.tanh %418 : vector<16x16xf32>
    %c1_318 = arith.constant 1 : index
    %c0_319 = arith.constant 0 : index
    %420 = vector.load %arg19[%c1_318, %c0_319] : memref<18x16xf32, #tpu.memory_space<vmem>>, vector<16x16xf32>
    tpu.vector_store %arg19[%c1_318, %c0_319], %419 {strides = array<i32>} : memref<18x16xf32, #tpu.memory_space<vmem>>, vector<16x16xf32>,
    %c0_320 = arith.constant 0 : index
    %c0_321 = arith.constant 0 : index
    %421 = vector.load %arg19[%c0_320, %c0_321] : memref<18x16xf32, #tpu.memory_space<vmem>>, vector<18x16xf32>
    %422 = vector.extract_strided_slice %421 {offsets = [0, 0], sizes = [16, 16], strides = [1, 1]} : vector<18x16xf32> to vector<16x16xf32>
    %c1_322 = arith.constant 1 : index
    %c0_323 = arith.constant 0 : index
    %423 = vector.load %arg19[%c1_322, %c0_323] : memref<18x16xf32, #tpu.memory_space<vmem>>, vector<16x16xf32>
    tpu.vector_store %arg19[%c1_322, %c0_323], %414 {strides = array<i32>} : memref<18x16xf32, #tpu.memory_space<vmem>>, vector<16x16xf32>,
    %c0_324 = arith.constant 0 : index
    %c0_325 = arith.constant 0 : index
    %424 = vector.load %arg19[%c0_324, %c0_325] : memref<18x16xf32, #tpu.memory_space<vmem>>, vector<18x16xf32>
    %425 = vector.extract_strided_slice %424 {offsets = [2, 0], sizes = [16, 16], strides = [1, 1]} : vector<18x16xf32> to vector<16x16xf32>
    %c0_326 = arith.constant 0 : index
    %c0_327 = arith.constant 0 : index
    %c0_328 = arith.constant 0 : index
    %426 = vector.load %arg14[%c0_326, %c0_327, %c0_328] : memref<3x16x1xf32, #tpu.memory_space<vmem>>, vector<1x16x1xf32>
    %427 = vector.shape_cast %426 : vector<1x16x1xf32> to vector<16x1xf32>
    %cst_329 = arith.constant dense<0.000000e+00> : vector<16x1xf32>
    %428 = tpu.matmul %422, %427, %cst_329 {dimension_numbers = #tpu.dot_dimension_numbers<[1], [0], [0], [1], [0, 0, 1, 1], [], []>} : vector<16x16xf32>, vector<16x1xf32>, vector<16x1xf32> -> vector<16x1xf32>
    %c1_330 = arith.constant 1 : index
    %c0_331 = arith.constant 0 : index
    %c0_332 = arith.constant 0 : index
    %429 = vector.load %arg14[%c1_330, %c0_331, %c0_332] : memref<3x16x1xf32, #tpu.memory_space<vmem>>, vector<1x16x1xf32>
    %430 = vector.shape_cast %429 : vector<1x16x1xf32> to vector<16x1xf32>
    %cst_333 = arith.constant dense<0.000000e+00> : vector<16x1xf32>
    %431 = tpu.matmul %414, %430, %cst_333 {dimension_numbers = #tpu.dot_dimension_numbers<[1], [0], [0], [1], [0, 0, 1, 1], [], []>} : vector<16x16xf32>, vector<16x1xf32>, vector<16x1xf32> -> vector<16x1xf32>
    %432 = arith.addf %428, %431 : vector<16x1xf32>
    %c2_334 = arith.constant 2 : index
    %c0_335 = arith.constant 0 : index
    %c0_336 = arith.constant 0 : index
    %433 = vector.load %arg14[%c2_334, %c0_335, %c0_336] : memref<3x16x1xf32, #tpu.memory_space<vmem>>, vector<1x16x1xf32>
    %434 = vector.shape_cast %433 : vector<1x16x1xf32> to vector<16x1xf32>
    %cst_337 = arith.constant dense<0.000000e+00> : vector<16x1xf32>
    %435 = tpu.matmul %419, %434, %cst_337 {dimension_numbers = #tpu.dot_dimension_numbers<[1], [0], [0], [1], [0, 0, 1, 1], [], []>} : vector<16x16xf32>, vector<16x1xf32>, vector<16x1xf32> -> vector<16x1xf32>
    %436 = arith.addf %432, %435 : vector<16x1xf32>
    %437 = vector.broadcast %361 : vector<1x1xf32> to vector<16x1xf32>
    %438 = arith.addf %436, %437 : vector<16x1xf32>
    %c0_338 = arith.constant 0 : index
    %c0_339 = arith.constant 0 : index
    %c0_340 = arith.constant 0 : index
    %439 = vector.load %arg14[%c0_338, %c0_339, %c0_340] : memref<3x16x1xf32, #tpu.memory_space<vmem>>, vector<1x16x1xf32>
    %440 = vector.shape_cast %439 : vector<1x16x1xf32> to vector<16x1xf32>
    %cst_341 = arith.constant dense<0.000000e+00> : vector<16x1xf32>
    %441 = tpu.matmul %414, %440, %cst_341 {dimension_numbers = #tpu.dot_dimension_numbers<[1], [0], [0], [1], [0, 0, 1, 1], [], []>} : vector<16x16xf32>, vector<16x1xf32>, vector<16x1xf32> -> vector<16x1xf32>
    %c1_342 = arith.constant 1 : index
    %c0_343 = arith.constant 0 : index
    %c0_344 = arith.constant 0 : index
    %442 = vector.load %arg14[%c1_342, %c0_343, %c0_344] : memref<3x16x1xf32, #tpu.memory_space<vmem>>, vector<1x16x1xf32>
    %443 = vector.shape_cast %442 : vector<1x16x1xf32> to vector<16x1xf32>
    %cst_345 = arith.constant dense<0.000000e+00> : vector<16x1xf32>
    %444 = tpu.matmul %419, %443, %cst_345 {dimension_numbers = #tpu.dot_dimension_numbers<[1], [0], [0], [1], [0, 0, 1, 1], [], []>} : vector<16x16xf32>, vector<16x1xf32>, vector<16x1xf32> -> vector<16x1xf32>
    %445 = arith.addf %441, %444 : vector<16x1xf32>
    %c2_346 = arith.constant 2 : index
    %c0_347 = arith.constant 0 : index
    %c0_348 = arith.constant 0 : index
    %446 = vector.load %arg14[%c2_346, %c0_347, %c0_348] : memref<3x16x1xf32, #tpu.memory_space<vmem>>, vector<1x16x1xf32>
    %447 = vector.shape_cast %446 : vector<1x16x1xf32> to vector<16x1xf32>
    %cst_349 = arith.constant dense<0.000000e+00> : vector<16x1xf32>
    %448 = tpu.matmul %425, %447, %cst_349 {dimension_numbers = #tpu.dot_dimension_numbers<[1], [0], [0], [1], [0, 0, 1, 1], [], []>} : vector<16x16xf32>, vector<16x1xf32>, vector<16x1xf32> -> vector<16x1xf32>
    %449 = arith.addf %445, %448 : vector<16x1xf32>
    %450 = vector.broadcast %361 : vector<1x1xf32> to vector<16x1xf32>
    %451 = arith.addf %449, %450 : vector<16x1xf32>
    %c1_350 = arith.constant 1 : index
    %c0_351 = arith.constant 0 : index
    %c0_352 = arith.constant 0 : index
    %452 = vector.load %arg16[%c1_350, %c0_351, %c0_352] : memref<2x16x2xf32, #tpu.memory_space<vmem>>, vector<1x16x1xf32>
    %453 = vector.shape_cast %452 : vector<1x16x1xf32> to vector<16x1xf32>
    %454 = vector.shape_cast %438 : vector<16x1xf32> to vector<1x16x1xf32>
    tpu.vector_store %arg16[%c1_350, %c0_351, %c0_352], %454 {strides = array<i32>} : memref<2x16x2xf32, #tpu.memory_space<vmem>>, vector<1x16x1xf32>,
    %c1_353 = arith.constant 1 : index
    %c0_354 = arith.constant 0 : index
    %c1_355 = arith.constant 1 : index
    %455 = vector.load %arg16[%c1_353, %c0_354, %c1_355] : memref<2x16x2xf32, #tpu.memory_space<vmem>>, vector<1x16x1xf32>
    %456 = vector.shape_cast %455 : vector<1x16x1xf32> to vector<16x1xf32>
    %457 = vector.shape_cast %451 : vector<16x1xf32> to vector<1x16x1xf32>
    tpu.vector_store %arg16[%c1_353, %c0_354, %c1_355], %457 {strides = array<i32>} : memref<2x16x2xf32, #tpu.memory_space<vmem>>, vector<1x16x1xf32>,
    return
  }
  func.func @transform_0(%arg0: i32) -> (i32, i32, i32) {
    %c0_i32 = arith.constant 0 : i32
    %c0_i32_0 = arith.constant 0 : i32
    %c0_i32_1 = arith.constant 0 : i32
    %c0_i32_2 = arith.constant 0 : i32
    return %c0_i32, %c0_i32_0, %c0_i32_1 : i32, i32, i32
  }
  func.func @transform_1(%arg0: i32) -> (i32, i32, i32) {
    %c0_i32 = arith.constant 0 : i32
    %c0_i32_0 = arith.constant 0 : i32
    %c0_i32_1 = arith.constant 0 : i32
    %c0_i32_2 = arith.constant 0 : i32
    return %c0_i32, %c0_i32_0, %c0_i32_1 : i32, i32, i32
  }
  func.func @transform_2(%arg0: i32) -> (i32, i32) {
    %c0_i32 = arith.constant 0 : i32
    %c0_i32_0 = arith.constant 0 : i32
    %c0_i32_1 = arith.constant 0 : i32
    return %c0_i32, %c0_i32_0 : i32, i32
  }
  func.func @transform_3(%arg0: i32) -> (i32, i32, i32, i32) {
    %c0_i32 = arith.constant 0 : i32
    %c0_i32_0 = arith.constant 0 : i32
    %c0_i32_1 = arith.constant 0 : i32
    %c0_i32_2 = arith.constant 0 : i32
    %c0_i32_3 = arith.constant 0 : i32
    return %c0_i32, %c0_i32_0, %c0_i32_1, %c0_i32_2 : i32, i32, i32, i32
  }
  func.func @transform_4(%arg0: i32) -> (i32, i32, i32) {
    %c0_i32 = arith.constant 0 : i32
    %c0_i32_0 = arith.constant 0 : i32
    %c0_i32_1 = arith.constant 0 : i32
    %c0_i32_2 = arith.constant 0 : i32
    return %c0_i32, %c0_i32_0, %c0_i32_1 : i32, i32, i32
  }
  func.func @transform_5(%arg0: i32) -> (i32, i32, i32) {
    %c0_i32 = arith.constant 0 : i32
    %c0_i32_0 = arith.constant 0 : i32
    %c0_i32_1 = arith.constant 0 : i32
    %c0_i32_2 = arith.constant 0 : i32
    return %c0_i32, %c0_i32_0, %c0_i32_1 : i32, i32, i32
  }
  func.func @transform_6(%arg0: i32) -> (i32, i32) {
    %c0_i32 = arith.constant 0 : i32
    %c0_i32_0 = arith.constant 0 : i32
    %c0_i32_1 = arith.constant 0 : i32
    return %c0_i32, %c0_i32_0 : i32, i32
  }
  func.func @transform_7(%arg0: i32) -> (i32, i32) {
    %c0_i32 = arith.constant 0 : i32
    %c0_i32_0 = arith.constant 0 : i32
    %c0_i32_1 = arith.constant 0 : i32
    return %c0_i32, %c0_i32_0 : i32, i32
  }
  func.func @transform_8(%arg0: i32) -> (i32, i32) {
    %c0_i32 = arith.constant 0 : i32
    %c0_i32_0 = arith.constant 0 : i32
    %c0_i32_1 = arith.constant 0 : i32
    return %c0_i32, %c0_i32_0 : i32, i32
  }
  func.func @transform_9(%arg0: i32) -> (i32, i32, i32) {
    %c0_i32 = arith.constant 0 : i32
    %c0_i32_0 = arith.constant 0 : i32
    %c0_i32_1 = arith.constant 0 : i32
    %c0_i32_2 = arith.constant 0 : i32
    return %c0_i32, %c0_i32_0, %c0_i32_1 : i32, i32, i32
  }
  func.func @transform_10(%arg0: i32) -> (i32, i32) {
    %c0_i32 = arith.constant 0 : i32
    %c0_i32_0 = arith.constant 0 : i32
    %c0_i32_1 = arith.constant 0 : i32
    return %c0_i32, %c0_i32_0 : i32, i32
  }
  func.func @transform_11(%arg0: i32) -> (i32, i32) {
    %c0_i32 = arith.constant 0 : i32
    %c0_i32_0 = arith.constant 0 : i32
    %c0_i32_1 = arith.constant 0 : i32
    return %c0_i32, %c0_i32_0 : i32, i32
  }
  func.func @transform_12(%arg0: i32) -> (i32, i32) {
    %c0_i32 = arith.constant 0 : i32
    %c0_i32_0 = arith.constant 0 : i32
    %c0_i32_1 = arith.constant 0 : i32
    return %c0_i32, %c0_i32_0 : i32, i32
  }
  func.func @transform_13(%arg0: i32) -> (i32, i32, i32) {
    %c0_i32 = arith.constant 0 : i32
    %c0_i32_0 = arith.constant 0 : i32
    %c0_i32_1 = arith.constant 0 : i32
    %c0_i32_2 = arith.constant 0 : i32
    return %c0_i32, %c0_i32_0, %c0_i32_1 : i32, i32, i32
  }
  func.func @transform_14(%arg0: i32) -> (i32, i32) {
    %c0_i32 = arith.constant 0 : i32
    %c0_i32_0 = arith.constant 0 : i32
    %c0_i32_1 = arith.constant 0 : i32
    return %c0_i32, %c0_i32_0 : i32, i32
  }
  func.func @transform_15(%arg0: i32) -> (i32, i32, i32) {
    %c0_i32 = arith.constant 0 : i32
    %c0_i32_0 = arith.constant 0 : i32
    %c0_i32_1 = arith.constant 0 : i32
    %c0_i32_2 = arith.constant 0 : i32
    return %c0_i32, %c0_i32_0, %c0_i32_1 : i32, i32, i32
  }
}

</mosaic_0001>

<bundles_post_ra>
// kernel: mel_decoder_forward.1
= control target key start
LH: loop header
LB: loop body
LE: loop exit
PB: predicated region body
PF: predicated region fallthrough
CT: control target
= control target key end

     0   :  { %vm52_vm0 = vcmask 64512   ;;  %vm57_vm1 = vcmask 261120   ;;  %vm60_vm2 = vcmask 254976   ;;  %v6534_v1 = vmov 0.0   ;;  %s7473_s1 = inlined_call_operand.vmem [shape: f32[3,8,32], index: 1, kind: input, shape index: {}]   ;;  %s7474_s0 = inlined_call_operand.vmem [shape: f32[2,16,8], index: 0, kind: input, shape index: {}]   ;;  %s7475_s3 = inlined_call_operand.vmem [shape: f32[2,3,32,16], index: 3, kind: input, shape index: {}]   ;;  %s7476_s2 = inlined_call_operand.vmem [shape: f32[1,32], index: 2, kind: input, shape index: {}]   ;;  %s7477_s4 = inlined_call_operand.vmem [shape: f32[2,16,32], index: 4, kind: input, shape index: {}]   ;;  %s7478_s5 = inlined_call_operand.vmem [shape: f32[4,32,32], index: 5, kind: input, shape index: {}]   ;;  %s7479_s9 = inlined_call_operand.vmem [shape: f32[3,32,16], index: 9, kind: input, shape index: {}]   ;;  %s7480_s6 = inlined_call_operand.vmem [shape: f32[1,32], index: 6, kind: input, shape index: {}]   ;;  %s7481_s7 = inlined_call_operand.vmem [shape: f32[1,32], index: 7, kind: input, shape index: {}]   ;;  %s7482_s8 = inlined_call_operand.vmem [shape: f32[1,32], index: 8, kind: input, shape index: {}]   ;;  %s7483_s13 = inlined_call_operand.vmem [shape: f32[3,16,1], index: 13, kind: input, shape index: {}]   ;;  %s7484_s10 = inlined_call_operand.vmem [shape: f32[1,16], index: 10, kind: input, shape index: {}]   ;;  %s7485_s14 = inlined_call_operand.<no memory space> [shape: f32[1,1], index: 14, kind: input, shape index: {}]   ;;  %s7486_s11 = inlined_call_operand.vmem [shape: f32[1,16], index: 11, kind: input, shape index: {}]   ;;  %s7487_s12 = inlined_call_operand.vmem [shape: f32[1,16], index: 12, kind: input, shape index: {}]   ;;  %s7488_s15 = inlined_call_operand.vmem [shape: f32[2,16,2], index: 15, kind: output, shape index: {}]  }
   0x1   :  { %v6619_v0 = vld [vmem:[%s7473_s1 + $0x8] sm:$0xff]  ;;  %53 = vst.msk [vmem:[#allocation2] sm:$0xff] %vm52_vm0, %v6534_v1  ;;  %54 = vst.msk [vmem:[#allocation2 + $0x8] sm:$0xff] %vm52_vm0, %v6534_v1  ;;  %v69_v2 = vld [vmem:[%s7474_s0] sm:$0xff]  ;;  %vm55_vm3 = vcmask 58368   ;;  %vm244_vm4 = vcmask 1045504  }
   0x2   :  { %58 = vst.msk [vmem:[#allocation3] sm:$0xff] %vm57_vm1, %v6534_v1  ;;  %59 = vst.msk [vmem:[#allocation3 + $0x8] sm:$0xff] %vm57_vm1, %v6534_v1  ;;  %v70_v3 = vld [vmem:[%s7474_s0 + $0x8] sm:$0xff]  ;;  %5578 = vmatprep.subr.mxu0 %v6619_v0  ;;  %5580 = vmatprep.mubr.msk.f32.mxu0 %vm52_vm0, %v69_v2  ;;  %v6643_v4 = vld [vmem:[%s7473_s1] sm:$0xff]  ;;  %vm62_vm5 = vcmask 130048   ;;  %vm65_vm6 = vcmask 123904  }
   0x3   :  { %61 = vst.msk [vmem:[#allocation3 + $0x10] sm:$0x3] %vm60_vm2, %v6534_v1  ;;  %5579 = vmatpush3.msra.mxu0 %v6619_v0  ;;  %v6650_v5 = vld [vmem:[%s7473_s1 + $0x10] sm:$0xff]  ;;  %v5099_v14 = vld [vmem:[%s7475_s3 + $0x20] sm:$0xff]  ;;  %v5100_v15 = vld [vmem:[%s7475_s3 + $0x28] sm:$0xff]  ;;  %vm4544_vm7 = vcmask 7168  }
   0x4   :  { %71 = vst.msk [vmem:[#allocation2 + $0x1] sm:$0xff] %vm52_vm0, %v69_v2  ;;  %5581 = vmatmul.mubr.msk.f32.vlgmr.msra.gmra.mrb[0].mxu0 %vm52_vm0, %v70_v3  ;;  %5583 = vmatprep.subr.mxu0 %v6643_v4  ;;  %v6669_v16 = vpack.c.bf16 %v5100_v15, %v5099_v14  ;;  %v5101_v17 = vld [vmem:[%s7475_s3 + $0x30] sm:$0xff]  ;;  %v5102_v18 = vld [vmem:[%s7475_s3 + $0x38] sm:$0xff]  ;;  %v346_v20 = vld [vmem:[%s7475_s3] sm:$0xff]  ;;  %vm4555_vm8 = vcmask 15368  }
   0x5   :  { %56 = vst.msk [vmem:[#allocation2 + $0x10] sm:$0x3] %vm55_vm3, %v6534_v1  ;;  %5584 = vmatpush3.msra.mxu0 %v6643_v4  ;;  %v6679_v19 = vpack.c.bf16 %v5102_v18, %v5101_v17  ;;  %v347_v21 = vld [vmem:[%s7475_s3 + $0x8] sm:$0xff]  ;;  %v6695_v23 = vld [vmem:[%s7476_s2] ss:$0 sm:$0xff]  ;;  %v348_v28 = vld [vmem:[%s7475_s3 + $0x10] sm:$0xff] }
   0x6   :  { %72 = vst.msk [vmem:[#allocation2 + $0x9] sm:$0xff] %vm52_vm0, %v70_v3  ;;  %5588 = vmatprep.subr.mxu0 %v6650_v5  ;;  %6073 = vmatprep.subr.bf16.mxu1 %v6669_v16  ;;  %v6689_v22 = vpack.c.bf16 %v347_v21, %v346_v20  ;;  %v349_v29 = vld [vmem:[%s7475_s3 + $0x18] sm:$0xff]  ;;  %v5107_v33 = vld [vmem:[%s7475_s3 + $0x40] sm:$0xff]  ;;  %v5108_v34 = vld [vmem:[%s7475_s3 + $0x48] sm:$0xff] }
   0x7   :  { %6075 = vmatpush3.bf16.msra.mxu1 %v6669_v16  ;;  %v6712_v32 = vpack.c.bf16 %v349_v29, %v348_v28  ;;  %v6725_v35 = vpack.c.bf16 %v5108_v34, %v5107_v33  ;;  %v5109_v36 = vld [vmem:[%s7475_s3 + $0x50] sm:$0xff]  ;;  %v5110_v37 = vld [vmem:[%s7475_s3 + $0x58] sm:$0xff]  ;;  %v611_v47 = vld [vmem:[%s7477_s4] sm:$0xff]  ;;  %63 = vst.msk [vmem:[#allocation4] sm:$0xff] %vm62_vm5, %v6534_v1 }
   0x8   :  { %6077 = vmatprep.subr.bf16.mxu1 %v6679_v19  ;;  %v6735_v40 = vpack.c.bf16 %v5110_v37, %v5109_v36  ;;  %v612_v48 = vld [vmem:[%s7477_s4 + $0x8] sm:$0xff]  ;;  %64 = vst.msk [vmem:[#allocation4 + $0x8] sm:$0xff] %vm62_vm5, %v6534_v1  ;;  %v5119_v54 = vld [vmem:[%s7475_s3 + $0x80] sm:$0xff]  ;;  %v5121_v57 = vld [vmem:[%s7475_s3 + $0x90] sm:$0xff] }
   0x9   :  { %v6756_v49 = vpack.c.bf16 %v612_v48, %v611_v47  ;;  %v5120_v55 = vld [vmem:[%s7475_s3 + $0x88] sm:$0xff]  ;;  %v5122_v58 = vld [vmem:[%s7475_s3 + $0x98] sm:$0xff]  ;;  %v5115_v60 = vld [vmem:[%s7475_s3 + $0x60] sm:$0xff]  ;;  %66 = vst.msk [vmem:[#allocation4 + $0x10] sm:$0x3] %vm65_vm6, %v6534_v1 }
   0xa   :  { %v6768_v56 = vpack.c.bf16 %v5120_v55, %v5119_v54  ;;  %v6778_v59 = vpack.c.bf16 %v5122_v58, %v5121_v57  ;;  %v5116_v61 = vld [vmem:[%s7475_s3 + $0x68] sm:$0xff]  ;;  %v5129_v15 = vld [vmem:[%s7475_s3 + $0xb0] sm:$0xff]  ;;  %v5130_v17 = vld [vmem:[%s7475_s3 + $0xb8] sm:$0xff] }
   0xb   :  { %v73_v6 = vld [vmem:[#allocation2] sm:$0xff]  ;;  %6079 = vmatpush3.bf16.msra.mxu1 %v6679_v19  ;;  %v6788_v62 = vpack.c.bf16 %v5116_v61, %v5115_v60  ;;  %v6829_v21 = vpack.c.bf16 %v5130_v17, %v5129_v15  ;;  %v5144_v47 = vld [vmem:[%s7478_s5 + $0x78] sm:$0xff]  ;;  %v5138_v54 = vld [vmem:[%s7478_s5 + $0x28] sm:$0xff] }
   0xc   :  { %5585 = vmatprep.mubr.msk.f32.mxu0 %vm52_vm0, %v73_v6  ;;  %v245_v7 = vrot.slane %v73_v6, 2  ;;  %6081 = vmatprep.subr.bf16.mxu1 %v6689_v22  ;;  %v5150_v57 = vld [vmem:[%s7478_s5 + $0x40] sm:$0xff]  ;;  %v5151_v58 = vld [vmem:[%s7478_s5 + $0x48] sm:$0xff]  ;;  %v5158_v61 = vld [vmem:[%s7474_s0 + $0x10] sm:$0xff] }
   0xd   :  { %v74_v8 = vld [vmem:[#allocation2 + $0x8] sm:$0xff]  ;;  %v75_v9 = vld [vmem:[#allocation2 + $0x10] sm:$0x3]  ;;  %v6907_v60 = vpack.c.bf16 %v5151_v58, %v5150_v57  ;;  %v5140_v15 = vld [vmem:[%s7478_s5 + $0x38] sm:$0xff] }
   0xe   :  { %v246_v10 = vrot.slane %v74_v8, 2  ;;  %5586 = vmatmul.mubr.msk.f32.vlgmr.msra.gmra.mrb[0].mxu0 %vm52_vm0, %v74_v8  ;;  %v248_v12 = vrot.slane %v75_v9, 2  ;;  %v5118_v8 = vld [vmem:[%s7475_s3 + $0x78] sm:$0xff]  ;;  %1416 = vst.msk [vmem:[#allocation2 + $0x1] sm:$0xff] %vm52_vm0, %v5158_v61  ;;  %v5240_v1 = vld [vmem:[%s7484_s10] ss:$0 sm:$0xff] }
   0xf   :  { %5589 = vmatpush3.msra.mxu0 %v6650_v5 }
  0x10   :  { %v247_v11 = vsel %vm244_vm4, %v245_v7, %v246_v10  ;;  %v249_v13 = vsel %vm244_vm4, %v246_v10, %v248_v12  ;;  %6097 = vmatprep.subr.bf16.mxu0 %v6756_v49  ;;  %v5117_v7 = vld [vmem:[%s7475_s3 + $0x70] sm:$0xff]  ;;  %v5127_v12 = vld [vmem:[%s7475_s3 + $0xa0] sm:$0xff] }
  0x11   :  { %5590 = vmatprep.mubr.msk.f32.mxu0 %vm52_vm0, %v247_v11  ;;  %v6806_v11 = vpack.c.bf16 %v5118_v8, %v5117_v7 }
  0x16   :  { %5591 = vmatmul.mubr.msk.f32.vlgmr.msra.gmra.mrb[0].mxu0 %vm52_vm0, %v249_v13  ;;  %v5128_v13 = vld [vmem:[%s7475_s3 + $0xa8] sm:$0xff] }
  0x17   :  { %6099 = vmatpush3.bf16.msra.mxu0 %v6756_v49  ;;  %v6819_v14 = vpack.c.bf16 %v5128_v13, %v5127_v12  ;;  %v5139_v13 = vld [vmem:[%s7478_s5 + $0x30] sm:$0xff] }
  0x18   :  { %6101 = vmatprep.subr.bf16.mxu0 %v6768_v56 }
  0xe9   :  { %v5592_v24 = vpop.f32.mrb[0].mxu0 }
  0xea   :  { %v6698_v25 = vadd.f32 %v5592_v24, %v6695_v23  ;;  %v320_v26 = vpop.f32.mrb[1].mxu0 }
  0xeb   :  { %v6701_v27 = vadd.f32 %v6695_v23, %v320_v26 }
  0xec   :  { %6458 = vtanh.f32 %v6698_v25 }
  0xed   :  { %6460 = vtanh.f32 %v6701_v27 }
  0xf6   :  { %v6459_v30 = vpop.eup %6458 }
  0xf7   :  { %v6461_v31 = vpop.eup %6460  ;;  %342 = vst.msk [vmem:[#allocation3 + $0x9] sm:$0xff] %vm57_vm1, %v6459_v30 }
  0xf8   :  { %341 = vst.msk [vmem:[#allocation3 + $0x1] sm:$0xff] %vm57_vm1, %v6461_v31  ;;  %5601 = vmatprep.mubr.msk.f32.mxu1 %vm57_vm1, %v6461_v31  ;;  %v5134_v31 = vld [vmem:[%s7477_s4 + $0x18] sm:$0xff] }
  0xf9   :  { %5602 = vmatmul.mubr.msk.f32.vlgmr.msra.gmra.mrb[0].mxu1 %vm57_vm1, %v6459_v30  ;;  %v5133_v30 = vld [vmem:[%s7477_s4 + $0x10] sm:$0xff] }
  0xfa   :  { %6083 = vmatpush3.bf16.msra.mxu1 %v6689_v22  ;;  %v6846_v33 = vpack.c.bf16 %v5134_v31, %v5133_v30  ;;  %v1418_v31 = vld [vmem:[#allocation2] sm:$0xff] }
  0xfb   :  { %6085 = vmatprep.subr.bf16.mxu1 %v6712_v32 }
  0xfe   :  { %6087 = vmatpush3.bf16.msra.mxu1 %v6712_v32  ;;  %v345_v43 = vld [vmem:[#allocation3 + $0x10] sm:$0x3] }
  0xff   :  { %v344_v38 = vld [vmem:[#allocation3 + $0x8] sm:$0xff]  ;;  %v343_v39 = vld [vmem:[#allocation3] sm:$0xff]  ;;  %6089 = vmatprep.subr.bf16.mxu1 %v6725_v35  ;;  %v526_v45 = vrot.slane %v345_v43, 2 }
 0x100   :  { %5612 = vmatprep.mubr.msk.f32.mxu1 %vm57_vm1, %v343_v39  ;;  %v523_v41 = vrot.slane %v343_v39, 2  ;;  %v524_v42 = vrot.slane %v344_v38, 2  ;;  %v5141_v39 = vld [vmem:[%s7478_s5 + $0x60] sm:$0xff] }
 0x101   :  { %5613 = vmatmul.mubr.msk.f32.vlgmr.msra.gmra.mrb[0].mxu1 %vm57_vm1, %v344_v38  ;;  %v1247_v43 = vld [vmem:[%s7478_s5] sm:$0xff] }
 0x102   :  { %6091 = vmatpush3.bf16.msra.mxu1 %v6725_v35  ;;  %v525_v44 = vsel %vm244_vm4, %v523_v41, %v524_v42  ;;  %v527_v46 = vsel %vm244_vm4, %v524_v42, %v526_v45  ;;  %v5142_v41 = vld [vmem:[%s7478_s5 + $0x68] sm:$0xff]  ;;  %v5143_v45 = vld [vmem:[%s7478_s5 + $0x70] sm:$0xff] }
 0x103   :  { %5623 = vmatprep.mubr.msk.f32.mxu1 %vm57_vm1, %v525_v44  ;;  %6093 = vmatprep.subr.bf16.mxu1 %v6735_v40  ;;  %v6858_v42 = vpack.c.bf16 %v5142_v41, %v5141_v39  ;;  %v1248_v44 = vld [vmem:[%s7478_s5 + $0x8] sm:$0xff]  ;;  %v6876_v48 = vpack.c.bf16 %v5144_v47, %v5143_v45 }
 0x106   :  { %6095 = vmatpush3.bf16.msra.mxu1 %v6735_v40 }
 0x107   :  { %6125 = vmatprep.subr.bf16.mxu1 %v6846_v33 }
 0x109   :  { %5624 = vmatmul.mubr.msk.f32.vlgmr.msra.gmra.mrb[0].mxu1 %vm57_vm1, %v527_v46  ;;  %v6870_v46 = vpack.c.bf16 %v1248_v44, %v1247_v43 }
 0x10a   :  { %6127 = vmatpush3.bf16.msra.mxu1 %v6846_v33 }
 0x10b   :  { %6129 = vmatprep.subr.bf16.mxu1 %v6858_v42 }
 0x1dc   :  { %v5625_v50 = vpop.f32.mrb[0].mxu1 }
 0x1dd   :  { %v598_v51 = vpop.f32.mrb[1].mxu1 }
 0x1de   :  { %6462 = vtanh.f32 %v598_v51  ;;  %v1250_v51 = vld [vmem:[%s7478_s5 + $0x18] sm:$0xff] }
 0x1df   :  { %6464 = vtanh.f32 %v5625_v50  ;;  %v1249_v50 = vld [vmem:[%s7478_s5 + $0x10] sm:$0xff] }
 0x1e8   :  { %v6463_v52 = vpop.eup %6462 }
 0x1e9   :  { %v6465_v53 = vpop.eup %6464  ;;  %5630 = vmatprep.mubr.msk.f32.mxu0 %vm62_vm5, %v6463_v52  ;;  %v6888_v52 = vpack.c.bf16 %v1250_v51, %v1249_v50 }
 0x1ea   :  { %5631 = vmatmul.mubr.msk.f32.vlgmr.msra.gmra.mrb[2].mxu0 %vm62_vm5, %v6465_v53  ;;  %v5137_v53 = vld [vmem:[%s7478_s5 + $0x20] sm:$0xff] }
 0x1eb   :  { %6103 = vmatpush3.bf16.msra.mxu0 %v6768_v56  ;;  %v6896_v55 = vpack.c.bf16 %v5138_v54, %v5137_v53 }
 0x1ec   :  { %6105 = vmatprep.subr.bf16.mxu0 %v6778_v59 }
 0x1ef   :  { %6107 = vmatpush3.bf16.msra.mxu0 %v6778_v59 }
 0x1f0   :  { %6109 = vmatprep.subr.bf16.mxu0 %v6788_v62 }
 0x2bd   :  { %v5632_v63 = vpop.f32.mrb[2].mxu0 }
 0x2be   :  { %v6792_v2 = vadd.f32 %v5632_v63, %v6698_v25  ;;  %v685_v3 = vpop.f32.mrb[3].mxu0  ;;  %v5159_v63 = vld [vmem:[%s7474_s0 + $0x18] sm:$0xff] }
 0x2bf   :  { %v6795_v6 = vadd.f32 %v685_v3, %v6701_v27  ;;  %1417 = vst.msk [vmem:[#allocation2 + $0x9] sm:$0xff] %vm52_vm0, %v5159_v63 }
 0x2c0   :  { %6466 = vtanh.f32 %v6792_v2 }
 0x2c1   :  { %6468 = vtanh.f32 %v6795_v6 }
 0x2ca   :  { %v6467_v9 = vpop.eup %6466 }
 0x2cb   :  { %v6469_v10 = vpop.eup %6468  ;;  %699 = vst.msk [vmem:[#allocation3 + $0x9] sm:$0xff] %vm57_vm1, %v6467_v9 }
 0x2cc   :  { %698 = vst.msk [vmem:[#allocation3 + $0x1] sm:$0xff] %vm57_vm1, %v6469_v10  ;;  %5641 = vmatprep.mubr.msk.f32.mxu0 %vm57_vm1, %v6469_v10 }
 0x2cd   :  { %5642 = vmatmul.mubr.msk.f32.vlgmr.msra.gmra.mrb[4].mxu0 %vm57_vm1, %v6467_v9 }
 0x2ce   :  { %6111 = vmatpush3.bf16.msra.mxu0 %v6788_v62 }
 0x2cf   :  { %6113 = vmatprep.subr.bf16.mxu0 %v6806_v11 }
 0x2d2   :  { %6115 = vmatpush3.bf16.msra.mxu0 %v6806_v11  ;;  %v702_v26 = vld [vmem:[#allocation3 + $0x10] sm:$0x3] }
 0x2d3   :  { %v700_v18 = vld [vmem:[#allocation3] sm:$0xff]  ;;  %v701_v20 = vld [vmem:[#allocation3 + $0x8] sm:$0xff]  ;;  %6117 = vmatprep.subr.bf16.mxu0 %v6819_v14  ;;  %v884_v28 = vrot.slane %v702_v26, 2 }
 0x2d4   :  { %5652 = vmatprep.mubr.msk.f32.mxu0 %vm57_vm1, %v700_v18  ;;  %v881_v24 = vrot.slane %v700_v18, 2  ;;  %v882_v25 = vrot.slane %v701_v20, 2 }
 0x2d5   :  { %5653 = vmatmul.mubr.msk.f32.vlgmr.msra.gmra.mrb[4].mxu0 %vm57_vm1, %v701_v20 }
 0x2d6   :  { %6119 = vmatpush3.bf16.msra.mxu0 %v6819_v14  ;;  %v883_v27 = vsel %vm244_vm4, %v881_v24, %v882_v25  ;;  %v885_v29 = vsel %vm244_vm4, %v882_v25, %v884_v28  ;;  %v6931_v24 = vpack.c.bf16 %v5140_v15, %v5139_v13  ;;  %v5153_v25 = vld [vmem:[%s7478_s5 + $0x58] sm:$0xff] }
 0x2d7   :  { %5663 = vmatprep.mubr.msk.f32.mxu0 %vm57_vm1, %v883_v27  ;;  %6121 = vmatprep.subr.bf16.mxu0 %v6829_v21 }
 0x2da   :  { %6123 = vmatpush3.bf16.msra.mxu0 %v6829_v21 }
 0x2db   :  { %6145 = vmatprep.subr.bf16.mxu0 %v6870_v46 }
 0x2dd   :  { %5664 = vmatmul.mubr.msk.f32.vlgmr.msra.gmra.mrb[4].mxu0 %vm57_vm1, %v885_v29 }
 0x2de   :  { %6147 = vmatpush3.bf16.msra.mxu0 %v6870_v46 }
 0x2df   :  { %6149 = vmatprep.subr.bf16.mxu0 %v6888_v52 }
 0x2e2   :  { %6151 = vmatpush3.bf16.msra.mxu0 %v6888_v52 }
 0x2e3   :  { %6153 = vmatprep.subr.bf16.mxu0 %v6907_v60 }
 0x3b0   :  { %v5665_v34 = vpop.f32.mrb[4].mxu0 }
 0x3b1   :  { %v956_v36 = vpop.f32.mrb[5].mxu0 }
 0x3b2   :  { %6470 = vtanh.f32 %v956_v36  ;;  %v1587_v36 = vrot.slane %v1418_v31, 2 }
 0x3b3   :  { %6472 = vtanh.f32 %v5665_v34  ;;  %v1419_v34 = vld [vmem:[#allocation2 + $0x8] sm:$0xff] }
 0x3bc   :  { %v6471_v37 = vpop.eup %6470 }
 0x3bd   :  { %v6473_v38 = vpop.eup %6472  ;;  %5670 = vmatprep.mubr.msk.f32.mxu1 %vm62_vm5, %v6471_v37 }
 0x3be   :  { %5671 = vmatmul.mubr.msk.f32.vlgmr.msra.gmra.mrb[2].mxu1 %vm62_vm5, %v6473_v38  ;;  %v1420_v38 = vld [vmem:[#allocation2 + $0x10] sm:$0x3] }
 0x3bf   :  { %6131 = vmatpush3.bf16.msra.mxu1 %v6858_v42 }
 0x3c0   :  { %6133 = vmatprep.subr.bf16.mxu1 %v6876_v48 }
 0x3c3   :  { %6135 = vmatpush3.bf16.msra.mxu1 %v6876_v48 }
 0x3c4   :  { %6137 = vmatprep.subr.bf16.mxu1 %v6896_v55 }
 0x491   :  { %v5672_v3 = vpop.f32.mrb[2].mxu1 }
 0x492   :  { %v1054_v7 = vadd.f32 %v5672_v3, %v6792_v2  ;;  %v1044_v8 = vpop.f32.mrb[3].mxu1 }
 0x493   :  { %v1053_v9 = vadd.f32 %v1044_v8, %v6795_v6  ;;  %v5152_v6 = vld [vmem:[%s7478_s5 + $0x50] sm:$0xff]  ;;  %s6535_s5 = smov 1  }
 0x494   :  { %6474 = vtanh.f32 %v1054_v7  ;;  %v6942_v30 = vpack.c.bf16 %v5153_v25, %v5152_v6 }
 0x495   :  { %6476 = vtanh.f32 %v1053_v9 }
 0x49e   :  { %v6475_v10 = vpop.eup %6474 }
 0x49f   :  { %v6477_v12 = vpop.eup %6476  ;;  %1058 = vst.msk [vmem:[#allocation3 + $0x9] sm:$0xff] %vm57_vm1, %v6475_v10 }
 0x4a0   :  { %1057 = vst.msk [vmem:[#allocation3 + $0x1] sm:$0xff] %vm57_vm1, %v6477_v12 }
 0x4a6   :  { %v1061_v2 = vld [vmem:[#allocation3 + $0x10] sm:$0x3] }
 0x4a7   :  { %v1059_v17 = vld [vmem:[#allocation3] sm:$0xff]  ;;  %v1060_v18 = vld [vmem:[#allocation3 + $0x8] sm:$0xff]  ;;  %v1255_v20 = vrot.slane %v1061_v2, 2 }
 0x4a8   :  { %5681 = vmatprep.mubr.msk.f32.mxu1 %vm57_vm1, %v1059_v17  ;;  %v1252_v26 = vrot.slane %v1059_v17, 2  ;;  %v1253_v27 = vrot.slane %v1060_v18, 2 }
 0x4a9   :  { %5682 = vmatmul.mubr.msk.f32.vlgmr.msra.gmra.mrb[4].mxu1 %vm57_vm1, %v1060_v18 }
 0x4aa   :  { %6139 = vmatpush3.bf16.msra.mxu1 %v6896_v55  ;;  %5692 = vmatprep.mubr.msk.f32.mxu1 %vm57_vm1, %v6477_v12  ;;  %v1254_v28 = vsel %vm244_vm4, %v1252_v26, %v1253_v27  ;;  %v1256_v29 = vsel %vm244_vm4, %v1253_v27, %v1255_v20 }
 0x4ab   :  { %5703 = vmatprep.mubr.msk.f32.mxu0 %vm57_vm1, %v1254_v28  ;;  %6141 = vmatprep.subr.bf16.mxu1 %v6931_v24 }
 0x4ac   :  { %5704 = vmatmul.mubr.msk.f32.vlgmr.msra.gmra.mrb[6].mxu0 %vm57_vm1, %v1256_v29 }
 0x4ad   :  { %6155 = vmatpush3.bf16.msra.mxu0 %v6907_v60  ;;  %5714 = vmatprep.mubr.msk.f32.mxu0 %vm57_vm1, %v6477_v12 }
 0x4ae   :  { %6143 = vmatpush3.bf16.msra.mxu1 %v6931_v24  ;;  %6157 = vmatprep.subr.bf16.mxu0 %v6942_v30 }
 0x4af   :  { %5717 = vmatprep.subr.mxu1 %v6619_v0 }
 0x4b1   :  { %5693 = vmatmul.mubr.msk.f32.vlgmr.msra.gmra.mrb[4].mxu1 %vm57_vm1, %v6475_v10  ;;  %6159 = vmatpush3.bf16.msra.mxu0 %v6942_v30 }
 0x4b2   :  { %5718 = vmatpush3.msra.mxu1 %v6619_v0  ;;  %5719 = vmatprep.mubr.msk.f32.mxu1 %vm52_vm0, %v5158_v61  ;;  %v1588_v0 = vrot.slane %v1419_v34, 2 }
 0x4b3   :  { %5722 = vmatprep.subr.mxu1 %v6643_v4  ;;  %6161 = vmatprep.subr.bf16.mxu0 %v6669_v16 }
 0x4b4   :  { %5715 = vmatmul.mubr.msk.f32.vlgmr.msra.gmra.mrb[6].mxu0 %vm57_vm1, %v6475_v10  ;;  %v1589_v37 = vsel %vm244_vm4, %v1587_v36, %v1588_v0 }
 0x4b5   :  { %5720 = vmatmul.mubr.msk.f32.vlgmr.msra.gmra.mrb[6].mxu1 %vm52_vm0, %v5159_v63  ;;  %6163 = vmatpush3.bf16.msra.mxu0 %v6669_v16 }
 0x4b6   :  { %5723 = vmatpush3.msra.mxu1 %v6643_v4  ;;  %5724 = vmatprep.mubr.msk.f32.mxu1 %vm52_vm0, %v1418_v31  ;;  %v1590_v4 = vrot.slane %v1420_v38, 2  ;;  %v2874_v38 = vld [vmem:[%s7479_s9] sm:$0xff] }
 0x4b7   :  { %5727 = vmatprep.subr.mxu1 %v6650_v5  ;;  %6165 = vmatprep.subr.bf16.mxu0 %v6679_v19 }
 0x4b8   :  { %v1591_v16 = vsel %vm244_vm4, %v1588_v0, %v1590_v4  ;;  %v2875_v4 = vld [vmem:[%s7479_s9 + $0x8] sm:$0xff] }
 0x4b9   :  { %6167 = vmatpush3.bf16.msra.mxu0 %v6679_v19 }
 0x4ba   :  { %6169 = vmatprep.subr.bf16.mxu0 %v6689_v22 }
 0x4bd   :  { %5725 = vmatmul.mubr.msk.f32.vlgmr.msra.gmra.mrb[6].mxu1 %vm52_vm0, %v1419_v34 }
 0x4be   :  { %5728 = vmatpush3.msra.mxu1 %v6650_v5  ;;  %5729 = vmatprep.mubr.msk.f32.mxu1 %vm52_vm0, %v1589_v37 }
 0x4bf   :  { %6185 = vmatprep.subr.bf16.mxu1 %v6756_v49 }
 0x4c5   :  { %5730 = vmatmul.mubr.msk.f32.vlgmr.msra.gmra.mrb[6].mxu1 %vm52_vm0, %v1591_v16  ;;  %v7088_v16 = vpack.c.bf16 %v2875_v4, %v2874_v38 }
 0x4c6   :  { %6187 = vmatpush3.bf16.msra.mxu1 %v6756_v49 }
 0x4c7   :  { %6189 = vmatprep.subr.bf16.mxu1 %v6768_v56 }
 0x584   :  { %v6976_v19 = vpop.f32.mrb[4].mxu1 }
 0x585   :  { %v6978_v39 = vpop.f32.mrb[5].mxu1 }
 0x587   :  { %v6980_v41 = vpop.f32.mrb[6].mxu0 }
 0x588   :  { %v6982_v5 = vpop.f32.mrb[7].mxu0 }
 0x598   :  { %v5731_v43 = vpop.f32.mrb[6].mxu1 }
 0x599   :  { %v1674_v44 = vadd.f32 %v5731_v43, %v6695_v23  ;;  %v1662_v45 = vpop.f32.mrb[7].mxu1  ;;  %v5149_v43 = vld [vmem:[%s7480_s6] ss:$0 sm:$0xff] }
 0x59a   :  { %v1673_v47 = vadd.f32 %v6695_v23, %v1662_v45  ;;  %v7099_v45 = vadd.f32 %v5149_v43, %v6978_v39 }
 0x59b   :  { %6478 = vtanh.f32 %v1674_v44 }
 0x59c   :  { %6480 = vtanh.f32 %v1673_v47 }
 0x5a5   :  { %v6479_v50 = vpop.eup %6478 }
 0x5a6   :  { %v6481_v49 = vpop.eup %6480  ;;  %1678 = vst.msk [vmem:[#allocation3 + $0x9] sm:$0xff] %vm57_vm1, %v6479_v50 }
 0x5a7   :  { %1677 = vst.msk [vmem:[#allocation3 + $0x1] sm:$0xff] %vm57_vm1, %v6481_v49  ;;  %5740 = vmatprep.mubr.msk.f32.mxu0 %vm57_vm1, %v6481_v49 }
 0x5a8   :  { %5741 = vmatmul.mubr.msk.f32.vlgmr.msra.gmra.mrb[8].mxu0 %vm57_vm1, %v6479_v50  ;;  %v7105_v50 = vadd.f32 %v5149_v43, %v6982_v5 }
 0x5a9   :  { %6171 = vmatpush3.bf16.msra.mxu0 %v6689_v22 }
 0x5aa   :  { %6173 = vmatprep.subr.bf16.mxu0 %v6712_v32 }
 0x5ad   :  { %6175 = vmatpush3.bf16.msra.mxu0 %v6712_v32  ;;  %v1681_v57 = vld [vmem:[#allocation3 + $0x10] sm:$0x3] }
 0x5ae   :  { %v1679_v51 = vld [vmem:[#allocation3] sm:$0xff]  ;;  %v1680_v23 = vld [vmem:[#allocation3 + $0x8] sm:$0xff]  ;;  %6177 = vmatprep.subr.bf16.mxu0 %v6725_v35  ;;  %v1860_v22 = vrot.slane %v1681_v57, 2 }
 0x5af   :  { %5751 = vmatprep.mubr.msk.f32.mxu0 %vm57_vm1, %v1679_v51  ;;  %v1857_v53 = vrot.slane %v1679_v51, 2  ;;  %v1858_v54 = vrot.slane %v1680_v23, 2  ;;  %v2734_v51 = vsel %vm57_vm1, %v7099_v45, 0.0 }
 0x5b0   :  { %5752 = vmatmul.mubr.msk.f32.vlgmr.msra.gmra.mrb[8].mxu0 %vm57_vm1, %v1680_v23 }
 0x5b1   :  { %6179 = vmatpush3.bf16.msra.mxu0 %v6725_v35  ;;  %v1859_v58 = vsel %vm244_vm4, %v1857_v53, %v1858_v54  ;;  %v1861_v32 = vsel %vm244_vm4, %v1858_v54, %v1860_v22 }
 0x5b2   :  { %5762 = vmatprep.mubr.msk.f32.mxu0 %vm57_vm1, %v1859_v58  ;;  %6181 = vmatprep.subr.bf16.mxu0 %v6735_v40 }
 0x5b5   :  { %6183 = vmatpush3.bf16.msra.mxu0 %v6735_v40 }
 0x5b6   :  { %6213 = vmatprep.subr.bf16.mxu0 %v6846_v33 }
 0x5b8   :  { %5763 = vmatmul.mubr.msk.f32.vlgmr.msra.gmra.mrb[8].mxu0 %vm57_vm1, %v1861_v32 }
 0x5b9   :  { %6215 = vmatpush3.bf16.msra.mxu0 %v6846_v33 }
 0x5ba   :  { %6217 = vmatprep.subr.bf16.mxu0 %v6858_v42 }
 0x68b   :  { %v5764_v35 = vpop.f32.mrb[8].mxu0 }
 0x68c   :  { %v1932_v61 = vpop.f32.mrb[9].mxu0 }
 0x68d   :  { %6482 = vtanh.f32 %v1932_v61 }
 0x68e   :  { %6484 = vtanh.f32 %v5764_v35 }
 0x697   :  { %v6483_v63 = vpop.eup %6482 }
 0x698   :  { %v6485_v3 = vpop.eup %6484  ;;  %5769 = vmatprep.mubr.msk.f32.mxu1 %vm62_vm5, %v6483_v63 }
 0x699   :  { %5770 = vmatmul.mubr.msk.f32.vlgmr.msra.gmra.mrb[8].mxu1 %vm62_vm5, %v6485_v3 }
 0x69a   :  { %6191 = vmatpush3.bf16.msra.mxu1 %v6768_v56 }
 0x69b   :  { %6193 = vmatprep.subr.bf16.mxu1 %v6778_v59 }
 0x69e   :  { %6195 = vmatpush3.bf16.msra.mxu1 %v6778_v59 }
 0x69f   :  { %6197 = vmatprep.subr.bf16.mxu1 %v6788_v62 }
 0x76c   :  { %v5771_v40 = vpop.f32.mrb[8].mxu1 }
 0x76d   :  { %v2029_v33 = vadd.f32 %v5771_v40, %v1674_v44  ;;  %v2019_v7 = vpop.f32.mrb[9].mxu1  ;;  %v7096_v44 = vadd.f32 %v6976_v19, %v5149_v43  ;;  %v2754_v19 = vsel %vm57_vm1, %v7105_v50, 0.0 }
 0x76e   :  { %v2028_v8 = vadd.f32 %v2019_v7, %v1673_v47  ;;  %v7102_v47 = vadd.f32 %v6980_v41, %v5149_v43 }
 0x76f   :  { %6486 = vtanh.f32 %v2029_v33  ;;  %v2735_v49 = vsel %vm57_vm1, %v7096_v44, 0.0 }
 0x770   :  { %6488 = vtanh.f32 %v2028_v8  ;;  %v2755_v23 = vsel %vm57_vm1, %v7102_v47, 0.0  ;;  %v2736_v39 = vadd.f32 %v2735_v49, %v2734_v51 }
 0x771   :  { %v2756_v53 = vadd.f32 %v2755_v23, %v2754_v19 }
 0x772   :  { %v2737_v54 = vrot.slane %v2736_v39, 4 }
 0x773   :  { %v2757_v41 = vrot.slane %v2756_v53, 4 }
 0x774   :  { %v2738_v58 = vadd.f32 %v2737_v54, %v2736_v39 }
 0x775   :  { %v2758_v35 = vadd.f32 %v2757_v41, %v2756_v53 }
 0x776   :  { %v2739_v7 = vrot.slane %v2738_v58, 2 }
 0x779   :  { %v6487_v9 = vpop.eup %6486 }
 0x77a   :  { %v6489_v10 = vpop.eup %6488  ;;  %2033 = vst.msk [vmem:[#allocation3 + $0x9] sm:$0xff] %vm57_vm1, %v6487_v9 }
 0x77b   :  { %2032 = vst.msk [vmem:[#allocation3 + $0x1] sm:$0xff] %vm57_vm1, %v6489_v10  ;;  %5780 = vmatprep.mubr.msk.f32.mxu1 %vm57_vm1, %v6489_v10 }
 0x77c   :  { %5781 = vmatmul.mubr.msk.f32.vlgmr.msra.gmra.mrb[10].mxu1 %vm57_vm1, %v6487_v9 }
 0x77d   :  { %6199 = vmatpush3.bf16.msra.mxu1 %v6788_v62 }
 0x77e   :  { %6201 = vmatprep.subr.bf16.mxu1 %v6806_v11 }
 0x781   :  { %6203 = vmatpush3.bf16.msra.mxu1 %v6806_v11  ;;  %v2036_v15 = vld [vmem:[#allocation3 + $0x10] sm:$0x3] }
 0x782   :  { %v2034_v56 = vld [vmem:[#allocation3] sm:$0xff]  ;;  %v2035_v59 = vld [vmem:[#allocation3 + $0x8] sm:$0xff]  ;;  %6205 = vmatprep.subr.bf16.mxu1 %v6819_v14  ;;  %v2215_v62 = vrot.slane %v2036_v15, 2  ;;  %v2740_v15 = vadd.f32 %v2739_v7, %v2738_v58 }
 0x783   :  { %5791 = vmatprep.mubr.msk.f32.mxu1 %vm57_vm1, %v2034_v56  ;;  %v2212_v12 = vrot.slane %v2034_v56, 2  ;;  %v2213_v13 = vrot.slane %v2035_v59, 2  ;;  %v2759_v56 = vrot.slane %v2758_v35, 2 }
 0x784   :  { %5792 = vmatmul.mubr.msk.f32.vlgmr.msra.gmra.mrb[10].mxu1 %vm57_vm1, %v2035_v59 }
 0x785   :  { %6207 = vmatpush3.bf16.msra.mxu1 %v6819_v14  ;;  %v2214_v2 = vsel %vm244_vm4, %v2212_v12, %v2213_v13  ;;  %v2216_v11 = vsel %vm244_vm4, %v2213_v13, %v2215_v62 }
 0x786   :  { %5802 = vmatprep.mubr.msk.f32.mxu1 %vm57_vm1, %v2214_v2  ;;  %6209 = vmatprep.subr.bf16.mxu1 %v6829_v21 }
 0x789   :  { %6211 = vmatpush3.bf16.msra.mxu1 %v6829_v21 }
 0x78a   :  { %6233 = vmatprep.subr.bf16.mxu1 %v6870_v46 }
 0x78c   :  { %5803 = vmatmul.mubr.msk.f32.vlgmr.msra.gmra.mrb[10].mxu1 %vm57_vm1, %v2216_v11  ;;  %v2760_v11 = vadd.f32 %v2759_v56, %v2758_v35 }
 0x78d   :  { %6235 = vmatpush3.bf16.msra.mxu1 %v6870_v46 }
 0x78e   :  { %6237 = vmatprep.subr.bf16.mxu1 %v6888_v52 }
 0x791   :  { %6239 = vmatpush3.bf16.msra.mxu1 %v6888_v52 }
 0x792   :  { %6241 = vmatprep.subr.bf16.mxu1 %v6907_v60 }
 0x85f   :  { %v5804_v14 = vpop.f32.mrb[10].mxu1 }
 0x860   :  { %v2287_v6 = vpop.f32.mrb[11].mxu1 }
 0x861   :  { %6490 = vtanh.f32 %v2287_v6 }
 0x862   :  { %6492 = vtanh.f32 %v5804_v14 }
 0x86b   :  { %v6491_v17 = vpop.eup %6490 }
 0x86c   :  { %v6493_v21 = vpop.eup %6492  ;;  %5809 = vmatprep.mubr.msk.f32.mxu0 %vm62_vm5, %v6491_v17  ;;  %v2741_v17 = vrot.slane %v2740_v15, 1 }
 0x86d   :  { %5810 = vmatmul.mubr.msk.f32.vlgmr.msra.gmra.mrb[10].mxu0 %vm62_vm5, %v6493_v21 }
 0x86e   :  { %6219 = vmatpush3.bf16.msra.mxu0 %v6858_v42 }
 0x86f   :  { %6221 = vmatprep.subr.bf16.mxu0 %v6876_v48 }
 0x872   :  { %6223 = vmatpush3.bf16.msra.mxu0 %v6876_v48 }
 0x873   :  { %6225 = vmatprep.subr.bf16.mxu0 %v6896_v55 }
 0x940   :  { %v5811_v46 = vpop.f32.mrb[10].mxu0 }
 0x941   :  { %v2384_v52 = vadd.f32 %v5811_v46, %v2029_v33  ;;  %v2374_v18 = vpop.f32.mrb[11].mxu0 }
 0x942   :  { %v2383_v20 = vadd.f32 %v2374_v18, %v2028_v8 }
 0x943   :  { %6494 = vtanh.f32 %v2384_v52  ;;  %v2761_v52 = vrot.slane %v2760_v11, 1 }
 0x944   :  { %6496 = vtanh.f32 %v2383_v20 }
 0x94d   :  { %v6495_v25 = vpop.eup %6494 }
 0x94e   :  { %v6497_v26 = vpop.eup %6496  ;;  %2388 = vst.msk [vmem:[#allocation3 + $0x9] sm:$0xff] %vm57_vm1, %v6495_v25 }
 0x94f   :  { %2387 = vst.msk [vmem:[#allocation3 + $0x1] sm:$0xff] %vm57_vm1, %v6497_v26 }
 0x955   :  { %v2391_v27 = vld [vmem:[#allocation3 + $0x10] sm:$0x3] }
 0x956   :  { %v2389_v42 = vld [vmem:[#allocation3] sm:$0xff]  ;;  %v2390_v28 = vld [vmem:[#allocation3 + $0x8] sm:$0xff]  ;;  %v2576_v29 = vrot.slane %v2391_v27, 2 }
 0x957   :  { %5820 = vmatprep.mubr.msk.f32.mxu0 %vm57_vm1, %v2389_v42  ;;  %v2573_v48 = vrot.slane %v2389_v42, 2  ;;  %v2574_v31 = vrot.slane %v2390_v28, 2  ;;  %v2762_v42 = vadd.f32 %v2761_v52, %v2760_v11 }
 0x958   :  { %5821 = vmatmul.mubr.msk.f32.vlgmr.msra.gmra.mrb[12].mxu0 %vm57_vm1, %v2390_v28 }
 0x959   :  { %6227 = vmatpush3.bf16.msra.mxu0 %v6896_v55  ;;  %5831 = vmatprep.mubr.msk.f32.mxu0 %vm57_vm1, %v6497_v26  ;;  %v2575_v34 = vsel %vm244_vm4, %v2573_v48, %v2574_v31  ;;  %v2577_v36 = vsel %vm244_vm4, %v2574_v31, %v2576_v29  ;;  %v5226_v55 = vld [vmem:[%s7479_s9 + $0x20] sm:$0xff] }
 0x95a   :  { %5842 = vmatprep.mubr.msk.f32.mxu1 %vm57_vm1, %v2575_v34  ;;  %6229 = vmatprep.subr.bf16.mxu0 %v6931_v24 }
 0x95b   :  { %5843 = vmatmul.mubr.msk.f32.vlgmr.msra.gmra.mrb[12].mxu1 %vm57_vm1, %v2577_v36 }
 0x95c   :  { %6243 = vmatpush3.bf16.msra.mxu1 %v6907_v60  ;;  %5853 = vmatprep.mubr.msk.f32.mxu1 %vm57_vm1, %v6497_v26  ;;  %v5227_v60 = vld [vmem:[%s7479_s9 + $0x28] sm:$0xff] }
 0x95d   :  { %6231 = vmatpush3.bf16.msra.mxu0 %v6931_v24  ;;  %6245 = vmatprep.subr.bf16.mxu1 %v6942_v30  ;;  %v7064_v0 = vpack.c.bf16 %v5227_v60, %v5226_v55  ;;  %v5228_v24 = vld [vmem:[%s7479_s9 + $0x30] sm:$0xff] }
 0x95f   :  { %6249 = vmatprep.subr.bf16.mxu0 %v7064_v0 }
 0x960   :  { %5832 = vmatmul.mubr.msk.f32.vlgmr.msra.gmra.mrb[12].mxu0 %vm57_vm1, %v6495_v25  ;;  %6247 = vmatpush3.bf16.msra.mxu1 %v6942_v30  ;;  %v5229_v30 = vld [vmem:[%s7479_s9 + $0x38] sm:$0xff] }
 0x961   :  { %6273 = vmatprep.subr.bf16.mxu1 %v7064_v0  ;;  %6251 = vmatpush3.bf16.msra.mxu0 %v7064_v0  ;;  %v7076_v37 = vpack.c.bf16 %v5229_v30, %v5228_v24 }
 0x963   :  { %5854 = vmatmul.mubr.msk.f32.vlgmr.msra.gmra.mrb[12].mxu1 %vm57_vm1, %v6495_v25  ;;  %6253 = vmatprep.subr.bf16.mxu0 %v7076_v37  ;;  %v2742_v25 = vadd.f32 %v2741_v17, %v2740_v15 }
 0x964   :  { %6275 = vmatpush3.bf16.msra.mxu1 %v7064_v0 }
 0x965   :  { %6277 = vmatprep.subr.bf16.mxu1 %v7076_v37  ;;  %6255 = vmatpush3.bf16.msra.mxu0 %v7076_v37 }
 0x966   :  { %6257 = vmatprep.subr.bf16.mxu0 %v7088_v16 }
 0x968   :  { %6279 = vmatpush3.bf16.msra.mxu1 %v7076_v37 }
 0x969   :  { %6281 = vmatprep.subr.bf16.mxu1 %v7088_v16 }
 0xa33   :  { %v5833_v57 = vpop.f32.mrb[12].mxu0 }
 0xa34   :  { %v7115_v5 = vadd.f32 %v5833_v57, %v5149_v43  ;;  %v2553_v22 = vpop.f32.mrb[13].mxu0 }
 0xa35   :  { %v7117_v32 = vadd.f32 %v5149_v43, %v2553_v22 }
 0xa36   :  { %v2745_v61 = vsel %vm57_vm1, %v7115_v5, 0.0  ;;  %v5855_v63 = vpop.f32.mrb[12].mxu1 }
 0xa37   :  { %v2744_v3 = vsel %vm57_vm1, %v7117_v32, 0.0  ;;  %v7123_v40 = vadd.f32 %v5855_v63, %v5149_v43  ;;  %v2723_v33 = vpop.f32.mrb[13].mxu1 }
 0xa38   :  { %v2746_v8 = vadd.f32 %v2745_v61, %v2744_v3  ;;  %v7125_v9 = vadd.f32 %v5149_v43, %v2723_v33 }
 0xa39   :  { %v2765_v10 = vsel %vm57_vm1, %v7123_v40, 0.0 }
 0xa3a   :  { %v2747_v59 = vrot.slane %v2746_v8, 4  ;;  %v2764_v12 = vsel %vm57_vm1, %v7125_v9, 0.0 }
 0xa3b   :  { %v2766_v13 = vadd.f32 %v2765_v10, %v2764_v12 }
 0xa3c   :  { %v2748_v2 = vadd.f32 %v2747_v59, %v2746_v8 }
 0xa3d   :  { %v2767_v62 = vrot.slane %v2766_v13, 4 }
 0xa3e   :  { %v2749_v14 = vrot.slane %v2748_v2, 2 }
 0xa3f   :  { %v2768_v6 = vadd.f32 %v2767_v62, %v2766_v13 }
 0xa40   :  { %v2750_v21 = vadd.f32 %v2749_v14, %v2748_v2 }
 0xa41   :  { %v2769_v46 = vrot.slane %v2768_v6, 2 }
 0xa42   :  { %v2751_v18 = vrot.slane %v2750_v21, 1 }
 0xa43   :  { %v2770_v20 = vadd.f32 %v2769_v46, %v2768_v6 }
 0xa44   :  { %v2752_v26 = vadd.f32 %v2751_v18, %v2750_v21 }
 0xa45   :  { %v2771_v27 = vrot.slane %v2770_v20, 1 }
 0xa46   :  { %v2753_v28 = vadd.f32 %v2752_v26, %v2742_v25 }
 0xa47   :  { %v2772_v29 = vadd.f32 %v2771_v27, %v2770_v20 }
 0xa48   :  { %v2763_v48 = vadd.f32 %v2762_v42, %v2753_v28 }
 0xa4a   :  { %v2773_v31 = vadd.f32 %v2772_v29, %v2763_v48 }
 0xa4c   :  { %v7131_v34 = vmul.f32 0.015625, %v2773_v31 }
 0xa4e   :  { %v2776_v36 = vsub.f32 %v7099_v45, %v7131_v34  ;;  %v2777_v55 = vsub.f32 %v7096_v44, %v7131_v34  ;;  %v2790_v60 = vsub.f32 %v7117_v32, %v7131_v34  ;;  %v2791_v24 = vsub.f32 %v7115_v5, %v7131_v34 }
 0xa4f   :  { %v2804_v30 = vsub.f32 %v7105_v50, %v7131_v34  ;;  %v2805_v38 = vsub.f32 %v7102_v47, %v7131_v34  ;;  %v2818_v4 = vsub.f32 %v7125_v9, %v7131_v34  ;;  %v2819_v43 = vsub.f32 %v7123_v40, %v7131_v34 }
 0xa50   :  { %v2778_v49 = vmul.f32 %v2776_v36, %v2776_v36  ;;  %v2779_v51 = vmul.f32 %v2777_v55, %v2777_v55  ;;  %v2792_v23 = vmul.f32 %v2790_v60, %v2790_v60  ;;  %v2793_v19 = vmul.f32 %v2791_v24, %v2791_v24 }
 0xa51   :  { %v2806_v39 = vmul.f32 %v2804_v30, %v2804_v30  ;;  %v2807_v53 = vmul.f32 %v2805_v38, %v2805_v38  ;;  %v2820_v54 = vmul.f32 %v2818_v4, %v2818_v4  ;;  %v2821_v41 = vmul.f32 %v2819_v43, %v2819_v43 }
 0xa52   :  { %v2780_v57 = vsel %vm57_vm1, %v2778_v49, 0.0  ;;  %v2781_v58 = vsel %vm57_vm1, %v2779_v51, 0.0  ;;  %v2794_v22 = vsel %vm57_vm1, %v2792_v23, 0.0  ;;  %v2795_v35 = vsel %vm57_vm1, %v2793_v19, 0.0  ;;  %v2833_v49 = vld [vmem:[%s7481_s7] sm:$0x1] }
 0xa53   :  { %v2782_v61 = vadd.f32 %v2781_v58, %v2780_v57  ;;  %v2796_v63 = vadd.f32 %v2795_v35, %v2794_v22  ;;  %v2808_v3 = vsel %vm57_vm1, %v2806_v39, 0.0  ;;  %v2809_v33 = vsel %vm57_vm1, %v2807_v53, 0.0  ;;  %v2837_v39 = vld [vmem:[%s7482_s8] sm:$0x1] }
 0xa54   :  { %v2810_v7 = vadd.f32 %v2809_v33, %v2808_v3  ;;  %v2822_v8 = vsel %vm57_vm1, %v2820_v54, 0.0  ;;  %v2823_v10 = vsel %vm57_vm1, %v2821_v41, 0.0  ;;  %v2842_v4 = vlaneseq }
 0xa55   :  { %v2783_v56 = vrot.slane %v2782_v61, 4  ;;  %v2797_v59 = vrot.slane %v2796_v63, 4  ;;  %v2824_v12 = vadd.f32 %v2823_v10, %v2822_v8 }
 0xa56   :  { %v2811_v13 = vrot.slane %v2810_v7, 4  ;;  %v2843_v43 = vshrl.u32 %v2842_v4, 7 }
 0xa57   :  { %v2784_v15 = vadd.f32 %v2783_v56, %v2782_v61  ;;  %v2798_v2 = vadd.f32 %v2797_v59, %v2796_v63  ;;  %v2825_v62 = vrot.slane %v2824_v12, 4 }
 0xa58   :  { %v2812_v11 = vadd.f32 %v2811_v13, %v2810_v7  ;;  %v7160_v51 = vsub.s32 0, %v2843_v43  ;;  %v5235_v13 = vld [vmem:[%s7479_s9 + $0x48] sm:$0xff]  ;;  %v5267_v43 = vld [vmem:[%s7483_s13 + $0x10] sm:$0xff] }
 0xa59   :  { %v2785_v14 = vrot.slane %v2784_v15, 2  ;;  %v2799_v6 = vrot.slane %v2798_v2, 2  ;;  %v2826_v17 = vadd.f32 %v2825_v62, %v2824_v12  ;;  %v5234_v12 = vld [vmem:[%s7479_s9 + $0x40] sm:$0xff] }
 0xa5a   :  { %v2813_v21 = vrot.slane %v2812_v11, 2 }
 0xa5b   :  { %v2786_v46 = vadd.f32 %v2785_v14, %v2784_v15  ;;  %v2800_v52 = vadd.f32 %v2799_v6, %v2798_v2  ;;  %v2827_v18 = vrot.slane %v2826_v17, 2  ;;  %v7202_v2 = vpack.c.bf16 %v5235_v13, %v5234_v12 }
 0xa5c   :  { %v2814_v20 = vadd.f32 %v2813_v21, %v2812_v11  ;;  %v5236_v11 = vld [vmem:[%s7479_s9 + $0x50] sm:$0xff] }
 0xa5d   :  { %v2787_v25 = vrot.slane %v2786_v46, 1  ;;  %v2801_v26 = vrot.slane %v2800_v52, 1  ;;  %v2828_v27 = vadd.f32 %v2827_v18, %v2826_v17 }
 0xa5e   :  { %v2815_v42 = vrot.slane %v2814_v20, 1 }
 0xa5f   :  { %v2788_v28 = vadd.f32 %v2787_v25, %v2786_v46  ;;  %v2802_v29 = vadd.f32 %v2801_v26, %v2800_v52  ;;  %v2829_v48 = vrot.slane %v2828_v27, 1 }
 0xa60   :  { %v2816_v36 = vadd.f32 %v2815_v42, %v2814_v20 }
 0xa61   :  { %v2803_v31 = vadd.f32 %v2802_v29, %v2788_v28  ;;  %v2830_v60 = vadd.f32 %v2829_v48, %v2828_v27 }
 0xa63   :  { %v2817_v55 = vadd.f32 %v2816_v36, %v2803_v31 }
 0xa65   :  { %v2831_v24 = vadd.f32 %v2830_v60, %v2817_v55 }
 0xa67   :  { %v2832_v30 = vmul.f32 0.015625, %v2831_v24 }
 0xa69   :  { %v2834_v38 = vadd.f32 1e-05, %v2832_v30 }
 0xa6b   :  { %6498 = vrsqrt.f32 %v2834_v38 }
 0xa75   :  { %v6499_v23 = vpop.eup %6498 }
 0xa76   :  { %v2836_v19 = vmul.f32 %v6499_v23, %v2833_v49  ;;  %v5268_v49 = vld [vmem:[%s7483_s13 + $0x18] sm:$0xff] }
 0xa77   :  { %v7285_v23 = vpack.c.bf16 %v5268_v49, %v5267_v43 }
 0xa78   :  { %v2838_v53 = vmul.f32 %v2836_v19, %v7131_v34  ;;  %v2845_v54 = vrot.slane %v2836_v19, %v7160_v51  ;;  %v4042_v19 = vld [vmem:[%s7483_s13] sm:$0xff] }
 0xa7a   :  { %v2839_v41 = vsub.f32 %v2837_v39, %v2838_v53  ;;  %v2860_v58 = vmul.f32 %v2845_v54, %v7102_v47  ;;  %v2848_v22 = vmul.f32 %v2845_v54, %v7096_v44  ;;  %v2847_v61 = vmul.f32 %v2845_v54, %v7099_v45  ;;  %v2876_v44 = vld [vmem:[%s7479_s9 + $0x10] sm:$0xff]  ;;  %v2877_v45 = vld [vmem:[%s7479_s9 + $0x18] sm:$0xff]  ;;  %v4043_v39 = vld [vmem:[%s7483_s13 + $0x8] sm:$0xff] }
 0xa7b   :  { %v2859_v3 = vmul.f32 %v2845_v54, %v7105_v50  ;;  %v3388_v8 = vmul.f32 %v2845_v54, %v7125_v9  ;;  %v3389_v56 = vmul.f32 %v2845_v54, %v7123_v40  ;;  %v7185_v59 = vpack.c.bf16 %v2877_v45, %v2876_v44 }
 0xa7c   :  { %v2853_v57 = vrot.slane %v2839_v41, %v7160_v51  ;;  %v3382_v9 = vmul.f32 %v2845_v54, %v7117_v32  ;;  %v5237_v32 = vld [vmem:[%s7479_s9 + $0x58] sm:$0xff]  ;;  %v3383_v14 = vmul.f32 %v2845_v54, %v7115_v5  ;;  %v7298_v53 = vpack.c.bf16 %v4043_v39, %v4042_v19 }
 0xa7d   :  { %v7217_v21 = vpack.c.bf16 %v5237_v32, %v5236_v11 }
 0xa7e   :  { %v2862_v35 = vadd.f32 %v2860_v58, %v2853_v57  ;;  %v2856_v63 = vadd.f32 %v2853_v57, %v2848_v22  ;;  %v2855_v33 = vadd.f32 %v2853_v57, %v2847_v61  ;;  %v2861_v7 = vadd.f32 %v2859_v3, %v2853_v57 }
 0xa7f   :  { %v3390_v15 = vadd.f32 %v3388_v8, %v2853_v57  ;;  %v3391_v40 = vadd.f32 %v3389_v56, %v2853_v57  ;;  %v3384_v62 = vadd.f32 %v3382_v9, %v2853_v57  ;;  %v3385_v46 = vadd.f32 %v3383_v14, %v2853_v57 }
 0xa80   :  { %6500 = vtanh.f32 %v2862_v35 }
 0xa81   :  { %6502 = vtanh.f32 %v2856_v63 }
 0xa82   :  { %6504 = vtanh.f32 %v2855_v33 }
 0xa83   :  { %6506 = vtanh.f32 %v2861_v7 }
 0xa84   :  { %6508 = vtanh.f32 %v3390_v15 }
 0xa85   :  { %6510 = vtanh.f32 %v3391_v40 }
 0xa86   :  { %6512 = vtanh.f32 %v3384_v62 }
 0xa87   :  { %6514 = vtanh.f32 %v3385_v46 }
 0xa8a   :  { %v7172_v34 = vpop.eup %6500 }
 0xa8b   :  { %2866 = vst.msk [vmem:[#allocation3 + $0x9] sm:$0xff] %vm57_vm1, %v7172_v34  ;;  %v6503_v47 = vpop.eup %6502 }
 0xa8c   :  { %v6505_v50 = vpop.eup %6504 }
 0xa8d   :  { %v6507_v10 = vpop.eup %6506  ;;  %5864 = vmatprep.mubr.msk.f32.mxu0 %vm57_vm1, %v6505_v50 }
 0xa8e   :  { %5897 = vmatprep.mubr.msk.f32.mxu1 %vm57_vm1, %v6507_v10  ;;  %2865 = vst.msk [vmem:[#allocation3 + $0x1] sm:$0xff] %vm57_vm1, %v6507_v10  ;;  %5865 = vmatmul.mubr.msk.f32.vlgmr.msra.gmra.mrb[14].mxu0 %vm57_vm1, %v6503_v47  ;;  %v6509_v5 = vpop.eup %6508 }
 0xa8f   :  { %6259 = vmatpush3.bf16.msra.mxu0 %v7088_v16  ;;  %5898 = vmatmul.mubr.msk.f32.vlgmr.msra.gmra.mrb[14].mxu1 %vm57_vm1, %v7172_v34  ;;  %v6511_v52 = vpop.eup %6510 }
 0xa90   :  { %6283 = vmatpush3.bf16.msra.mxu1 %v7088_v16  ;;  %5908 = vmatprep.mubr.msk.f32.mxu1 %vm57_vm1, %v6505_v50  ;;  %v6513_v28 = vpop.eup %6512 }
 0xa91   :  { %6261 = vmatprep.subr.bf16.mxu0 %v7185_v59  ;;  %6285 = vmatprep.subr.bf16.mxu1 %v7185_v59  ;;  %v6515_v31 = vpop.eup %6514 }
 0xa93   :  { %6263 = vmatpush3.bf16.msra.mxu0 %v7185_v59 }
 0xa94   :  { %6287 = vmatpush3.bf16.msra.mxu1 %v7185_v59  ;;  %6265 = vmatprep.subr.bf16.mxu0 %v7202_v2 }
 0xa95   :  { %v2867_v6 = vld [vmem:[#allocation3] sm:$0xff]  ;;  %v2868_v17 = vld [vmem:[#allocation3 + $0x8] sm:$0xff]  ;;  %6289 = vmatprep.subr.bf16.mxu1 %v7202_v2 }
 0xa96   :  { %5875 = vmatprep.mubr.msk.f32.mxu0 %vm57_vm1, %v2867_v6  ;;  %2869 = vst.msk [vmem:[#allocation3 + $0x1] sm:$0xff] %vm57_vm1, %v6505_v50  ;;  %2870 = vst.msk [vmem:[#allocation3 + $0x9] sm:$0xff] %vm57_vm1, %v6503_v47 }
 0xa97   :  { %5876 = vmatmul.mubr.msk.f32.vlgmr.msra.gmra.mrb[14].mxu0 %vm57_vm1, %v2868_v17  ;;  %5909 = vmatmul.mubr.msk.f32.vlgmr.msra.gmra.mrb[14].mxu1 %vm57_vm1, %v6503_v47 }
 0xa98   :  { %6267 = vmatpush3.bf16.msra.mxu0 %v7202_v2  ;;  %5886 = vmatprep.mubr.msk.f32.mxu0 %vm57_vm1, %v6507_v10 }
 0xa99   :  { %6269 = vmatprep.subr.bf16.mxu0 %v7217_v21  ;;  %6291 = vmatpush3.bf16.msra.mxu1 %v7202_v2 }
 0xa9a   :  { %6293 = vmatprep.subr.bf16.mxu1 %v7217_v21 }
 0xa9c   :  { %6271 = vmatpush3.bf16.msra.mxu0 %v7217_v21 }
 0xa9d   :  { %6295 = vmatpush3.bf16.msra.mxu1 %v7217_v21  ;;  %6297 = vmatprep.subr.bf16.mxu0 %v7064_v0  ;;  %v2871_v18 = vld [vmem:[#allocation3] sm:$0xff]  ;;  %v2872_v20 = vld [vmem:[#allocation3 + $0x8] sm:$0xff]  ;;  %v2873_v25 = vld [vmem:[#allocation3 + $0x10] sm:$0x3] }
 0xa9e   :  { %v3294_v26 = vrot.slane %v2871_v18, 2  ;;  %v3295_v27 = vrot.slane %v2872_v20, 2  ;;  %3394 = vst.msk [vmem:[#allocation3 + $0x1] sm:$0xff] %vm57_vm1, %v6509_v5  ;;  %6321 = vmatprep.subr.bf16.mxu1 %v7064_v0  ;;  %v3297_v42 = vrot.slane %v2873_v25, 2  ;;  %3395 = vst.msk [vmem:[#allocation3 + $0x9] sm:$0xff] %vm57_vm1, %v6511_v52 }
 0xa9f   :  { %5887 = vmatmul.mubr.msk.f32.vlgmr.msra.gmra.mrb[14].mxu0 %vm57_vm1, %v7172_v34 }
 0xaa0   :  { %6299 = vmatpush3.bf16.msra.mxu0 %v7064_v0  ;;  %5930 = vmatprep.mubr.msk.f32.mxu0 %vm57_vm1, %v6513_v28  ;;  %v3296_v29 = vsel %vm244_vm4, %v3294_v26, %v3295_v27  ;;  %v3298_v48 = vsel %vm244_vm4, %v3295_v27, %v3297_v42 }
 0xaa1   :  { %5919 = vmatprep.mubr.msk.f32.mxu1 %vm57_vm1, %v3296_v29  ;;  %6301 = vmatprep.subr.bf16.mxu0 %v7076_v37 }
 0xaa2   :  { %5920 = vmatmul.mubr.msk.f32.vlgmr.msra.gmra.mrb[14].mxu1 %vm57_vm1, %v3298_v48 }
 0xaa3   :  { %6323 = vmatpush3.bf16.msra.mxu1 %v7064_v0  ;;  %5963 = vmatprep.mubr.msk.f32.mxu1 %vm57_vm1, %v6509_v5 }
 0xaa4   :  { %6303 = vmatpush3.bf16.msra.mxu0 %v7076_v37  ;;  %6325 = vmatprep.subr.bf16.mxu1 %v7076_v37 }
 0xaa5   :  { %6305 = vmatprep.subr.bf16.mxu0 %v7088_v16  ;;  %v3396_v36 = vld [vmem:[#allocation3] sm:$0xff]  ;;  %v3397_v55 = vld [vmem:[#allocation3 + $0x8] sm:$0xff] }
 0xaa6   :  { %3398 = vst.msk [vmem:[#allocation3 + $0x1] sm:$0xff] %vm57_vm1, %v6513_v28  ;;  %3399 = vst.msk [vmem:[#allocation3 + $0x9] sm:$0xff] %vm57_vm1, %v6515_v31 }
 0xaa7   :  { %5931 = vmatmul.mubr.msk.f32.vlgmr.msra.gmra.mrb[16].mxu0 %vm57_vm1, %v6515_v31  ;;  %6327 = vmatpush3.bf16.msra.mxu1 %v7076_v37 }
 0xaa8   :  { %6307 = vmatpush3.bf16.msra.mxu0 %v7088_v16  ;;  %5941 = vmatprep.mubr.msk.f32.mxu0 %vm57_vm1, %v3396_v36 }
 0xaa9   :  { %6329 = vmatprep.subr.bf16.mxu1 %v7088_v16  ;;  %6309 = vmatprep.subr.bf16.mxu0 %v7185_v59 }
 0xaaa   :  { %5964 = vmatmul.mubr.msk.f32.vlgmr.msra.gmra.mrb[16].mxu1 %vm57_vm1, %v6511_v52 }
 0xaab   :  { %6331 = vmatpush3.bf16.msra.mxu1 %v7088_v16  ;;  %5974 = vmatprep.mubr.msk.f32.mxu1 %vm57_vm1, %v6513_v28 }
 0xaac   :  { %6311 = vmatpush3.bf16.msra.mxu0 %v7185_v59  ;;  %6333 = vmatprep.subr.bf16.mxu1 %v7185_v59 }
 0xaad   :  { %6313 = vmatprep.subr.bf16.mxu0 %v7202_v2  ;;  %v3400_v0 = vld [vmem:[#allocation3] sm:$0xff]  ;;  %v3401_v37 = vld [vmem:[#allocation3 + $0x8] sm:$0xff]  ;;  %v3402_v30 = vld [vmem:[#allocation3 + $0x10] sm:$0x3] }
 0xaae   :  { %v3815_v60 = vrot.slane %v3400_v0, 2  ;;  %v3816_v24 = vrot.slane %v3401_v37, 2  ;;  %v3818_v38 = vrot.slane %v3402_v30, 2 }
 0xaaf   :  { %5942 = vmatmul.mubr.msk.f32.vlgmr.msra.gmra.mrb[16].mxu0 %vm57_vm1, %v3397_v55  ;;  %6335 = vmatpush3.bf16.msra.mxu1 %v7185_v59 }
 0xab0   :  { %6315 = vmatpush3.bf16.msra.mxu0 %v7202_v2  ;;  %5952 = vmatprep.mubr.msk.f32.mxu0 %vm57_vm1, %v6509_v5  ;;  %v3817_v16 = vsel %vm244_vm4, %v3815_v60, %v3816_v24  ;;  %v3819_v4 = vsel %vm244_vm4, %v3816_v24, %v3818_v38  ;;  %v20_v5 = vstv %s7485_s14 }
 0xab1   :  { %6337 = vmatprep.subr.bf16.mxu1 %v7202_v2  ;;  %6317 = vmatprep.subr.bf16.mxu0 %v7217_v21  ;;  %21 = vst [vmem:[#allocation5] sm:$0x1] %v20_v5 }
 0xab2   :  { %5975 = vmatmul.mubr.msk.f32.vlgmr.msra.gmra.mrb[16].mxu1 %vm57_vm1, %v6515_v31 }
 0xab3   :  { %6339 = vmatpush3.bf16.msra.mxu1 %v7202_v2  ;;  %5985 = vmatprep.mubr.msk.f32.mxu1 %vm57_vm1, %v3817_v16 }
 0xab4   :  { %6319 = vmatpush3.bf16.msra.mxu0 %v7217_v21  ;;  %6341 = vmatprep.subr.bf16.mxu1 %v7217_v21 }
 0xab5   :  { %6345 = vmatprep.subr.bf16.mxu0 %v7285_v23 }
 0xab7   :  { %5953 = vmatmul.mubr.msk.f32.vlgmr.msra.gmra.mrb[16].mxu0 %vm57_vm1, %v6511_v52  ;;  %6343 = vmatpush3.bf16.msra.mxu1 %v7217_v21 }
 0xab8   :  { %6357 = vmatprep.subr.bf16.mxu1 %v7285_v23  ;;  %6347 = vmatpush3.bf16.msra.mxu0 %v7285_v23 }
 0xab9   :  { %6349 = vmatprep.subr.bf16.mxu0 %v7298_v53 }
 0xaba   :  { %5986 = vmatmul.mubr.msk.f32.vlgmr.msra.gmra.mrb[16].mxu1 %vm57_vm1, %v3819_v4 }
 0xabb   :  { %6359 = vmatpush3.bf16.msra.mxu1 %v7285_v23 }
 0xabc   :  { %6361 = vmatprep.subr.bf16.mxu1 %v7298_v53 }
 0xb72   :  { %v5888_v54 = vpop.f32.mrb[14].mxu0 }
 0xb73   :  { %v3122_v41 = vpop.f32.mrb[15].mxu0  ;;  %v7305_v22 = vadd.f32 %v5888_v54, %v5240_v1 }
 0xb74   :  { %v7307_v35 = vadd.f32 %v5240_v1, %v3122_v41 }
 0xb75   :  { %v5921_v57 = vpop.f32.mrb[14].mxu1  ;;  %v3904_v3 = vsel %vm62_vm5, %v7305_v22, 0.0 }
 0xb76   :  { %v3369_v58 = vpop.f32.mrb[15].mxu1  ;;  %v7309_v61 = vadd.f32 %v5921_v57, %v5240_v1  ;;  %v3903_v33 = vsel %vm62_vm5, %v7307_v35, 0.0 }
 0xb77   :  { %v7311_v63 = vadd.f32 %v5240_v1, %v3369_v58  ;;  %v3905_v44 = vadd.f32 %v3904_v3, %v3903_v33 }
 0xb78   :  { %v3924_v7 = vsel %vm62_vm5, %v7309_v61, 0.0 }
 0xb79   :  { %v3923_v34 = vsel %vm62_vm5, %v7311_v63, 0.0  ;;  %v3906_v47 = vrot.slane %v3905_v44, 4 }
 0xb7a   :  { %v3925_v45 = vadd.f32 %v3924_v7, %v3923_v34 }
 0xb7b   :  { %v3907_v10 = vadd.f32 %v3906_v47, %v3905_v44 }
 0xb7c   :  { %v3926_v50 = vrot.slane %v3925_v45, 4 }
 0xb7d   :  { %v3908_v11 = vrot.slane %v3907_v10, 2 }
 0xb7e   :  { %v3927_v13 = vadd.f32 %v3926_v50, %v3925_v45 }
 0xb7f   :  { %v3909_v18 = vadd.f32 %v3908_v11, %v3907_v10 }
 0xb80   :  { %v3928_v17 = vrot.slane %v3927_v13, 2 }
 0xb81   :  { %v3910_v28 = vrot.slane %v3909_v18, 1 }
 0xb82   :  { %v3929_v26 = vadd.f32 %v3928_v17, %v3927_v13 }
 0xb83   :  { %v3911_v0 = vadd.f32 %v3910_v28, %v3909_v18 }
 0xb84   :  { %v3930_v31 = vrot.slane %v3929_v26, 1 }
 0xb86   :  { %v3931_v24 = vadd.f32 %v3930_v31, %v3929_v26 }
 0xb8a   :  { %v5954_v8 = vpop.f32.mrb[16].mxu0 }
 0xb8b   :  { %v7321_v56 = vadd.f32 %v5954_v8, %v5240_v1  ;;  %v3649_v59 = vpop.f32.mrb[17].mxu0 }
 0xb8c   :  { %v7323_v12 = vadd.f32 %v5240_v1, %v3649_v59 }
 0xb8d   :  { %v3914_v15 = vsel %vm62_vm5, %v7321_v56, 0.0  ;;  %v5987_v40 = vpop.f32.mrb[16].mxu1 }
 0xb8e   :  { %v3913_v9 = vsel %vm62_vm5, %v7323_v12, 0.0  ;;  %v7329_v2 = vadd.f32 %v5987_v40, %v5240_v1  ;;  %v3890_v62 = vpop.f32.mrb[17].mxu1 }
 0xb8f   :  { %v3915_v32 = vadd.f32 %v3914_v15, %v3913_v9  ;;  %v7331_v14 = vadd.f32 %v5240_v1, %v3890_v62 }
 0xb90   :  { %v3934_v6 = vsel %vm62_vm5, %v7329_v2, 0.0 }
 0xb91   :  { %v3916_v21 = vrot.slane %v3915_v32, 4  ;;  %v3933_v46 = vsel %vm62_vm5, %v7331_v14, 0.0 }
 0xb92   :  { %v3935_v52 = vadd.f32 %v3934_v6, %v3933_v46 }
 0xb93   :  { %v3917_v20 = vadd.f32 %v3916_v21, %v3915_v32 }
 0xb94   :  { %v3936_v25 = vrot.slane %v3935_v52, 4 }
 0xb95   :  { %v3918_v27 = vrot.slane %v3917_v20, 2 }
 0xb96   :  { %v3937_v42 = vadd.f32 %v3936_v25, %v3935_v52 }
 0xb97   :  { %v3919_v29 = vadd.f32 %v3918_v27, %v3917_v20 }
 0xb98   :  { %v3938_v48 = vrot.slane %v3937_v42, 2 }
 0xb99   :  { %v3920_v36 = vrot.slane %v3919_v29, 1 }
 0xb9a   :  { %v3939_v55 = vadd.f32 %v3938_v48, %v3937_v42 }
 0xb9b   :  { %v3921_v37 = vadd.f32 %v3920_v36, %v3919_v29 }
 0xb9c   :  { %v3940_v60 = vrot.slane %v3939_v55, 1 }
 0xb9d   :  { %v3922_v16 = vadd.f32 %v3921_v37, %v3911_v0 }
 0xb9e   :  { %v3941_v30 = vadd.f32 %v3940_v60, %v3939_v55 }
 0xb9f   :  { %v3932_v38 = vadd.f32 %v3931_v24, %v3922_v16 }
 0xba1   :  { %v3942_v4 = vadd.f32 %v3941_v30, %v3932_v38 }
 0xba3   :  { %v7340_v43 = vmul.f32 0.015625, %v3942_v4 }
 0xba5   :  { %v3944_v49 = vsub.f32 %v7307_v35, %v7340_v43  ;;  %v3945_v19 = vsub.f32 %v7305_v22, %v7340_v43  ;;  %v3958_v39 = vsub.f32 %v7323_v12, %v7340_v43  ;;  %v3959_v54 = vsub.f32 %v7321_v56, %v7340_v43 }
 0xba6   :  { %v3972_v41 = vsub.f32 %v7311_v63, %v7340_v43  ;;  %v3973_v57 = vsub.f32 %v7309_v61, %v7340_v43  ;;  %v3986_v58 = vsub.f32 %v7331_v14, %v7340_v43  ;;  %v3987_v1 = vsub.f32 %v7329_v2, %v7340_v43 }
 0xba7   :  { %v3946_v3 = vmul.f32 %v3944_v49, %v3944_v49  ;;  %v3947_v33 = vmul.f32 %v3945_v19, %v3945_v19  ;;  %v3960_v7 = vmul.f32 %v3958_v39, %v3958_v39  ;;  %v3961_v34 = vmul.f32 %v3959_v54, %v3959_v54 }
 0xba8   :  { %v3974_v44 = vmul.f32 %v3972_v41, %v3972_v41  ;;  %v3975_v45 = vmul.f32 %v3973_v57, %v3973_v57  ;;  %v3988_v47 = vmul.f32 %v3986_v58, %v3986_v58  ;;  %v3989_v50 = vmul.f32 %v3987_v1, %v3987_v1  ;;  %v4001_v57 = vld [vmem:[%s7486_s11] sm:$0x1] }
 0xba9   :  { %v3948_v8 = vsel %vm62_vm5, %v3946_v3, 0.0  ;;  %v3949_v10 = vsel %vm62_vm5, %v3947_v33, 0.0  ;;  %v3962_v59 = vsel %vm62_vm5, %v3960_v7, 0.0  ;;  %v3963_v13 = vsel %vm62_vm5, %v3961_v34, 0.0  ;;  %v4005_v3 = vld [vmem:[%s7487_s12] sm:$0x1] }
 0xbaa   :  { %v3950_v15 = vadd.f32 %v3949_v10, %v3948_v8  ;;  %v3964_v40 = vadd.f32 %v3963_v13, %v3962_v59  ;;  %v3976_v9 = vsel %vm62_vm5, %v3974_v44, 0.0  ;;  %v3977_v62 = vsel %vm62_vm5, %v3975_v45, 0.0 }
 0xbab   :  { %v3978_v11 = vadd.f32 %v3977_v62, %v3976_v9  ;;  %v3990_v32 = vsel %vm62_vm5, %v3988_v47, 0.0  ;;  %v3991_v6 = vsel %vm62_vm5, %v3989_v50, 0.0 }
 0xbac   :  { %v3951_v17 = vrot.slane %v3950_v15, 4  ;;  %v3965_v21 = vrot.slane %v3964_v40, 4  ;;  %v3992_v46 = vadd.f32 %v3991_v6, %v3990_v32 }
 0xbad   :  { %v3979_v5 = vrot.slane %v3978_v11, 4 }
 0xbae   :  { %v3952_v52 = vadd.f32 %v3951_v17, %v3950_v15  ;;  %v3966_v18 = vadd.f32 %v3965_v21, %v3964_v40  ;;  %v3993_v20 = vrot.slane %v3992_v46, 4 }
 0xbaf   :  { %v3980_v25 = vadd.f32 %v3979_v5, %v3978_v11 }
 0xbb0   :  { %v3953_v26 = vrot.slane %v3952_v52, 2  ;;  %v3967_v27 = vrot.slane %v3966_v18, 2  ;;  %v3994_v42 = vadd.f32 %v3993_v20, %v3992_v46 }
 0xbb1   :  { %v3981_v28 = vrot.slane %v3980_v25, 2 }
 0xbb2   :  { %v3954_v29 = vadd.f32 %v3953_v26, %v3952_v52  ;;  %v3968_v48 = vadd.f32 %v3967_v27, %v3966_v18  ;;  %v3995_v31 = vrot.slane %v3994_v42, 2 }
 0xbb3   :  { %v3982_v36 = vadd.f32 %v3981_v28, %v3980_v25 }
 0xbb4   :  { %v3955_v55 = vrot.slane %v3954_v29, 1  ;;  %v3969_v0 = vrot.slane %v3968_v48, 1  ;;  %v3996_v37 = vadd.f32 %v3995_v31, %v3994_v42 }
 0xbb5   :  { %v3983_v60 = vrot.slane %v3982_v36, 1 }
 0xbb6   :  { %v3956_v24 = vadd.f32 %v3955_v55, %v3954_v29  ;;  %v3970_v16 = vadd.f32 %v3969_v0, %v3968_v48  ;;  %v3997_v30 = vrot.slane %v3996_v37, 1 }
 0xbb7   :  { %v3984_v4 = vadd.f32 %v3983_v60, %v3982_v36 }
 0xbb8   :  { %v3971_v38 = vadd.f32 %v3970_v16, %v3956_v24  ;;  %v3998_v19 = vadd.f32 %v3997_v30, %v3996_v37  ;;  %v5277_v16 = vld [vmem:[#allocation5] ss:$0 sm:$0xff] }
 0xbba   :  { %v3985_v49 = vadd.f32 %v3984_v4, %v3971_v38 }
 0xbbc   :  { %v3999_v39 = vadd.f32 %v3998_v19, %v3985_v49 }
 0xbbe   :  { %v4000_v54 = vmul.f32 0.015625, %v3999_v39 }
 0xbc0   :  { %v4002_v41 = vadd.f32 1e-05, %v4000_v54 }
 0xbc2   :  { %6516 = vrsqrt.f32 %v4002_v41 }
 0xbcc   :  { %v6517_v58 = vpop.eup %6516 }
 0xbcd   :  { %v4004_v1 = vmul.f32 %v6517_v58, %v4001_v57 }
 0xbcf   :  { %v4006_v33 = vmul.f32 %v4004_v1, %v7340_v43  ;;  %v4013_v7 = vrot.slane %v4004_v1, %v7160_v51 }
 0xbd1   :  { %v4007_v34 = vsub.f32 %v4005_v3, %v4006_v33  ;;  %v4028_v45 = vmul.f32 %v4013_v7, %v7309_v61  ;;  %v4016_v47 = vmul.f32 %v4013_v7, %v7305_v22  ;;  %v4015_v8 = vmul.f32 %v4013_v7, %v7307_v35  ;;  %v5274_v22 = vld [vmem:[%s7483_s13 + $0x28] sm:$0xff] }
 0xbd2   :  { %v4027_v59 = vmul.f32 %v4013_v7, %v7311_v63  ;;  %v4564_v63 = vmul.f32 %v4013_v7, %v7331_v14  ;;  %v4565_v9 = vmul.f32 %v4013_v7, %v7329_v2  ;;  %v4558_v14 = vmul.f32 %v4013_v7, %v7323_v12 }
 0xbd3   :  { %v4021_v44 = vrot.slane %v4007_v34, %v7160_v51  ;;  %v5273_v51 = vld [vmem:[%s7483_s13 + $0x20] sm:$0xff]  ;;  %v4559_v6 = vmul.f32 %v4013_v7, %v7321_v56 }
 0xbd4   :  { %v7389_v62 = vpack.c.bf16 %v5274_v22, %v5273_v51 }
 0xbd5   :  { %v4030_v50 = vadd.f32 %v4028_v45, %v4021_v44  ;;  %v4024_v10 = vadd.f32 %v4021_v44, %v4016_v47  ;;  %v4023_v13 = vadd.f32 %v4021_v44, %v4015_v8  ;;  %v4029_v15 = vadd.f32 %v4027_v59, %v4021_v44 }
 0xbd6   :  { %v4566_v11 = vadd.f32 %v4564_v63, %v4021_v44  ;;  %v4567_v32 = vadd.f32 %v4565_v9, %v4021_v44  ;;  %v4560_v2 = vadd.f32 %v4558_v14, %v4021_v44  ;;  %v4561_v17 = vadd.f32 %v4559_v6, %v4021_v44 }
 0xbd7   :  { %6518 = vtanh.f32 %v4030_v50 }
 0xbd8   :  { %6520 = vtanh.f32 %v4024_v10 }
 0xbd9   :  { %6522 = vtanh.f32 %v4023_v13 }
 0xbda   :  { %6524 = vtanh.f32 %v4029_v15 }
 0xbdb   :  { %6526 = vtanh.f32 %v4566_v11 }
 0xbdc   :  { %6528 = vtanh.f32 %v4567_v32 }
 0xbdd   :  { %6530 = vtanh.f32 %v4560_v2 }
 0xbde   :  { %6532 = vtanh.f32 %v4561_v17 }
 0xbe1   :  { %v6519_v43 = vpop.eup %6518 }
 0xbe2   :  { %4034 = vst.msk [vmem:[#allocation4 + $0x9] sm:$0xff] %vm62_vm5, %v6519_v43  ;;  %v6521_v35 = vpop.eup %6520 }
 0xbe3   :  { %v6523_v61 = vpop.eup %6522 }
 0xbe4   :  { %v6525_v40 = vpop.eup %6524  ;;  %5992 = vmatprep.mubr.msk.f32.mxu0 %vm62_vm5, %v6523_v61 }
 0xbe5   :  { %6013 = vmatprep.mubr.msk.f32.mxu1 %vm62_vm5, %v6525_v40  ;;  %4033 = vst.msk [vmem:[#allocation4 + $0x1] sm:$0xff] %vm62_vm5, %v6525_v40  ;;  %5993 = vmatmul.mubr.msk.f32.vlgmr.msra.gmra.mrb[18].mxu0 %vm62_vm5, %v6521_v35  ;;  %v6527_v56 = vpop.eup %6526 }
 0xbe6   :  { %6014 = vmatmul.mubr.msk.f32.vlgmr.msra.gmra.mrb[18].mxu1 %vm62_vm5, %v6519_v43  ;;  %6351 = vmatpush3.bf16.msra.mxu0 %v7298_v53  ;;  %v6529_v12 = vpop.eup %6528 }
 0xbe7   :  { %6020 = vmatprep.mubr.msk.f32.mxu1 %vm62_vm5, %v6523_v61  ;;  %6363 = vmatpush3.bf16.msra.mxu1 %v7298_v53  ;;  %v6531_v27 = vpop.eup %6530 }
 0xbe8   :  { %6365 = vmatprep.subr.bf16.mxu1 %v7389_v62  ;;  %6353 = vmatprep.subr.bf16.mxu0 %v7389_v62  ;;  %v6533_v29 = vpop.eup %6532 }
 0xbec   :  { %v4035_v21 = vld [vmem:[#allocation4] sm:$0xff]  ;;  %v4036_v46 = vld [vmem:[#allocation4 + $0x8] sm:$0xff] }
 0xbed   :  { %4037 = vst.msk [vmem:[#allocation4 + $0x1] sm:$0xff] %vm62_vm5, %v6523_v61  ;;  %4038 = vst.msk [vmem:[#allocation4 + $0x9] sm:$0xff] %vm62_vm5, %v6521_v35  ;;  %5999 = vmatprep.mubr.msk.f32.mxu0 %vm62_vm5, %v4035_v21 }
 0xbee   :  { %6000 = vmatmul.mubr.msk.f32.vlgmr.msra.gmra.mrb[18].mxu0 %vm62_vm5, %v4036_v46  ;;  %6021 = vmatmul.mubr.msk.f32.vlgmr.msra.gmra.mrb[18].mxu1 %vm62_vm5, %v6521_v35 }
 0xbef   :  { %6006 = vmatprep.mubr.msk.f32.mxu0 %vm62_vm5, %v6525_v40  ;;  %6367 = vmatpush3.bf16.msra.mxu1 %v7389_v62 }
 0xbf0   :  { %6355 = vmatpush3.bf16.msra.mxu0 %v7389_v62  ;;  %6381 = vmatprep.subr.bf16.mxu1 %v7285_v23 }
 0xbf1   :  { %6369 = vmatprep.subr.bf16.mxu0 %v7285_v23 }
 0xbf4   :  { %v4039_v5 = vld [vmem:[#allocation4] sm:$0xff]  ;;  %v4040_v52 = vld [vmem:[#allocation4 + $0x8] sm:$0xff]  ;;  %v4041_v18 = vld [vmem:[#allocation4 + $0x10] sm:$0x3] }
 0xbf5   :  { %v4456_v20 = vrot.slane %v4039_v5, 2  ;;  %v4457_v25 = vrot.slane %v4040_v52, 2  ;;  %4570 = vst.msk [vmem:[#allocation4 + $0x1] sm:$0xff] %vm62_vm5, %v6527_v56  ;;  %v4459_v26 = vrot.slane %v4041_v18, 2  ;;  %4571 = vst.msk [vmem:[#allocation4 + $0x9] sm:$0xff] %vm62_vm5, %v6529_v12 }
 0xbf6   :  { %6007 = vmatmul.mubr.msk.f32.vlgmr.msra.gmra.mrb[18].mxu0 %vm62_vm5, %v6519_v43 }
 0xbf7   :  { %6371 = vmatpush3.bf16.msra.mxu0 %v7285_v23  ;;  %6034 = vmatprep.mubr.msk.f32.mxu0 %vm62_vm5, %v6531_v27  ;;  %v4458_v42 = vsel %vm244_vm4, %v4456_v20, %v4457_v25  ;;  %v4460_v28 = vsel %vm244_vm4, %v4457_v25, %v4459_v26 }
 0xbf8   :  { %6027 = vmatprep.mubr.msk.f32.mxu1 %vm62_vm5, %v4458_v42  ;;  %6373 = vmatprep.subr.bf16.mxu0 %v7298_v53 }
 0xbf9   :  { %6028 = vmatmul.mubr.msk.f32.vlgmr.msra.gmra.mrb[18].mxu1 %vm62_vm5, %v4460_v28 }
 0xbfa   :  { %6035 = vmatmul.mubr.msk.f32.vlgmr.msra.gmra.mrb[20].mxu0 %vm62_vm5, %v6533_v29  ;;  %6383 = vmatpush3.bf16.msra.mxu1 %v7285_v23 }
 0xbfb   :  { %6055 = vmatprep.mubr.msk.f32.mxu1 %vm62_vm5, %v6527_v56  ;;  %6385 = vmatprep.subr.bf16.mxu1 %v7298_v53 }
 0xbfc   :  { %v4572_v48 = vld [vmem:[#allocation4] sm:$0xff]  ;;  %6375 = vmatpush3.bf16.msra.mxu0 %v7298_v53  ;;  %v4573_v31 = vld [vmem:[#allocation4 + $0x8] sm:$0xff] }
 0xbfd   :  { %6041 = vmatprep.mubr.msk.f32.mxu0 %vm62_vm5, %v4572_v48  ;;  %6056 = vmatmul.mubr.msk.f32.vlgmr.msra.gmra.mrb[20].mxu1 %vm62_vm5, %v6529_v12  ;;  %4574 = vst.msk [vmem:[#allocation4 + $0x1] sm:$0xff] %vm62_vm5, %v6531_v27  ;;  %4575 = vst.msk [vmem:[#allocation4 + $0x9] sm:$0xff] %vm62_vm5, %v6533_v29 }
 0xbfe   :  { %6387 = vmatpush3.bf16.msra.mxu1 %v7298_v53  ;;  %6062 = vmatprep.mubr.msk.f32.mxu1 %vm62_vm5, %v6531_v27 }
 0xbff   :  { %6389 = vmatprep.subr.bf16.mxu1 %v7389_v62  ;;  %6377 = vmatprep.subr.bf16.mxu0 %v7389_v62 }
 0xc02   :  { %6042 = vmatmul.mubr.msk.f32.vlgmr.msra.gmra.mrb[20].mxu0 %vm62_vm5, %v4573_v31 }
 0xc03   :  { %6048 = vmatprep.mubr.msk.f32.mxu0 %vm62_vm5, %v6527_v56  ;;  %6379 = vmatpush3.bf16.msra.mxu0 %v7389_v62 }
 0xc04   :  { %v4576_v23 = vld [vmem:[#allocation4] sm:$0xff]  ;;  %v4577_v36 = vld [vmem:[#allocation4 + $0x8] sm:$0xff]  ;;  %v4578_v37 = vld [vmem:[#allocation4 + $0x10] sm:$0x3] }
 0xc05   :  { %6063 = vmatmul.mubr.msk.f32.vlgmr.msra.gmra.mrb[20].mxu1 %vm62_vm5, %v6533_v29  ;;  %v4985_v55 = vrot.slane %v4576_v23, 2  ;;  %v4986_v0 = vrot.slane %v4577_v36, 2  ;;  %v4988_v60 = vrot.slane %v4578_v37, 2 }
 0xc06   :  { %6391 = vmatpush3.bf16.msra.mxu1 %v7389_v62 }
 0xc07   :  { %v4987_v53 = vsel %vm244_vm4, %v4985_v55, %v4986_v0  ;;  %v4989_v24 = vsel %vm244_vm4, %v4986_v0, %v4988_v60 }
 0xc08   :  { %6069 = vmatprep.mubr.msk.f32.mxu1 %vm62_vm5, %v4987_v53 }
 0xc0a   :  { %6049 = vmatmul.mubr.msk.f32.vlgmr.msra.gmra.mrb[20].mxu0 %vm62_vm5, %v6529_v12 }
 0xc0d   :  { %6070 = vmatmul.mubr.msk.f32.vlgmr.msra.gmra.mrb[20].mxu1 %vm62_vm5, %v4989_v24 }
 0xcc9   :  { %v6008_v30 = vpop.f32.mrb[18].mxu0 }
 0xcca   :  { %v4302_v38 = vadd.f32 %v6008_v30, %v5277_v16  ;;  %v4284_v4 = vpop.f32.mrb[19].mxu0 }
 0xccb   :  { %v4301_v49 = vadd.f32 %v5277_v16, %v4284_v4 }
 0xccc   :  { %4546 = vst.msk [vmem:[%s7488_s15 + $0x8] sm:$0xff] %vm4544_vm7, %v4302_v38  ;;  %v6029_v19 = vpop.f32.mrb[18].mxu1 }
 0xccd   :  { %4545 = vst.msk [vmem:[%s7488_s15] sm:$0xff] %vm4544_vm7, %v4301_v49  ;;  %v4531_v39 = vpop.f32.mrb[19].mxu1  ;;  %v4543_v41 = vadd.f32 %v6029_v19, %v5277_v16 }
 0xcce   :  { %v4542_v54 = vadd.f32 %v5277_v16, %v4531_v39 }
 0xcd0   :  { %4549 = vrot.lane.b32.xlu0 %v4542_v54, %s6535_s5 }
 0xcd4   :  { %4551 = vrot.lane.b32.xlu0 %v4543_v41, %s6535_s5 }
 0xcdd   :  { %v6050_v57 = vpop.f32.mrb[20].mxu0 }
 0xcde   :  { %v4831_v58 = vadd.f32 %v6050_v57, %v5277_v16  ;;  %v4819_v1 = vpop.f32.mrb[21].mxu0 }
 0xcdf   :  { %v4830_v3 = vadd.f32 %v5277_v16, %v4819_v1 }
 0xce0   :  { %5301 = vst.msk [vmem:[%s7488_s15 + $0x18] sm:$0xff] %vm4544_vm7, %v4831_v58  ;;  %v6071_v33 = vpop.f32.mrb[20].mxu1 }
 0xce1   :  { %5300 = vst.msk [vmem:[%s7488_s15 + $0x10] sm:$0xff] %vm4544_vm7, %v4830_v3  ;;  %v5060_v7 = vpop.f32.mrb[21].mxu1  ;;  %v5072_v44 = vadd.f32 %v6071_v33, %v5277_v16 }
 0xce2   :  { %v5071_v34 = vadd.f32 %v5277_v16, %v5060_v7 }
 0xce4   :  { %5078 = vrot.lane.b32.xlu1 %v5071_v34, %s6535_s5 }
 0xce8   :  { %5080 = vrot.lane.b32.xlu1 %v5072_v44, %s6535_s5 }
 0xd42   :  { %v4550_v45 = vpop.permute.xlu0 %4549 }
 0xd43   :  { %4556 = vst.msk [vmem:[%s7488_s15] sm:$0xff] %vm4555_vm8, %v4550_v45 }
 0xd46   :  { %v4552_v47 = vpop.permute.xlu0 %4551 }
 0xd47   :  { %4557 = vst.msk [vmem:[%s7488_s15 + $0x8] sm:$0xff] %vm4555_vm8, %v4552_v47 }
 0xd56   :  { %v5079_v50 = vpop.permute.xlu1 %5078 }
 0xd57   :  { %5302 = vst.msk [vmem:[%s7488_s15 + $0x10] sm:$0xff] %vm4555_vm8, %v5079_v50 }
 0xd5a   :  { %v5081_v8 = vpop.permute.xlu1 %5080 }
 0xd5b   :  { %5303 = vst.msk [vmem:[%s7488_s15 + $0x18] sm:$0xff] %vm4555_vm8, %v5081_v8 }

</bundles_post_ra>
